<compile_context>
chip_gen: v5e
topology: v5e:2x2
jax: 0.10.0
libtpu: 0.0.40
codegen_flags: <defaults>
</compile_context>

<pallas_src>
import functools

import jax
import jax.numpy as jnp
from jax.experimental import pallas as pl
from jax.experimental.pallas import tpu as pltpu


# ----------------------------------------------------------------------------
# Scaled-down PyConvResNet definition (deterministic synthetic parameters)
# ----------------------------------------------------------------------------
PYCONV_SPECS = [(3, 1), (5, 2), (7, 4), (9, 4)]   # (kernel, groups) per level
C_STEM = 16
C_B1_IN, C_B1_MID, C_B1_OUT = 16, 8, 32
C_PY_IN, C_PY_MID, C_PY_OUT = 32, 32, 64
C_PY_BRANCH = C_PY_MID // len(PYCONV_SPECS)       # 8 channels per pyramid level


# ----------------------------------------------------------------------------
# In-kernel helpers (operate on VMEM values)
# ----------------------------------------------------------------------------
def _pad_hw(x, pt, pb, pleft, pright):
    """Zero-pad a (H, W, C) VMEM value along H and W (in-kernel, no HBM pad)."""
    H, W, C = x.shape
    dt = x.dtype
    if pleft or pright:
        parts = []
        if pleft:
            parts.append(jnp.zeros((H, pleft, C), dt))
        parts.append(x)
        if pright:
            parts.append(jnp.zeros((H, pright, C), dt))
        x = jnp.concatenate(parts, axis=1)
        W = W + pleft + pright
    if pt or pb:
        parts = []
        if pt:
            parts.append(jnp.zeros((pt, W, C), dt))
        parts.append(x)
        if pb:
            parts.append(jnp.zeros((pb, W, C), dt))
        x = jnp.concatenate(parts, axis=0)
    return x


def _conv_rowfused(xp, w_rows, KH, KW, Ho, Wo):
    """Direct stride-1 conv on an already padded (Hp, Wp, Cin) bf16 value.

    w_rows: (KH, KW*Cin, Cout) bf16 (BN scale folded in).
    Row-fused taps: the KW shifted slices of one kernel row are concatenated
    along the channel (lane) dim, giving KH matmuls with K = KW*Cin instead of
    KH*KW matmuls with K = Cin.  The (Ho, Wo, KW*Cin) -> (Ho*Wo, KW*Cin) merge
    keeps channels in lanes (Wo is a multiple of 8 -> sublane-group restack,
    not a lane relayout).  Returns an (Ho*Wo, Cout) f32 accumulator.
    """
    Cin = xp.shape[-1]
    acc = None
    for ki in range(KH):
        slab = jnp.concatenate(
            [xp[ki:ki + Ho, kj:kj + Wo, :] for kj in range(KW)], axis=-1)
        slab = slab.reshape(Ho * Wo, KW * Cin)
        part = jnp.dot(slab, w_rows[ki], preferred_element_type=jnp.float32)
        acc = part if acc is None else acc + part
    return acc


# ----------------------------------------------------------------------------
# Pallas kernels (one per fused stage)
# ----------------------------------------------------------------------------
def _stem_kernel(z_ref, w_ref, b_ref, o_ref, *, Hq, Wq):
    """Fused stem: 7x7/s2/pad3 conv + BN + ReLU + MaxPool2d(3, s2, pad 1).

    z_ref: (1, Hq, Wq, 4*Cin) bf16 -- the 4 stride-2 phases of the raw image
           (space-to-depth), so the stride-2 conv becomes an exactly
           equivalent 4x4 stride-1 conv with (2,1)x(2,1) in-kernel padding.
    w_ref: (4, 4*4*Cin, C_STEM) bf16 row-fused equivalent weight.
    b_ref: (1, C_STEM) f32 folded BN shift.
    o_ref: (1, (Hq//2)*(Wq//2), C_STEM) bf16 pooled output.
    """
    cout = o_ref.shape[-1]
    z = z_ref[0]                                              # (Hq, Wq, 4*Cin)
    zp = _pad_hw(z, 2, 1, 2, 1)                               # in-kernel pad
    h = _conv_rowfused(zp, w_ref, KH=4, KW=4, Ho=Hq, Wo=Wq)   # (Hq*Wq, C) f32
    h = jnp.maximum(h + b_ref[...], 0.0)                      # BN shift + ReLU

    # MaxPool2d(3, stride=2, padding=1), fused; h >= 0 post-ReLU so zero
    # padding is equivalent to PyTorch's implicit -inf padding.
    hp = _pad_hw(h.reshape(Hq, Wq, cout), 1, 1, 1, 1)         # (Hq+2, Wq+2, C)
    cm = jnp.maximum(jnp.maximum(hp[:, 0:Wq, :], hp[:, 1:Wq + 1, :]),
                     hp[:, 2:Wq + 2, :])                      # column 3-max
    m = jnp.maximum(jnp.maximum(cm[0:Hq], cm[1:Hq + 1]), cm[2:Hq + 2])
    # stride-2 subsampling via unit slices + concat (no strided loads needed)
    m = jnp.concatenate([m[2 * i:2 * i + 1] for i in range(Hq // 2)], axis=0)
    m = jnp.concatenate([m[:, 2 * j:2 * j + 1, :] for j in range(Wq // 2)],
                        axis=1)
    o_ref[0] = m.reshape((Hq // 2) * (Wq // 2), cout).astype(o_ref.dtype)


def _bottleneck_kernel(x_ref, dsw_ref, dsb_ref, w1_ref, b1_ref, w2_ref, b2_ref,
                       w3_ref, b3_ref, o_ref, *, K, pad, H, W):
    """Fused bottleneck: 1x1 -> KxK -> 1x1 (each + folded BN), 1x1 downsample,
    residual add and final ReLU, with all intermediates VMEM-resident.
    For the PyConv block the KxK weight is the packed block-diagonal pyramid.
    """
    x = x_ref[0]                                              # (H*W, Cin) bf16

    # downsample branch: 1x1 conv + BN (no ReLU)
    idn = jnp.dot(x, dsw_ref[...],
                  preferred_element_type=jnp.float32) + dsb_ref[...]

    # conv1 1x1 + BN + ReLU
    h = jnp.dot(x, w1_ref[...],
                preferred_element_type=jnp.float32) + b1_ref[...]
    h = jnp.maximum(h, 0.0)

    # conv2 KxK + BN + ReLU (in-kernel zero pad, row-fused taps)
    mid = h.shape[-1]
    hp = _pad_hw(h.astype(jnp.bfloat16).reshape(H, W, mid), pad, pad, pad, pad)
    h = _conv_rowfused(hp, w2_ref, KH=K, KW=K, Ho=H, Wo=W)
    h = jnp.maximum(h + b2_ref[...], 0.0)

    # conv3 1x1 + BN, residual add, final ReLU
    h = jnp.dot(h.astype(jnp.bfloat16), w3_ref[...],
                preferred_element_type=jnp.float32) + b3_ref[...]
    o_ref[0] = jnp.maximum(h + idn, 0.0).astype(o_ref.dtype)


# ----------------------------------------------------------------------------
# pallas_call wrappers
# ----------------------------------------------------------------------------
_PARALLEL = pltpu.CompilerParams(dimension_semantics=("parallel",))


def _full_spec(shape):
    zeros = (0,) * len(shape)
    return pl.BlockSpec(shape, lambda n, _z=zeros: _z)


def stem_call(z, w_rows, shift):
    N, Hq, Wq, C4 = z.shape
    cout = w_rows.shape[-1]
    hw_out = (Hq // 2) * (Wq // 2)
    return pl.pallas_call(
        functools.partial(_stem_kernel, Hq=Hq, Wq=Wq),
        grid=(N,),
        in_specs=[pl.BlockSpec((1, Hq, Wq, C4), lambda n: (n, 0, 0, 0)),
                  _full_spec(w_rows.shape),
                  _full_spec(shift.shape)],
        out_specs=pl.BlockSpec((1, hw_out, cout), lambda n: (n, 0, 0)),
        out_shape=jax.ShapeDtypeStruct((N, hw_out, cout), jnp.bfloat16),
        compiler_params=_PARALLEL,
    )(z, w_rows, shift)


def bottleneck_call(x, w, *, K, pad, H, W, out_dtype):
    N, HW, Cin = x.shape
    cout = w["w3"].shape[-1]
    ins = [x, w["dsw"], w["dsb"], w["w1"], w["b1"],
           w["w2"], w["b2"], w["w3"], w["b3"]]
    in_specs = ([pl.BlockSpec((1, HW, Cin), lambda n: (n, 0, 0))] +
                [_full_spec(a.shape) for a in ins[1:]])
    return pl.pallas_call(
        functools.partial(_bottleneck_kernel, K=K, pad=pad, H=H, W=W),
        grid=(N,),
        in_specs=in_specs,
        out_specs=pl.BlockSpec((1, HW, cout), lambda n: (n, 0, 0)),
        out_shape=jax.ShapeDtypeStruct((N, HW, cout), out_dtype),
        compiler_params=_PARALLEL,
    )(*ins)


# ----------------------------------------------------------------------------
# Parameters (synthetic, deterministic) and one-time preparation
# ----------------------------------------------------------------------------
def init_params(key):
    keys = iter(jax.random.split(key, 64))
    p = {}

    def conv(kh, kw, cin_g, cout, std=0.1):
        return (std * jax.random.normal(next(keys),
                                        (kh, kw, cin_g, cout))).astype(jnp.float32)

    def bn(c):
        # inference-mode BatchNorm folded into (scale, shift)
        k1, k2, k3, k4 = jax.random.split(next(keys), 4)
        gamma = 1.0 + 0.1 * jax.random.normal(k1, (c,))
        beta = 0.1 * jax.random.normal(k2, (c,))
        mean = 0.1 * jax.random.normal(k3, (c,))
        var = 1.0 + 0.1 * jax.random.uniform(k4, (c,))
        scale = gamma * jax.lax.rsqrt(var + 1e-5)
        shift = beta - mean * scale
        return scale.astype(jnp.float32), shift.astype(jnp.float32)

    # stem
    p["stem_w"] = conv(7, 7, 3, C_STEM)
    p["stem_s"], p["stem_b"] = bn(C_STEM)
    # standard bottleneck (stand-in for the original ResNet stages)
    p["b1_ds_w"] = conv(1, 1, C_B1_IN, C_B1_OUT)
    p["b1_ds_s"], p["b1_ds_b"] = bn(C_B1_OUT)
    p["b1_w1"] = conv(1, 1, C_B1_IN, C_B1_MID)
    p["b1_s1"], p["b1_b1"] = bn(C_B1_MID)
    p["b1_w2"] = conv(3, 3, C_B1_MID, C_B1_MID)
    p["b1_s2"], p["b1_b2"] = bn(C_B1_MID)
    p["b1_w3"] = conv(1, 1, C_B1_MID, C_B1_OUT)
    p["b1_s3"], p["b1_b3"] = bn(C_B1_OUT)
    # PyConvBottleneck(C_PY_IN -> C_PY_OUT, stride=1, downsample=1x1 conv+BN)
    p["p_ds_w"] = conv(1, 1, C_PY_IN, C_PY_OUT)
    p["p_ds_s"], p["p_ds_b"] = bn(C_PY_OUT)
    p["p_w1"] = conv(1, 1, C_PY_IN, C_PY_MID)
    p["p_s1"], p["p_b1"] = bn(C_PY_MID)
    for k, g in PYCONV_SPECS:
        p[f"p_k{k}_w"] = conv(k, k, C_PY_MID // g, C_PY_BRANCH)
    p["p_s2"], p["p_b2"] = bn(C_PY_MID)           # BN after pyramid concat
    p["p_w3"] = conv(1, 1, C_PY_MID, C_PY_OUT)
    p["p_s3"], p["p_b3"] = bn(C_PY_OUT)
    return p


def build_pyconv_weight(p):
    """Pack the 4 pyramid branches (kernels 3/5/7/9, groups 1/2/4/4) into ONE
    spatially-centered, block-diagonal 9x9 dense weight so the whole pyramidal
    conv runs as one matmul chain.  Output-channel ordering is branch-major,
    identical to the original concat."""
    K = max(k for k, _ in PYCONV_SPECS)
    wd = jnp.zeros((K, K, C_PY_MID, C_PY_MID), jnp.float32)
    for b, (k, g) in enumerate(PYCONV_SPECS):
        w = p[f"p_k{k}_w"]                    # (k, k, Cin_g, C_PY_BRANCH)
        cin_g = C_PY_MID // g
        cout_g = C_PY_BRANCH // g
        off = (K - k) // 2
        for gi in range(g):
            blk = w[..., gi * cout_g:(gi + 1) * cout_g]
            co0 = b * C_PY_BRANCH + gi * cout_g
            wd = wd.at[off:off + k, off:off + k,
                       gi * cin_g:(gi + 1) * cin_g,
                       co0:co0 + cout_g].set(blk)
    return wd


def prepare_params(p):
    """One-time parameter preparation (runs OUTSIDE the jitted forward):
    fold BN scales into conv weights, build the space-to-depth stem weight,
    pack the pyramid branches into one block-diagonal 9x9 weight, lay spatial
    weights out row-fused as (KH, KW*Cin, Cout) and cast MXU operands to bf16.
    """
    def fold(w, scale):
        return (w * scale.reshape((1,) * (w.ndim - 1) + (-1,))).astype(jnp.bfloat16)

    def mat(w):          # (1,1,Cin,Cout) -> (Cin,Cout)
        return w.reshape(w.shape[-2], w.shape[-1])

    def rows(w):         # (KH,KW,Cin,Cout) -> (KH, KW*Cin, Cout)
        kh, kw, cin, cout = w.shape
        return w.reshape(kh, kw * cin, cout)

    def shift(b):
        return b.reshape(1, -1).astype(jnp.float32)

    q = {}
    # -- stem: 7x7/s2 conv -> exactly equivalent 4x4/s1 conv over the 4
    #    stride-2 phases (phase p = 2*pi+pj holds x[(1-pi)::2, (1-pj)::2, :]).
    #    w_eff[a, b, 3*(2*pi+pj)+c, o] = w[2a - pi, 2b - pj, c, o] (zero if <0)
    w = p["stem_w"]                                        # (7,7,3,C_STEM)
    cin, cout = w.shape[2], w.shape[3]
    wp = jnp.pad(w, ((1, 0), (1, 0), (0, 0), (0, 0)))      # tap index -1 -> 0
    w6 = wp.reshape(4, 2, 4, 2, cin, cout)[:, ::-1, :, ::-1]   # [a,pi,b,pj,c,o]
    w_eff = w6.transpose(0, 2, 1, 3, 4, 5).reshape(4, 4, 4 * cin, cout)
    q["stem_w"] = rows(fold(w_eff, p["stem_s"]))
    q["stem_b"] = shift(p["stem_b"])

    # -- standard ResNet bottleneck
    q["b1"] = dict(
        dsw=mat(fold(p["b1_ds_w"], p["b1_ds_s"])), dsb=shift(p["b1_ds_b"]),
        w1=mat(fold(p["b1_w1"], p["b1_s1"])), b1=shift(p["b1_b1"]),
        w2=rows(fold(p["b1_w2"], p["b1_s2"])), b2=shift(p["b1_b2"]),
        w3=mat(fold(p["b1_w3"], p["b1_s3"])), b3=shift(p["b1_b3"]),
    )

    # -- PyConv bottleneck (pyramid packed dense at this toy scale)
    w_pyr = build_pyconv_weight(p)                         # (9,9,32,32)
    q["py"] = dict(
        dsw=mat(fold(p["p_ds_w"], p["p_ds_s"])), dsb=shift(p["p_ds_b"]),
        w1=mat(fold(p["p_w1"], p["p_s1"])), b1=shift(p["p_b1"]),
        w2=rows(fold(w_pyr, p["p_s2"])), b2=shift(p["p_b2"]),
        w3=mat(fold(p["p_w3"], p["p_s3"])), b3=shift(p["p_b3"]),
    )
    return q


# ----------------------------------------------------------------------------
# Forward pass (3 fused pallas_calls)
# ----------------------------------------------------------------------------
def forward(x_nchw, q):
    """PyConvResNet forward.  x_nchw: (N, 3, 32, 32) f32 -> (N, 64, 8, 8) f32."""
    N, _, H, W = x_nchw.shape
    x = jnp.transpose(x_nchw, (0, 2, 3, 1))                 # NHWC
    # Space-to-depth: the 4 stride-2 phases of the raw input (cheap strided
    # slices, input read once, all conv padding happens in-kernel).
    z = jnp.concatenate([x[:, 1::2, 1::2, :], x[:, 1::2, 0::2, :],
                         x[:, 0::2, 1::2, :], x[:, 0::2, 0::2, :]],
                        axis=-1).astype(jnp.bfloat16)       # (N, H/2, W/2, 12)

    h = stem_call(z, q["stem_w"], q["stem_b"])              # (N, 64, 16) bf16
    h = bottleneck_call(h, q["b1"], K=3, pad=1, H=H // 4, W=W // 4,
                        out_dtype=jnp.bfloat16)             # (N, 64, 32) bf16
    h = bottleneck_call(h, q["py"], K=9, pad=4, H=H // 4, W=W // 4,
                        out_dtype=jnp.float32)              # (N, 64, 64) f32

    y = h.reshape(N, H // 4, W // 4, C_PY_OUT)
    return jnp.transpose(y, (0, 3, 1, 2))                   # back to NCHW


# ----------------------------------------------------------------------------
# Pure-XLA f32 reference (for a loose numerical self-check)
# ----------------------------------------------------------------------------
def reference_forward(x_nchw, p):
    dn = ("NHWC", "HWIO", "NHWC")
    hi = jax.lax.Precision.HIGHEST

    def conv(x, w, stride=1, pad=0, groups=1):
        return jax.lax.conv_general_dilated(
            x, w, (stride, stride), [(pad, pad), (pad, pad)],
            dimension_numbers=dn, feature_group_count=groups, precision=hi)

    def bn(x, s, b):
        return x * s + b

    x = jnp.transpose(x_nchw, (0, 2, 3, 1)).astype(jnp.float32)
    x = jnp.maximum(bn(conv(x, p["stem_w"], stride=2, pad=3),
                       p["stem_s"], p["stem_b"]), 0.0)
    x = jax.lax.reduce_window(x, -jnp.inf, jax.lax.max, (1, 3, 3, 1),
                              (1, 2, 2, 1), ((0, 0), (1, 1), (1, 1), (0, 0)))

    idn = bn(conv(x, p["b1_ds_w"]), p["b1_ds_s"], p["b1_ds_b"])
    y = jnp.maximum(bn(conv(x, p["b1_w1"]), p["b1_s1"], p["b1_b1"]), 0.0)
    y = jnp.maximum(bn(conv(y, p["b1_w2"], pad=1), p["b1_s2"], p["b1_b2"]), 0.0)
    y = bn(conv(y, p["b1_w3"]), p["b1_s3"], p["b1_b3"])
    x = jnp.maximum(y + idn, 0.0)

    idn = bn(conv(x, p["p_ds_w"]), p["p_ds_s"], p["p_ds_b"])
    y = jnp.maximum(bn(conv(x, p["p_w1"]), p["p_s1"], p["p_b1"]), 0.0)
    y = jnp.concatenate([conv(y, p[f"p_k{k}_w"], pad=k // 2, groups=g)
                         for k, g in PYCONV_SPECS], axis=-1)
    y = jnp.maximum(bn(y, p["p_s2"], p["p_b2"]), 0.0)
    y = bn(conv(y, p["p_w3"]), p["p_s3"], p["p_b3"])
    x = jnp.maximum(y + idn, 0.0)
    return jnp.transpose(x, (0, 3, 1, 2))


# TODO(synk): the exact torchvision ResNet weights / full trunk depth are not
# available in-script; this uses a scaled-down deterministic stand-in with the
# same op structure (conv+BN+ReLU stem, maxpool, bottleneck, PyConv bottleneck).

if __name__ == "__main__":
    key = jax.random.PRNGKey(0)
    pkey, xkey = jax.random.split(key)
    params = init_params(pkey)
    prepped = prepare_params(params)          # one-time prep, outside hot path
    x = jax.random.normal(xkey, (2, 3, 32, 32), dtype=jnp.float32)  # NCHW input

    out = jax.jit(forward)(x, prepped)
    out = jax.block_until_ready(out)

    assert out.shape == (2, C_PY_OUT, 8, 8), out.shape
    assert bool(jnp.all(jnp.isfinite(out)))
    # Loose check vs f32 XLA reference (kernels use bf16 operands, f32 accum).
    ref = reference_forward(x, params)
    err = float(jnp.max(jnp.abs(out - ref)) / (jnp.max(jnp.abs(ref)) + 1e-6))
    assert err < 0.1, f"kernel/reference mismatch: normalized max err {err}"
    print("KERNEL_OK")
</pallas_src>

<mosaic_0001>
module attributes {stable_mosaic.version = 11 : i64} {
  func.func @_stem_kernel(%arg0: i32, %arg1: memref<1x16x16x12xbf16, #tpu.memory_space<vmem>>, %arg2: memref<4x48x16xbf16, #tpu.memory_space<vmem>>, %arg3: memref<1x16xf32, #tpu.memory_space<vmem>>, %arg4: memref<1x64x16xbf16, #tpu.memory_space<vmem>>) attributes {dimension_semantics = [#tpu.dimension_semantics<parallel>], iteration_bounds = array<i64: 2>, scalar_prefetch = 0 : i64, scratch_operands = 0 : i64, tpu.core_type = #tpu.core_type<tc>, window_params = [{transform_indices = @transform_0, window_bounds = array<i64: 1, 16, 16, 12>}, {pipeline_mode = #tpu.pipeline_mode<synchronous>, transform_indices = @transform_1, window_bounds = array<i64: 4, 48, 16>}, {pipeline_mode = #tpu.pipeline_mode<synchronous>, transform_indices = @transform_2, window_bounds = array<i64: 1, 16>}, {transform_indices = @transform_3, window_bounds = array<i64: 1, 64, 16>}]} {
    %c0 = arith.constant 0 : index
    %c0_0 = arith.constant 0 : index
    %c0_1 = arith.constant 0 : index
    %c0_2 = arith.constant 0 : index
    %0 = vector.load %arg1[%c0, %c0_0, %c0_1, %c0_2] : memref<1x16x16x12xbf16, #tpu.memory_space<vmem>>, vector<1x16x16x12xbf16>
    %1 = vector.shape_cast %0 : vector<1x16x16x12xbf16> to vector<16x16x12xbf16>
    %cst = arith.constant 0.000000e+00 : bf16
    %2 = vector.broadcast %cst : bf16 to vector<16x2x12xbf16>
    %cst_3 = arith.constant 0.000000e+00 : bf16
    %3 = vector.broadcast %cst_3 : bf16 to vector<16x1x12xbf16>
    %4 = tpu.concatenate %2, %1, %3 in 1 : vector<16x2x12xbf16>, vector<16x16x12xbf16>, vector<16x1x12xbf16> -> vector<16x19x12xbf16>
    %cst_4 = arith.constant 0.000000e+00 : bf16
    %5 = vector.broadcast %cst_4 : bf16 to vector<2x19x12xbf16>
    %cst_5 = arith.constant 0.000000e+00 : bf16
    %6 = vector.broadcast %cst_5 : bf16 to vector<1x19x12xbf16>
    %7 = tpu.concatenate %5, %4, %6 in 0 : vector<2x19x12xbf16>, vector<16x19x12xbf16>, vector<1x19x12xbf16> -> vector<19x19x12xbf16>
    %8 = vector.extract_strided_slice %7 {offsets = [0, 0, 0], sizes = [16, 16, 12], strides = [1, 1, 1]} : vector<19x19x12xbf16> to vector<16x16x12xbf16>
    %9 = vector.extract_strided_slice %7 {offsets = [0, 1, 0], sizes = [16, 16, 12], strides = [1, 1, 1]} : vector<19x19x12xbf16> to vector<16x16x12xbf16>
    %10 = vector.extract_strided_slice %7 {offsets = [0, 2, 0], sizes = [16, 16, 12], strides = [1, 1, 1]} : vector<19x19x12xbf16> to vector<16x16x12xbf16>
    %11 = vector.extract_strided_slice %7 {offsets = [0, 3, 0], sizes = [16, 16, 12], strides = [1, 1, 1]} : vector<19x19x12xbf16> to vector<16x16x12xbf16>
    %12 = tpu.concatenate %8, %9, %10, %11 in 2 : vector<16x16x12xbf16>, vector<16x16x12xbf16>, vector<16x16x12xbf16>, vector<16x16x12xbf16> -> vector<16x16x48xbf16>
    %13 = vector.shape_cast %12 : vector<16x16x48xbf16> to vector<256x48xbf16>
    %c0_6 = arith.constant 0 : index
    %c0_7 = arith.constant 0 : index
    %c0_8 = arith.constant 0 : index
    %14 = vector.load %arg2[%c0_6, %c0_7, %c0_8] : memref<4x48x16xbf16, #tpu.memory_space<vmem>>, vector<1x48x16xbf16>
    %15 = vector.shape_cast %14 : vector<1x48x16xbf16> to vector<48x16xbf16>
    %cst_9 = arith.constant dense<0.000000e+00> : vector<256x16xf32>
    %16 = tpu.matmul %13, %15, %cst_9 {dimension_numbers = #tpu.dot_dimension_numbers<[1], [0], [0], [1], [0, 0, 1, 1], [], []>} : vector<256x48xbf16>, vector<48x16xbf16>, vector<256x16xf32> -> vector<256x16xf32>
    %17 = vector.extract_strided_slice %7 {offsets = [1, 0, 0], sizes = [16, 16, 12], strides = [1, 1, 1]} : vector<19x19x12xbf16> to vector<16x16x12xbf16>
    %18 = vector.extract_strided_slice %7 {offsets = [1, 1, 0], sizes = [16, 16, 12], strides = [1, 1, 1]} : vector<19x19x12xbf16> to vector<16x16x12xbf16>
    %19 = vector.extract_strided_slice %7 {offsets = [1, 2, 0], sizes = [16, 16, 12], strides = [1, 1, 1]} : vector<19x19x12xbf16> to vector<16x16x12xbf16>
    %20 = vector.extract_strided_slice %7 {offsets = [1, 3, 0], sizes = [16, 16, 12], strides = [1, 1, 1]} : vector<19x19x12xbf16> to vector<16x16x12xbf16>
    %21 = tpu.concatenate %17, %18, %19, %20 in 2 : vector<16x16x12xbf16>, vector<16x16x12xbf16>, vector<16x16x12xbf16>, vector<16x16x12xbf16> -> vector<16x16x48xbf16>
    %22 = vector.shape_cast %21 : vector<16x16x48xbf16> to vector<256x48xbf16>
    %c1 = arith.constant 1 : index
    %c0_10 = arith.constant 0 : index
    %c0_11 = arith.constant 0 : index
    %23 = vector.load %arg2[%c1, %c0_10, %c0_11] : memref<4x48x16xbf16, #tpu.memory_space<vmem>>, vector<1x48x16xbf16>
    %24 = vector.shape_cast %23 : vector<1x48x16xbf16> to vector<48x16xbf16>
    %cst_12 = arith.constant dense<0.000000e+00> : vector<256x16xf32>
    %25 = tpu.matmul %22, %24, %cst_12 {dimension_numbers = #tpu.dot_dimension_numbers<[1], [0], [0], [1], [0, 0, 1, 1], [], []>} : vector<256x48xbf16>, vector<48x16xbf16>, vector<256x16xf32> -> vector<256x16xf32>
    %26 = arith.addf %16, %25 : vector<256x16xf32>
    %27 = vector.extract_strided_slice %7 {offsets = [2, 0, 0], sizes = [16, 16, 12], strides = [1, 1, 1]} : vector<19x19x12xbf16> to vector<16x16x12xbf16>
    %28 = vector.extract_strided_slice %7 {offsets = [2, 1, 0], sizes = [16, 16, 12], strides = [1, 1, 1]} : vector<19x19x12xbf16> to vector<16x16x12xbf16>
    %29 = vector.extract_strided_slice %7 {offsets = [2, 2, 0], sizes = [16, 16, 12], strides = [1, 1, 1]} : vector<19x19x12xbf16> to vector<16x16x12xbf16>
    %30 = vector.extract_strided_slice %7 {offsets = [2, 3, 0], sizes = [16, 16, 12], strides = [1, 1, 1]} : vector<19x19x12xbf16> to vector<16x16x12xbf16>
    %31 = tpu.concatenate %27, %28, %29, %30 in 2 : vector<16x16x12xbf16>, vector<16x16x12xbf16>, vector<16x16x12xbf16>, vector<16x16x12xbf16> -> vector<16x16x48xbf16>
    %32 = vector.shape_cast %31 : vector<16x16x48xbf16> to vector<256x48xbf16>
    %c2 = arith.constant 2 : index
    %c0_13 = arith.constant 0 : index
    %c0_14 = arith.constant 0 : index
    %33 = vector.load %arg2[%c2, %c0_13, %c0_14] : memref<4x48x16xbf16, #tpu.memory_space<vmem>>, vector<1x48x16xbf16>
    %34 = vector.shape_cast %33 : vector<1x48x16xbf16> to vector<48x16xbf16>
    %cst_15 = arith.constant dense<0.000000e+00> : vector<256x16xf32>
    %35 = tpu.matmul %32, %34, %cst_15 {dimension_numbers = #tpu.dot_dimension_numbers<[1], [0], [0], [1], [0, 0, 1, 1], [], []>} : vector<256x48xbf16>, vector<48x16xbf16>, vector<256x16xf32> -> vector<256x16xf32>
    %36 = arith.addf %26, %35 : vector<256x16xf32>
    %37 = vector.extract_strided_slice %7 {offsets = [3, 0, 0], sizes = [16, 16, 12], strides = [1, 1, 1]} : vector<19x19x12xbf16> to vector<16x16x12xbf16>
    %38 = vector.extract_strided_slice %7 {offsets = [3, 1, 0], sizes = [16, 16, 12], strides = [1, 1, 1]} : vector<19x19x12xbf16> to vector<16x16x12xbf16>
    %39 = vector.extract_strided_slice %7 {offsets = [3, 2, 0], sizes = [16, 16, 12], strides = [1, 1, 1]} : vector<19x19x12xbf16> to vector<16x16x12xbf16>
    %40 = vector.extract_strided_slice %7 {offsets = [3, 3, 0], sizes = [16, 16, 12], strides = [1, 1, 1]} : vector<19x19x12xbf16> to vector<16x16x12xbf16>
    %41 = tpu.concatenate %37, %38, %39, %40 in 2 : vector<16x16x12xbf16>, vector<16x16x12xbf16>, vector<16x16x12xbf16>, vector<16x16x12xbf16> -> vector<16x16x48xbf16>
    %42 = vector.shape_cast %41 : vector<16x16x48xbf16> to vector<256x48xbf16>
    %c3 = arith.constant 3 : index
    %c0_16 = arith.constant 0 : index
    %c0_17 = arith.constant 0 : index
    %43 = vector.load %arg2[%c3, %c0_16, %c0_17] : memref<4x48x16xbf16, #tpu.memory_space<vmem>>, vector<1x48x16xbf16>
    %44 = vector.shape_cast %43 : vector<1x48x16xbf16> to vector<48x16xbf16>
    %cst_18 = arith.constant dense<0.000000e+00> : vector<256x16xf32>
    %45 = tpu.matmul %42, %44, %cst_18 {dimension_numbers = #tpu.dot_dimension_numbers<[1], [0], [0], [1], [0, 0, 1, 1], [], []>} : vector<256x48xbf16>, vector<48x16xbf16>, vector<256x16xf32> -> vector<256x16xf32>
    %46 = arith.addf %36, %45 : vector<256x16xf32>
    %c0_19 = arith.constant 0 : index
    %c0_20 = arith.constant 0 : index
    %47 = vector.load %arg3[%c0_19, %c0_20] : memref<1x16xf32, #tpu.memory_space<vmem>>, vector<1x16xf32>
    %48 = vector.broadcast %47 : vector<1x16xf32> to vector<256x16xf32>
    %49 = arith.addf %46, %48 : vector<256x16xf32>
    %cst_21 = arith.constant 0.000000e+00 : f32
    %50 = vector.broadcast %cst_21 : f32 to vector<256x16xf32>
    %51 = arith.maximumf %49, %50 : vector<256x16xf32>
    %52 = vector.shape_cast %51 : vector<256x16xf32> to vector<16x16x16xf32>
    %cst_22 = arith.constant 0.000000e+00 : f32
    %53 = vector.broadcast %cst_22 : f32 to vector<16x1x16xf32>
    %cst_23 = arith.constant 0.000000e+00 : f32
    %54 = vector.broadcast %cst_23 : f32 to vector<16x1x16xf32>
    %55 = tpu.concatenate %53, %52, %54 in 1 : vector<16x1x16xf32>, vector<16x16x16xf32>, vector<16x1x16xf32> -> vector<16x18x16xf32>
    %cst_24 = arith.constant 0.000000e+00 : f32
    %56 = vector.broadcast %cst_24 : f32 to vector<1x18x16xf32>
    %cst_25 = arith.constant 0.000000e+00 : f32
    %57 = vector.broadcast %cst_25 : f32 to vector<1x18x16xf32>
    %58 = tpu.concatenate %56, %55, %57 in 0 : vector<1x18x16xf32>, vector<16x18x16xf32>, vector<1x18x16xf32> -> vector<18x18x16xf32>
    %59 = vector.extract_strided_slice %58 {offsets = [0, 0, 0], sizes = [18, 16, 16], strides = [1, 1, 1]} : vector<18x18x16xf32> to vector<18x16x16xf32>
    %60 = vector.extract_strided_slice %58 {offsets = [0, 1, 0], sizes = [18, 16, 16], strides = [1, 1, 1]} : vector<18x18x16xf32> to vector<18x16x16xf32>
    %61 = arith.maximumf %59, %60 : vector<18x16x16xf32>
    %62 = vector.extract_strided_slice %58 {offsets = [0, 2, 0], sizes = [18, 16, 16], strides = [1, 1, 1]} : vector<18x18x16xf32> to vector<18x16x16xf32>
    %63 = arith.maximumf %61, %62 : vector<18x16x16xf32>
    %64 = vector.extract_strided_slice %63 {offsets = [0, 0, 0], sizes = [16, 16, 16], strides = [1, 1, 1]} : vector<18x16x16xf32> to vector<16x16x16xf32>
    %65 = vector.extract_strided_slice %63 {offsets = [1, 0, 0], sizes = [16, 16, 16], strides = [1, 1, 1]} : vector<18x16x16xf32> to vector<16x16x16xf32>
    %66 = arith.maximumf %64, %65 : vector<16x16x16xf32>
    %67 = vector.extract_strided_slice %63 {offsets = [2, 0, 0], sizes = [16, 16, 16], strides = [1, 1, 1]} : vector<18x16x16xf32> to vector<16x16x16xf32>
    %68 = arith.maximumf %66, %67 : vector<16x16x16xf32>
    %69 = vector.extract_strided_slice %68 {offsets = [0, 0, 0], sizes = [1, 16, 16], strides = [1, 1, 1]} : vector<16x16x16xf32> to vector<1x16x16xf32>
    %70 = vector.extract_strided_slice %68 {offsets = [2, 0, 0], sizes = [1, 16, 16], strides = [1, 1, 1]} : vector<16x16x16xf32> to vector<1x16x16xf32>
    %71 = vector.extract_strided_slice %68 {offsets = [4, 0, 0], sizes = [1, 16, 16], strides = [1, 1, 1]} : vector<16x16x16xf32> to vector<1x16x16xf32>
    %72 = vector.extract_strided_slice %68 {offsets = [6, 0, 0], sizes = [1, 16, 16], strides = [1, 1, 1]} : vector<16x16x16xf32> to vector<1x16x16xf32>
    %73 = vector.extract_strided_slice %68 {offsets = [8, 0, 0], sizes = [1, 16, 16], strides = [1, 1, 1]} : vector<16x16x16xf32> to vector<1x16x16xf32>
    %74 = vector.extract_strided_slice %68 {offsets = [10, 0, 0], sizes = [1, 16, 16], strides = [1, 1, 1]} : vector<16x16x16xf32> to vector<1x16x16xf32>
    %75 = vector.extract_strided_slice %68 {offsets = [12, 0, 0], sizes = [1, 16, 16], strides = [1, 1, 1]} : vector<16x16x16xf32> to vector<1x16x16xf32>
    %76 = vector.extract_strided_slice %68 {offsets = [14, 0, 0], sizes = [1, 16, 16], strides = [1, 1, 1]} : vector<16x16x16xf32> to vector<1x16x16xf32>
    %77 = tpu.concatenate %69, %70, %71, %72, %73, %74, %75, %76 in 0 : vector<1x16x16xf32>, vector<1x16x16xf32>, vector<1x16x16xf32>, vector<1x16x16xf32>, vector<1x16x16xf32>, vector<1x16x16xf32>, vector<1x16x16xf32>, vector<1x16x16xf32> -> vector<8x16x16xf32>
    %78 = vector.extract_strided_slice %77 {offsets = [0, 0, 0], sizes = [8, 1, 16], strides = [1, 1, 1]} : vector<8x16x16xf32> to vector<8x1x16xf32>
    %79 = vector.extract_strided_slice %77 {offsets = [0, 2, 0], sizes = [8, 1, 16], strides = [1, 1, 1]} : vector<8x16x16xf32> to vector<8x1x16xf32>
    %80 = vector.extract_strided_slice %77 {offsets = [0, 4, 0], sizes = [8, 1, 16], strides = [1, 1, 1]} : vector<8x16x16xf32> to vector<8x1x16xf32>
    %81 = vector.extract_strided_slice %77 {offsets = [0, 6, 0], sizes = [8, 1, 16], strides = [1, 1, 1]} : vector<8x16x16xf32> to vector<8x1x16xf32>
    %82 = vector.extract_strided_slice %77 {offsets = [0, 8, 0], sizes = [8, 1, 16], strides = [1, 1, 1]} : vector<8x16x16xf32> to vector<8x1x16xf32>
    %83 = vector.extract_strided_slice %77 {offsets = [0, 10, 0], sizes = [8, 1, 16], strides = [1, 1, 1]} : vector<8x16x16xf32> to vector<8x1x16xf32>
    %84 = vector.extract_strided_slice %77 {offsets = [0, 12, 0], sizes = [8, 1, 16], strides = [1, 1, 1]} : vector<8x16x16xf32> to vector<8x1x16xf32>
    %85 = vector.extract_strided_slice %77 {offsets = [0, 14, 0], sizes = [8, 1, 16], strides = [1, 1, 1]} : vector<8x16x16xf32> to vector<8x1x16xf32>
    %86 = tpu.concatenate %78, %79, %80, %81, %82, %83, %84, %85 in 1 : vector<8x1x16xf32>, vector<8x1x16xf32>, vector<8x1x16xf32>, vector<8x1x16xf32>, vector<8x1x16xf32>, vector<8x1x16xf32>, vector<8x1x16xf32>, vector<8x1x16xf32> -> vector<8x8x16xf32>
    %87 = vector.shape_cast %86 : vector<8x8x16xf32> to vector<64x16xf32>
    %88 = arith.truncf %87 : vector<64x16xf32> to vector<64x16xbf16>
    %c0_26 = arith.constant 0 : index
    %c0_27 = arith.constant 0 : index
    %c0_28 = arith.constant 0 : index
    %89 = vector.load %arg4[%c0_26, %c0_27, %c0_28] : memref<1x64x16xbf16, #tpu.memory_space<vmem>>, vector<1x64x16xbf16>
    %90 = vector.shape_cast %89 : vector<1x64x16xbf16> to vector<64x16xbf16>
    %91 = vector.shape_cast %88 : vector<64x16xbf16> to vector<1x64x16xbf16>
    tpu.vector_store %arg4[%c0_26, %c0_27, %c0_28], %91 {strides = array<i32>} : memref<1x64x16xbf16, #tpu.memory_space<vmem>>, vector<1x64x16xbf16>,
    return
  }
  func.func @transform_0(%arg0: i32) -> (i32, i32, i32, i32) {
    %c0_i32 = arith.constant 0 : i32
    %c0_i32_0 = arith.constant 0 : i32
    %c0_i32_1 = arith.constant 0 : i32
    %c0_i32_2 = arith.constant 0 : i32
    return %arg0, %c0_i32, %c0_i32_0, %c0_i32_1 : i32, i32, i32, i32
  }
  func.func @transform_1(%arg0: i32) -> (i32, i32, i32) {
    %c0_i32 = arith.constant 0 : i32
    %c0_i32_0 = arith.constant 0 : i32
    %c0_i32_1 = arith.constant 0 : i32
    %c0_i32_2 = arith.constant 0 : i32
    return %c0_i32, %c0_i32_0, %c0_i32_1 : i32, i32, i32
  }
  func.func @transform_2(%arg0: i32) -> (i32, i32) {
    %c0_i32 = arith.constant 0 : i32
    %c0_i32_0 = arith.constant 0 : i32
    %c0_i32_1 = arith.constant 0 : i32
    return %c0_i32, %c0_i32_0 : i32, i32
  }
  func.func @transform_3(%arg0: i32) -> (i32, i32, i32) {
    %c0_i32 = arith.constant 0 : i32
    %c0_i32_0 = arith.constant 0 : i32
    %c0_i32_1 = arith.constant 0 : i32
    return %arg0, %c0_i32, %c0_i32_0 : i32, i32, i32
  }
}

module attributes {stable_mosaic.version = 11 : i64} {
  func.func @_bottleneck_kernel(%arg0: i32, %arg1: memref<1x64x16xbf16, #tpu.memory_space<vmem>>, %arg2: memref<16x32xbf16, #tpu.memory_space<vmem>>, %arg3: memref<1x32xf32, #tpu.memory_space<vmem>>, %arg4: memref<16x8xbf16, #tpu.memory_space<vmem>>, %arg5: memref<1x8xf32, #tpu.memory_space<vmem>>, %arg6: memref<3x24x8xbf16, #tpu.memory_space<vmem>>, %arg7: memref<1x8xf32, #tpu.memory_space<vmem>>, %arg8: memref<8x32xbf16, #tpu.memory_space<vmem>>, %arg9: memref<1x32xf32, #tpu.memory_space<vmem>>, %arg10: memref<1x64x32xbf16, #tpu.memory_space<vmem>>) attributes {dimension_semantics = [#tpu.dimension_semantics<parallel>], iteration_bounds = array<i64: 2>, scalar_prefetch = 0 : i64, scratch_operands = 0 : i64, tpu.core_type = #tpu.core_type<tc>, window_params = [{transform_indices = @transform_0, window_bounds = array<i64: 1, 64, 16>}, {pipeline_mode = #tpu.pipeline_mode<synchronous>, transform_indices = @transform_1, window_bounds = array<i64: 16, 32>}, {pipeline_mode = #tpu.pipeline_mode<synchronous>, transform_indices = @transform_2, window_bounds = array<i64: 1, 32>}, {pipeline_mode = #tpu.pipeline_mode<synchronous>, transform_indices = @transform_3, window_bounds = array<i64: 16, 8>}, {pipeline_mode = #tpu.pipeline_mode<synchronous>, transform_indices = @transform_4, window_bounds = array<i64: 1, 8>}, {pipeline_mode = #tpu.pipeline_mode<synchronous>, transform_indices = @transform_5, window_bounds = array<i64: 3, 24, 8>}, {pipeline_mode = #tpu.pipeline_mode<synchronous>, transform_indices = @transform_6, window_bounds = array<i64: 1, 8>}, {pipeline_mode = #tpu.pipeline_mode<synchronous>, transform_indices = @transform_7, window_bounds = array<i64: 8, 32>}, {pipeline_mode = #tpu.pipeline_mode<synchronous>, transform_indices = @transform_8, window_bounds = array<i64: 1, 32>}, {transform_indices = @transform_9, window_bounds = array<i64: 1, 64, 32>}]} {
    %c0 = arith.constant 0 : index
    %c0_0 = arith.constant 0 : index
    %c0_1 = arith.constant 0 : index
    %0 = vector.load %arg1[%c0, %c0_0, %c0_1] : memref<1x64x16xbf16, #tpu.memory_space<vmem>>, vector<1x64x16xbf16>
    %1 = vector.shape_cast %0 : vector<1x64x16xbf16> to vector<64x16xbf16>
    %c0_2 = arith.constant 0 : index
    %c0_3 = arith.constant 0 : index
    %2 = vector.load %arg2[%c0_2, %c0_3] : memref<16x32xbf16, #tpu.memory_space<vmem>>, vector<16x32xbf16>
    %cst = arith.constant dense<0.000000e+00> : vector<64x32xf32>
    %3 = tpu.matmul %1, %2, %cst {dimension_numbers = #tpu.dot_dimension_numbers<[1], [0], [0], [1], [0, 0, 1, 1], [], []>} : vector<64x16xbf16>, vector<16x32xbf16>, vector<64x32xf32> -> vector<64x32xf32>
    %c0_4 = arith.constant 0 : index
    %c0_5 = arith.constant 0 : index
    %4 = vector.load %arg3[%c0_4, %c0_5] : memref<1x32xf32, #tpu.memory_space<vmem>>, vector<1x32xf32>
    %5 = vector.broadcast %4 : vector<1x32xf32> to vector<64x32xf32>
    %6 = arith.addf %3, %5 : vector<64x32xf32>
    %c0_6 = arith.constant 0 : index
    %c0_7 = arith.constant 0 : index
    %7 = vector.load %arg4[%c0_6, %c0_7] : memref<16x8xbf16, #tpu.memory_space<vmem>>, vector<16x8xbf16>
    %cst_8 = arith.constant dense<0.000000e+00> : vector<64x8xf32>
    %8 = tpu.matmul %1, %7, %cst_8 {dimension_numbers = #tpu.dot_dimension_numbers<[1], [0], [0], [1], [0, 0, 1, 1], [], []>} : vector<64x16xbf16>, vector<16x8xbf16>, vector<64x8xf32> -> vector<64x8xf32>
    %c0_9 = arith.constant 0 : index
    %c0_10 = arith.constant 0 : index
    %9 = vector.load %arg5[%c0_9, %c0_10] : memref<1x8xf32, #tpu.memory_space<vmem>>, vector<1x8xf32>
    %10 = vector.broadcast %9 : vector<1x8xf32> to vector<64x8xf32>
    %11 = arith.addf %8, %10 : vector<64x8xf32>
    %cst_11 = arith.constant 0.000000e+00 : f32
    %12 = vector.broadcast %cst_11 : f32 to vector<64x8xf32>
    %13 = arith.maximumf %11, %12 : vector<64x8xf32>
    %14 = arith.truncf %13 : vector<64x8xf32> to vector<64x8xbf16>
    %15 = vector.shape_cast %14 : vector<64x8xbf16> to vector<8x8x8xbf16>
    %cst_12 = arith.constant 0.000000e+00 : bf16
    %16 = vector.broadcast %cst_12 : bf16 to vector<8x1x8xbf16>
    %cst_13 = arith.constant 0.000000e+00 : bf16
    %17 = vector.broadcast %cst_13 : bf16 to vector<8x1x8xbf16>
    %18 = tpu.concatenate %16, %15, %17 in 1 : vector<8x1x8xbf16>, vector<8x8x8xbf16>, vector<8x1x8xbf16> -> vector<8x10x8xbf16>
    %cst_14 = arith.constant 0.000000e+00 : bf16
    %19 = vector.broadcast %cst_14 : bf16 to vector<1x10x8xbf16>
    %cst_15 = arith.constant 0.000000e+00 : bf16
    %20 = vector.broadcast %cst_15 : bf16 to vector<1x10x8xbf16>
    %21 = tpu.concatenate %19, %18, %20 in 0 : vector<1x10x8xbf16>, vector<8x10x8xbf16>, vector<1x10x8xbf16> -> vector<10x10x8xbf16>
    %22 = vector.extract_strided_slice %21 {offsets = [0, 0, 0], sizes = [8, 8, 8], strides = [1, 1, 1]} : vector<10x10x8xbf16> to vector<8x8x8xbf16>
    %23 = vector.extract_strided_slice %21 {offsets = [0, 1, 0], sizes = [8, 8, 8], strides = [1, 1, 1]} : vector<10x10x8xbf16> to vector<8x8x8xbf16>
    %24 = vector.extract_strided_slice %21 {offsets = [0, 2, 0], sizes = [8, 8, 8], strides = [1, 1, 1]} : vector<10x10x8xbf16> to vector<8x8x8xbf16>
    %25 = tpu.concatenate %22, %23, %24 in 2 : vector<8x8x8xbf16>, vector<8x8x8xbf16>, vector<8x8x8xbf16> -> vector<8x8x24xbf16>
    %26 = vector.shape_cast %25 : vector<8x8x24xbf16> to vector<64x24xbf16>
    %c0_16 = arith.constant 0 : index
    %c0_17 = arith.constant 0 : index
    %c0_18 = arith.constant 0 : index
    %27 = vector.load %arg6[%c0_16, %c0_17, %c0_18] : memref<3x24x8xbf16, #tpu.memory_space<vmem>>, vector<1x24x8xbf16>
    %28 = vector.shape_cast %27 : vector<1x24x8xbf16> to vector<24x8xbf16>
    %cst_19 = arith.constant dense<0.000000e+00> : vector<64x8xf32>
    %29 = tpu.matmul %26, %28, %cst_19 {dimension_numbers = #tpu.dot_dimension_numbers<[1], [0], [0], [1], [0, 0, 1, 1], [], []>} : vector<64x24xbf16>, vector<24x8xbf16>, vector<64x8xf32> -> vector<64x8xf32>
    %30 = vector.extract_strided_slice %21 {offsets = [1, 0, 0], sizes = [8, 8, 8], strides = [1, 1, 1]} : vector<10x10x8xbf16> to vector<8x8x8xbf16>
    %31 = vector.extract_strided_slice %21 {offsets = [1, 1, 0], sizes = [8, 8, 8], strides = [1, 1, 1]} : vector<10x10x8xbf16> to vector<8x8x8xbf16>
    %32 = vector.extract_strided_slice %21 {offsets = [1, 2, 0], sizes = [8, 8, 8], strides = [1, 1, 1]} : vector<10x10x8xbf16> to vector<8x8x8xbf16>
    %33 = tpu.concatenate %30, %31, %32 in 2 : vector<8x8x8xbf16>, vector<8x8x8xbf16>, vector<8x8x8xbf16> -> vector<8x8x24xbf16>
    %34 = vector.shape_cast %33 : vector<8x8x24xbf16> to vector<64x24xbf16>
    %c1 = arith.constant 1 : index
    %c0_20 = arith.constant 0 : index
    %c0_21 = arith.constant 0 : index
    %35 = vector.load %arg6[%c1, %c0_20, %c0_21] : memref<3x24x8xbf16, #tpu.memory_space<vmem>>, vector<1x24x8xbf16>
    %36 = vector.shape_cast %35 : vector<1x24x8xbf16> to vector<24x8xbf16>
    %cst_22 = arith.constant dense<0.000000e+00> : vector<64x8xf32>
    %37 = tpu.matmul %34, %36, %cst_22 {dimension_numbers = #tpu.dot_dimension_numbers<[1], [0], [0], [1], [0, 0, 1, 1], [], []>} : vector<64x24xbf16>, vector<24x8xbf16>, vector<64x8xf32> -> vector<64x8xf32>
    %38 = arith.addf %29, %37 : vector<64x8xf32>
    %39 = vector.extract_strided_slice %21 {offsets = [2, 0, 0], sizes = [8, 8, 8], strides = [1, 1, 1]} : vector<10x10x8xbf16> to vector<8x8x8xbf16>
    %40 = vector.extract_strided_slice %21 {offsets = [2, 1, 0], sizes = [8, 8, 8], strides = [1, 1, 1]} : vector<10x10x8xbf16> to vector<8x8x8xbf16>
    %41 = vector.extract_strided_slice %21 {offsets = [2, 2, 0], sizes = [8, 8, 8], strides = [1, 1, 1]} : vector<10x10x8xbf16> to vector<8x8x8xbf16>
    %42 = tpu.concatenate %39, %40, %41 in 2 : vector<8x8x8xbf16>, vector<8x8x8xbf16>, vector<8x8x8xbf16> -> vector<8x8x24xbf16>
    %43 = vector.shape_cast %42 : vector<8x8x24xbf16> to vector<64x24xbf16>
    %c2 = arith.constant 2 : index
    %c0_23 = arith.constant 0 : index
    %c0_24 = arith.constant 0 : index
    %44 = vector.load %arg6[%c2, %c0_23, %c0_24] : memref<3x24x8xbf16, #tpu.memory_space<vmem>>, vector<1x24x8xbf16>
    %45 = vector.shape_cast %44 : vector<1x24x8xbf16> to vector<24x8xbf16>
    %cst_25 = arith.constant dense<0.000000e+00> : vector<64x8xf32>
    %46 = tpu.matmul %43, %45, %cst_25 {dimension_numbers = #tpu.dot_dimension_numbers<[1], [0], [0], [1], [0, 0, 1, 1], [], []>} : vector<64x24xbf16>, vector<24x8xbf16>, vector<64x8xf32> -> vector<64x8xf32>
    %47 = arith.addf %38, %46 : vector<64x8xf32>
    %c0_26 = arith.constant 0 : index
    %c0_27 = arith.constant 0 : index
    %48 = vector.load %arg7[%c0_26, %c0_27] : memref<1x8xf32, #tpu.memory_space<vmem>>, vector<1x8xf32>
    %49 = vector.broadcast %48 : vector<1x8xf32> to vector<64x8xf32>
    %50 = arith.addf %47, %49 : vector<64x8xf32>
    %cst_28 = arith.constant 0.000000e+00 : f32
    %51 = vector.broadcast %cst_28 : f32 to vector<64x8xf32>
    %52 = arith.maximumf %50, %51 : vector<64x8xf32>
    %53 = arith.truncf %52 : vector<64x8xf32> to vector<64x8xbf16>
    %c0_29 = arith.constant 0 : index
    %c0_30 = arith.constant 0 : index
    %54 = vector.load %arg8[%c0_29, %c0_30] : memref<8x32xbf16, #tpu.memory_space<vmem>>, vector<8x32xbf16>
    %cst_31 = arith.constant dense<0.000000e+00> : vector<64x32xf32>
    %55 = tpu.matmul %53, %54, %cst_31 {dimension_numbers = #tpu.dot_dimension_numbers<[1], [0], [0], [1], [0, 0, 1, 1], [], []>} : vector<64x8xbf16>, vector<8x32xbf16>, vector<64x32xf32> -> vector<64x32xf32>
    %c0_32 = arith.constant 0 : index
    %c0_33 = arith.constant 0 : index
    %56 = vector.load %arg9[%c0_32, %c0_33] : memref<1x32xf32, #tpu.memory_space<vmem>>, vector<1x32xf32>
    %57 = vector.broadcast %56 : vector<1x32xf32> to vector<64x32xf32>
    %58 = arith.addf %55, %57 : vector<64x32xf32>
    %59 = arith.addf %58, %6 : vector<64x32xf32>
    %cst_34 = arith.constant 0.000000e+00 : f32
    %60 = vector.broadcast %cst_34 : f32 to vector<64x32xf32>
    %61 = arith.maximumf %59, %60 : vector<64x32xf32>
    %62 = arith.truncf %61 : vector<64x32xf32> to vector<64x32xbf16>
    %c0_35 = arith.constant 0 : index
    %c0_36 = arith.constant 0 : index
    %c0_37 = arith.constant 0 : index
    %63 = vector.load %arg10[%c0_35, %c0_36, %c0_37] : memref<1x64x32xbf16, #tpu.memory_space<vmem>>, vector<1x64x32xbf16>
    %64 = vector.shape_cast %63 : vector<1x64x32xbf16> to vector<64x32xbf16>
    %65 = vector.shape_cast %62 : vector<64x32xbf16> to vector<1x64x32xbf16>
    tpu.vector_store %arg10[%c0_35, %c0_36, %c0_37], %65 {strides = array<i32>} : memref<1x64x32xbf16, #tpu.memory_space<vmem>>, vector<1x64x32xbf16>,
    return
  }
  func.func @transform_0(%arg0: i32) -> (i32, i32, i32) {
    %c0_i32 = arith.constant 0 : i32
    %c0_i32_0 = arith.constant 0 : i32
    %c0_i32_1 = arith.constant 0 : i32
    return %arg0, %c0_i32, %c0_i32_0 : i32, i32, i32
  }
  func.func @transform_1(%arg0: i32) -> (i32, i32) {
    %c0_i32 = arith.constant 0 : i32
    %c0_i32_0 = arith.constant 0 : i32
    %c0_i32_1 = arith.constant 0 : i32
    return %c0_i32, %c0_i32_0 : i32, i32
  }
  func.func @transform_2(%arg0: i32) -> (i32, i32) {
    %c0_i32 = arith.constant 0 : i32
    %c0_i32_0 = arith.constant 0 : i32
    %c0_i32_1 = arith.constant 0 : i32
    return %c0_i32, %c0_i32_0 : i32, i32
  }
  func.func @transform_3(%arg0: i32) -> (i32, i32) {
    %c0_i32 = arith.constant 0 : i32
    %c0_i32_0 = arith.constant 0 : i32
    %c0_i32_1 = arith.constant 0 : i32
    return %c0_i32, %c0_i32_0 : i32, i32
  }
  func.func @transform_4(%arg0: i32) -> (i32, i32) {
    %c0_i32 = arith.constant 0 : i32
    %c0_i32_0 = arith.constant 0 : i32
    %c0_i32_1 = arith.constant 0 : i32
    return %c0_i32, %c0_i32_0 : i32, i32
  }
  func.func @transform_5(%arg0: i32) -> (i32, i32, i32) {
    %c0_i32 = arith.constant 0 : i32
    %c0_i32_0 = arith.constant 0 : i32
    %c0_i32_1 = arith.constant 0 : i32
    %c0_i32_2 = arith.constant 0 : i32
    return %c0_i32, %c0_i32_0, %c0_i32_1 : i32, i32, i32
  }
  func.func @transform_6(%arg0: i32) -> (i32, i32) {
    %c0_i32 = arith.constant 0 : i32
    %c0_i32_0 = arith.constant 0 : i32
    %c0_i32_1 = arith.constant 0 : i32
    return %c0_i32, %c0_i32_0 : i32, i32
  }
  func.func @transform_7(%arg0: i32) -> (i32, i32) {
    %c0_i32 = arith.constant 0 : i32
    %c0_i32_0 = arith.constant 0 : i32
    %c0_i32_1 = arith.constant 0 : i32
    return %c0_i32, %c0_i32_0 : i32, i32
  }
  func.func @transform_8(%arg0: i32) -> (i32, i32) {
    %c0_i32 = arith.constant 0 : i32
    %c0_i32_0 = arith.constant 0 : i32
    %c0_i32_1 = arith.constant 0 : i32
    return %c0_i32, %c0_i32_0 : i32, i32
  }
  func.func @transform_9(%arg0: i32) -> (i32, i32, i32) {
    %c0_i32 = arith.constant 0 : i32
    %c0_i32_0 = arith.constant 0 : i32
    %c0_i32_1 = arith.constant 0 : i32
    return %arg0, %c0_i32, %c0_i32_0 : i32, i32, i32
  }
}

module attributes {stable_mosaic.version = 11 : i64} {
  func.func @_bottleneck_kernel(%arg0: i32, %arg1: memref<1x64x32xbf16, #tpu.memory_space<vmem>>, %arg2: memref<32x64xbf16, #tpu.memory_space<vmem>>, %arg3: memref<1x64xf32, #tpu.memory_space<vmem>>, %arg4: memref<32x32xbf16, #tpu.memory_space<vmem>>, %arg5: memref<1x32xf32, #tpu.memory_space<vmem>>, %arg6: memref<9x288x32xbf16, #tpu.memory_space<vmem>>, %arg7: memref<1x32xf32, #tpu.memory_space<vmem>>, %arg8: memref<32x64xbf16, #tpu.memory_space<vmem>>, %arg9: memref<1x64xf32, #tpu.memory_space<vmem>>, %arg10: memref<1x64x64xf32, #tpu.memory_space<vmem>>) attributes {dimension_semantics = [#tpu.dimension_semantics<parallel>], iteration_bounds = array<i64: 2>, scalar_prefetch = 0 : i64, scratch_operands = 0 : i64, tpu.core_type = #tpu.core_type<tc>, window_params = [{transform_indices = @transform_0, window_bounds = array<i64: 1, 64, 32>}, {pipeline_mode = #tpu.pipeline_mode<synchronous>, transform_indices = @transform_1, window_bounds = array<i64: 32, 64>}, {pipeline_mode = #tpu.pipeline_mode<synchronous>, transform_indices = @transform_2, window_bounds = array<i64: 1, 64>}, {pipeline_mode = #tpu.pipeline_mode<synchronous>, transform_indices = @transform_3, window_bounds = array<i64: 32, 32>}, {pipeline_mode = #tpu.pipeline_mode<synchronous>, transform_indices = @transform_4, window_bounds = array<i64: 1, 32>}, {pipeline_mode = #tpu.pipeline_mode<synchronous>, transform_indices = @transform_5, window_bounds = array<i64: 9, 288, 32>}, {pipeline_mode = #tpu.pipeline_mode<synchronous>, transform_indices = @transform_6, window_bounds = array<i64: 1, 32>}, {pipeline_mode = #tpu.pipeline_mode<synchronous>, transform_indices = @transform_7, window_bounds = array<i64: 32, 64>}, {pipeline_mode = #tpu.pipeline_mode<synchronous>, transform_indices = @transform_8, window_bounds = array<i64: 1, 64>}, {transform_indices = @transform_9, window_bounds = array<i64: 1, 64, 64>}]} {
    %c0 = arith.constant 0 : index
    %c0_0 = arith.constant 0 : index
    %c0_1 = arith.constant 0 : index
    %0 = vector.load %arg1[%c0, %c0_0, %c0_1] : memref<1x64x32xbf16, #tpu.memory_space<vmem>>, vector<1x64x32xbf16>
    %1 = vector.shape_cast %0 : vector<1x64x32xbf16> to vector<64x32xbf16>
    %c0_2 = arith.constant 0 : index
    %c0_3 = arith.constant 0 : index
    %2 = vector.load %arg2[%c0_2, %c0_3] : memref<32x64xbf16, #tpu.memory_space<vmem>>, vector<32x64xbf16>
    %cst = arith.constant dense<0.000000e+00> : vector<64x64xf32>
    %3 = tpu.matmul %1, %2, %cst {dimension_numbers = #tpu.dot_dimension_numbers<[1], [0], [0], [1], [0, 0, 1, 1], [], []>} : vector<64x32xbf16>, vector<32x64xbf16>, vector<64x64xf32> -> vector<64x64xf32>
    %c0_4 = arith.constant 0 : index
    %c0_5 = arith.constant 0 : index
    %4 = vector.load %arg3[%c0_4, %c0_5] : memref<1x64xf32, #tpu.memory_space<vmem>>, vector<1x64xf32>
    %5 = vector.broadcast %4 : vector<1x64xf32> to vector<64x64xf32>
    %6 = arith.addf %3, %5 : vector<64x64xf32>
    %c0_6 = arith.constant 0 : index
    %c0_7 = arith.constant 0 : index
    %7 = vector.load %arg4[%c0_6, %c0_7] : memref<32x32xbf16, #tpu.memory_space<vmem>>, vector<32x32xbf16>
    %cst_8 = arith.constant dense<0.000000e+00> : vector<64x32xf32>
    %8 = tpu.matmul %1, %7, %cst_8 {dimension_numbers = #tpu.dot_dimension_numbers<[1], [0], [0], [1], [0, 0, 1, 1], [], []>} : vector<64x32xbf16>, vector<32x32xbf16>, vector<64x32xf32> -> vector<64x32xf32>
    %c0_9 = arith.constant 0 : index
    %c0_10 = arith.constant 0 : index
    %9 = vector.load %arg5[%c0_9, %c0_10] : memref<1x32xf32, #tpu.memory_space<vmem>>, vector<1x32xf32>
    %10 = vector.broadcast %9 : vector<1x32xf32> to vector<64x32xf32>
    %11 = arith.addf %8, %10 : vector<64x32xf32>
    %cst_11 = arith.constant 0.000000e+00 : f32
    %12 = vector.broadcast %cst_11 : f32 to vector<64x32xf32>
    %13 = arith.maximumf %11, %12 : vector<64x32xf32>
    %14 = arith.truncf %13 : vector<64x32xf32> to vector<64x32xbf16>
    %15 = vector.shape_cast %14 : vector<64x32xbf16> to vector<8x8x32xbf16>
    %cst_12 = arith.constant 0.000000e+00 : bf16
    %16 = vector.broadcast %cst_12 : bf16 to vector<8x4x32xbf16>
    %cst_13 = arith.constant 0.000000e+00 : bf16
    %17 = vector.broadcast %cst_13 : bf16 to vector<8x4x32xbf16>
    %18 = tpu.concatenate %16, %15, %17 in 1 : vector<8x4x32xbf16>, vector<8x8x32xbf16>, vector<8x4x32xbf16> -> vector<8x16x32xbf16>
    %cst_14 = arith.constant 0.000000e+00 : bf16
    %19 = vector.broadcast %cst_14 : bf16 to vector<4x16x32xbf16>
    %cst_15 = arith.constant 0.000000e+00 : bf16
    %20 = vector.broadcast %cst_15 : bf16 to vector<4x16x32xbf16>
    %21 = tpu.concatenate %19, %18, %20 in 0 : vector<4x16x32xbf16>, vector<8x16x32xbf16>, vector<4x16x32xbf16> -> vector<16x16x32xbf16>
    %22 = vector.extract_strided_slice %21 {offsets = [0, 0, 0], sizes = [8, 8, 32], strides = [1, 1, 1]} : vector<16x16x32xbf16> to vector<8x8x32xbf16>
    %23 = vector.extract_strided_slice %21 {offsets = [0, 1, 0], sizes = [8, 8, 32], strides = [1, 1, 1]} : vector<16x16x32xbf16> to vector<8x8x32xbf16>
    %24 = vector.extract_strided_slice %21 {offsets = [0, 2, 0], sizes = [8, 8, 32], strides = [1, 1, 1]} : vector<16x16x32xbf16> to vector<8x8x32xbf16>
    %25 = vector.extract_strided_slice %21 {offsets = [0, 3, 0], sizes = [8, 8, 32], strides = [1, 1, 1]} : vector<16x16x32xbf16> to vector<8x8x32xbf16>
    %26 = vector.extract_strided_slice %21 {offsets = [0, 4, 0], sizes = [8, 8, 32], strides = [1, 1, 1]} : vector<16x16x32xbf16> to vector<8x8x32xbf16>
    %27 = vector.extract_strided_slice %21 {offsets = [0, 5, 0], sizes = [8, 8, 32], strides = [1, 1, 1]} : vector<16x16x32xbf16> to vector<8x8x32xbf16>
    %28 = vector.extract_strided_slice %21 {offsets = [0, 6, 0], sizes = [8, 8, 32], strides = [1, 1, 1]} : vector<16x16x32xbf16> to vector<8x8x32xbf16>
    %29 = vector.extract_strided_slice %21 {offsets = [0, 7, 0], sizes = [8, 8, 32], strides = [1, 1, 1]} : vector<16x16x32xbf16> to vector<8x8x32xbf16>
    %30 = vector.extract_strided_slice %21 {offsets = [0, 8, 0], sizes = [8, 8, 32], strides = [1, 1, 1]} : vector<16x16x32xbf16> to vector<8x8x32xbf16>
    %31 = tpu.concatenate %22, %23, %24, %25, %26, %27, %28, %29, %30 in 2 : vector<8x8x32xbf16>, vector<8x8x32xbf16>, vector<8x8x32xbf16>, vector<8x8x32xbf16>, vector<8x8x32xbf16>, vector<8x8x32xbf16>, vector<8x8x32xbf16>, vector<8x8x32xbf16>, vector<8x8x32xbf16> -> vector<8x8x288xbf16>
    %32 = vector.shape_cast %31 : vector<8x8x288xbf16> to vector<64x288xbf16>
    %c0_16 = arith.constant 0 : index
    %c0_17 = arith.constant 0 : index
    %c0_18 = arith.constant 0 : index
    %33 = vector.load %arg6[%c0_16, %c0_17, %c0_18] : memref<9x288x32xbf16, #tpu.memory_space<vmem>>, vector<1x288x32xbf16>
    %34 = vector.shape_cast %33 : vector<1x288x32xbf16> to vector<288x32xbf16>
    %cst_19 = arith.constant dense<0.000000e+00> : vector<64x32xf32>
    %35 = tpu.matmul %32, %34, %cst_19 {dimension_numbers = #tpu.dot_dimension_numbers<[1], [0], [0], [1], [0, 0, 1, 1], [], []>} : vector<64x288xbf16>, vector<288x32xbf16>, vector<64x32xf32> -> vector<64x32xf32>
    %36 = vector.extract_strided_slice %21 {offsets = [1, 0, 0], sizes = [8, 8, 32], strides = [1, 1, 1]} : vector<16x16x32xbf16> to vector<8x8x32xbf16>
    %37 = vector.extract_strided_slice %21 {offsets = [1, 1, 0], sizes = [8, 8, 32], strides = [1, 1, 1]} : vector<16x16x32xbf16> to vector<8x8x32xbf16>
    %38 = vector.extract_strided_slice %21 {offsets = [1, 2, 0], sizes = [8, 8, 32], strides = [1, 1, 1]} : vector<16x16x32xbf16> to vector<8x8x32xbf16>
    %39 = vector.extract_strided_slice %21 {offsets = [1, 3, 0], sizes = [8, 8, 32], strides = [1, 1, 1]} : vector<16x16x32xbf16> to vector<8x8x32xbf16>
    %40 = vector.extract_strided_slice %21 {offsets = [1, 4, 0], sizes = [8, 8, 32], strides = [1, 1, 1]} : vector<16x16x32xbf16> to vector<8x8x32xbf16>
    %41 = vector.extract_strided_slice %21 {offsets = [1, 5, 0], sizes = [8, 8, 32], strides = [1, 1, 1]} : vector<16x16x32xbf16> to vector<8x8x32xbf16>
    %42 = vector.extract_strided_slice %21 {offsets = [1, 6, 0], sizes = [8, 8, 32], strides = [1, 1, 1]} : vector<16x16x32xbf16> to vector<8x8x32xbf16>
    %43 = vector.extract_strided_slice %21 {offsets = [1, 7, 0], sizes = [8, 8, 32], strides = [1, 1, 1]} : vector<16x16x32xbf16> to vector<8x8x32xbf16>
    %44 = vector.extract_strided_slice %21 {offsets = [1, 8, 0], sizes = [8, 8, 32], strides = [1, 1, 1]} : vector<16x16x32xbf16> to vector<8x8x32xbf16>
    %45 = tpu.concatenate %36, %37, %38, %39, %40, %41, %42, %43, %44 in 2 : vector<8x8x32xbf16>, vector<8x8x32xbf16>, vector<8x8x32xbf16>, vector<8x8x32xbf16>, vector<8x8x32xbf16>, vector<8x8x32xbf16>, vector<8x8x32xbf16>, vector<8x8x32xbf16>, vector<8x8x32xbf16> -> vector<8x8x288xbf16>
    %46 = vector.shape_cast %45 : vector<8x8x288xbf16> to vector<64x288xbf16>
    %c1 = arith.constant 1 : index
    %c0_20 = arith.constant 0 : index
    %c0_21 = arith.constant 0 : index
    %47 = vector.load %arg6[%c1, %c0_20, %c0_21] : memref<9x288x32xbf16, #tpu.memory_space<vmem>>, vector<1x288x32xbf16>
    %48 = vector.shape_cast %47 : vector<1x288x32xbf16> to vector<288x32xbf16>
    %cst_22 = arith.constant dense<0.000000e+00> : vector<64x32xf32>
    %49 = tpu.matmul %46, %48, %cst_22 {dimension_numbers = #tpu.dot_dimension_numbers<[1], [0], [0], [1], [0, 0, 1, 1], [], []>} : vector<64x288xbf16>, vector<288x32xbf16>, vector<64x32xf32> -> vector<64x32xf32>
    %50 = arith.addf %35, %49 : vector<64x32xf32>
    %51 = vector.extract_strided_slice %21 {offsets = [2, 0, 0], sizes = [8, 8, 32], strides = [1, 1, 1]} : vector<16x16x32xbf16> to vector<8x8x32xbf16>
    %52 = vector.extract_strided_slice %21 {offsets = [2, 1, 0], sizes = [8, 8, 32], strides = [1, 1, 1]} : vector<16x16x32xbf16> to vector<8x8x32xbf16>
    %53 = vector.extract_strided_slice %21 {offsets = [2, 2, 0], sizes = [8, 8, 32], strides = [1, 1, 1]} : vector<16x16x32xbf16> to vector<8x8x32xbf16>
    %54 = vector.extract_strided_slice %21 {offsets = [2, 3, 0], sizes = [8, 8, 32], strides = [1, 1, 1]} : vector<16x16x32xbf16> to vector<8x8x32xbf16>
    %55 = vector.extract_strided_slice %21 {offsets = [2, 4, 0], sizes = [8, 8, 32], strides = [1, 1, 1]} : vector<16x16x32xbf16> to vector<8x8x32xbf16>
    %56 = vector.extract_strided_slice %21 {offsets = [2, 5, 0], sizes = [8, 8, 32], strides = [1, 1, 1]} : vector<16x16x32xbf16> to vector<8x8x32xbf16>
    %57 = vector.extract_strided_slice %21 {offsets = [2, 6, 0], sizes = [8, 8, 32], strides = [1, 1, 1]} : vector<16x16x32xbf16> to vector<8x8x32xbf16>
    %58 = vector.extract_strided_slice %21 {offsets = [2, 7, 0], sizes = [8, 8, 32], strides = [1, 1, 1]} : vector<16x16x32xbf16> to vector<8x8x32xbf16>
    %59 = vector.extract_strided_slice %21 {offsets = [2, 8, 0], sizes = [8, 8, 32], strides = [1, 1, 1]} : vector<16x16x32xbf16> to vector<8x8x32xbf16>
    %60 = tpu.concatenate %51, %52, %53, %54, %55, %56, %57, %58, %59 in 2 : vector<8x8x32xbf16>, vector<8x8x32xbf16>, vector<8x8x32xbf16>, vector<8x8x32xbf16>, vector<8x8x32xbf16>, vector<8x8x32xbf16>, vector<8x8x32xbf16>, vector<8x8x32xbf16>, vector<8x8x32xbf16> -> vector<8x8x288xbf16>
    %61 = vector.shape_cast %60 : vector<8x8x288xbf16> to vector<64x288xbf16>
    %c2 = arith.constant 2 : index
    %c0_23 = arith.constant 0 : index
    %c0_24 = arith.constant 0 : index
    %62 = vector.load %arg6[%c2, %c0_23, %c0_24] : memref<9x288x32xbf16, #tpu.memory_space<vmem>>, vector<1x288x32xbf16>
    %63 = vector.shape_cast %62 : vector<1x288x32xbf16> to vector<288x32xbf16>
    %cst_25 = arith.constant dense<0.000000e+00> : vector<64x32xf32>
    %64 = tpu.matmul %61, %63, %cst_25 {dimension_numbers = #tpu.dot_dimension_numbers<[1], [0], [0], [1], [0, 0, 1, 1], [], []>} : vector<64x288xbf16>, vector<288x32xbf16>, vector<64x32xf32> -> vector<64x32xf32>
    %65 = arith.addf %50, %64 : vector<64x32xf32>
    %66 = vector.extract_strided_slice %21 {offsets = [3, 0, 0], sizes = [8, 8, 32], strides = [1, 1, 1]} : vector<16x16x32xbf16> to vector<8x8x32xbf16>
    %67 = vector.extract_strided_slice %21 {offsets = [3, 1, 0], sizes = [8, 8, 32], strides = [1, 1, 1]} : vector<16x16x32xbf16> to vector<8x8x32xbf16>
    %68 = vector.extract_strided_slice %21 {offsets = [3, 2, 0], sizes = [8, 8, 32], strides = [1, 1, 1]} : vector<16x16x32xbf16> to vector<8x8x32xbf16>
    %69 = vector.extract_strided_slice %21 {offsets = [3, 3, 0], sizes = [8, 8, 32], strides = [1, 1, 1]} : vector<16x16x32xbf16> to vector<8x8x32xbf16>
    %70 = vector.extract_strided_slice %21 {offsets = [3, 4, 0], sizes = [8, 8, 32], strides = [1, 1, 1]} : vector<16x16x32xbf16> to vector<8x8x32xbf16>
    %71 = vector.extract_strided_slice %21 {offsets = [3, 5, 0], sizes = [8, 8, 32], strides = [1, 1, 1]} : vector<16x16x32xbf16> to vector<8x8x32xbf16>
    %72 = vector.extract_strided_slice %21 {offsets = [3, 6, 0], sizes = [8, 8, 32], strides = [1, 1, 1]} : vector<16x16x32xbf16> to vector<8x8x32xbf16>
    %73 = vector.extract_strided_slice %21 {offsets = [3, 7, 0], sizes = [8, 8, 32], strides = [1, 1, 1]} : vector<16x16x32xbf16> to vector<8x8x32xbf16>
    %74 = vector.extract_strided_slice %21 {offsets = [3, 8, 0], sizes = [8, 8, 32], strides = [1, 1, 1]} : vector<16x16x32xbf16> to vector<8x8x32xbf16>
    %75 = tpu.concatenate %66, %67, %68, %69, %70, %71, %72, %73, %74 in 2 : vector<8x8x32xbf16>, vector<8x8x32xbf16>, vector<8x8x32xbf16>, vector<8x8x32xbf16>, vector<8x8x32xbf16>, vector<8x8x32xbf16>, vector<8x8x32xbf16>, vector<8x8x32xbf16>, vector<8x8x32xbf16> -> vector<8x8x288xbf16>
    %76 = vector.shape_cast %75 : vector<8x8x288xbf16> to vector<64x288xbf16>
    %c3 = arith.constant 3 : index
    %c0_26 = arith.constant 0 : index
    %c0_27 = arith.constant 0 : index
    %77 = vector.load %arg6[%c3, %c0_26, %c0_27] : memref<9x288x32xbf16, #tpu.memory_space<vmem>>, vector<1x288x32xbf16>
    %78 = vector.shape_cast %77 : vector<1x288x32xbf16> to vector<288x32xbf16>
    %cst_28 = arith.constant dense<0.000000e+00> : vector<64x32xf32>
    %79 = tpu.matmul %76, %78, %cst_28 {dimension_numbers = #tpu.dot_dimension_numbers<[1], [0], [0], [1], [0, 0, 1, 1], [], []>} : vector<64x288xbf16>, vector<288x32xbf16>, vector<64x32xf32> -> vector<64x32xf32>
    %80 = arith.addf %65, %79 : vector<64x32xf32>
    %81 = vector.extract_strided_slice %21 {offsets = [4, 0, 0], sizes = [8, 8, 32], strides = [1, 1, 1]} : vector<16x16x32xbf16> to vector<8x8x32xbf16>
    %82 = vector.extract_strided_slice %21 {offsets = [4, 1, 0], sizes = [8, 8, 32], strides = [1, 1, 1]} : vector<16x16x32xbf16> to vector<8x8x32xbf16>
    %83 = vector.extract_strided_slice %21 {offsets = [4, 2, 0], sizes = [8, 8, 32], strides = [1, 1, 1]} : vector<16x16x32xbf16> to vector<8x8x32xbf16>
    %84 = vector.extract_strided_slice %21 {offsets = [4, 3, 0], sizes = [8, 8, 32], strides = [1, 1, 1]} : vector<16x16x32xbf16> to vector<8x8x32xbf16>
    %85 = vector.extract_strided_slice %21 {offsets = [4, 4, 0], sizes = [8, 8, 32], strides = [1, 1, 1]} : vector<16x16x32xbf16> to vector<8x8x32xbf16>
    %86 = vector.extract_strided_slice %21 {offsets = [4, 5, 0], sizes = [8, 8, 32], strides = [1, 1, 1]} : vector<16x16x32xbf16> to vector<8x8x32xbf16>
    %87 = vector.extract_strided_slice %21 {offsets = [4, 6, 0], sizes = [8, 8, 32], strides = [1, 1, 1]} : vector<16x16x32xbf16> to vector<8x8x32xbf16>
    %88 = vector.extract_strided_slice %21 {offsets = [4, 7, 0], sizes = [8, 8, 32], strides = [1, 1, 1]} : vector<16x16x32xbf16> to vector<8x8x32xbf16>
    %89 = vector.extract_strided_slice %21 {offsets = [4, 8, 0], sizes = [8, 8, 32], strides = [1, 1, 1]} : vector<16x16x32xbf16> to vector<8x8x32xbf16>
    %90 = tpu.concatenate %81, %82, %83, %84, %85, %86, %87, %88, %89 in 2 : vector<8x8x32xbf16>, vector<8x8x32xbf16>, vector<8x8x32xbf16>, vector<8x8x32xbf16>, vector<8x8x32xbf16>, vector<8x8x32xbf16>, vector<8x8x32xbf16>, vector<8x8x32xbf16>, vector<8x8x32xbf16> -> vector<8x8x288xbf16>
    %91 = vector.shape_cast %90 : vector<8x8x288xbf16> to vector<64x288xbf16>
    %c4 = arith.constant 4 : index
    %c0_29 = arith.constant 0 : index
    %c0_30 = arith.constant 0 : index
    %92 = vector.load %arg6[%c4, %c0_29, %c0_30] : memref<9x288x32xbf16, #tpu.memory_space<vmem>>, vector<1x288x32xbf16>
    %93 = vector.shape_cast %92 : vector<1x288x32xbf16> to vector<288x32xbf16>
    %cst_31 = arith.constant dense<0.000000e+00> : vector<64x32xf32>
    %94 = tpu.matmul %91, %93, %cst_31 {dimension_numbers = #tpu.dot_dimension_numbers<[1], [0], [0], [1], [0, 0, 1, 1], [], []>} : vector<64x288xbf16>, vector<288x32xbf16>, vector<64x32xf32> -> vector<64x32xf32>
    %95 = arith.addf %80, %94 : vector<64x32xf32>
    %96 = vector.extract_strided_slice %21 {offsets = [5, 0, 0], sizes = [8, 8, 32], strides = [1, 1, 1]} : vector<16x16x32xbf16> to vector<8x8x32xbf16>
    %97 = vector.extract_strided_slice %21 {offsets = [5, 1, 0], sizes = [8, 8, 32], strides = [1, 1, 1]} : vector<16x16x32xbf16> to vector<8x8x32xbf16>
    %98 = vector.extract_strided_slice %21 {offsets = [5, 2, 0], sizes = [8, 8, 32], strides = [1, 1, 1]} : vector<16x16x32xbf16> to vector<8x8x32xbf16>
    %99 = vector.extract_strided_slice %21 {offsets = [5, 3, 0], sizes = [8, 8, 32], strides = [1, 1, 1]} : vector<16x16x32xbf16> to vector<8x8x32xbf16>
    %100 = vector.extract_strided_slice %21 {offsets = [5, 4, 0], sizes = [8, 8, 32], strides = [1, 1, 1]} : vector<16x16x32xbf16> to vector<8x8x32xbf16>
    %101 = vector.extract_strided_slice %21 {offsets = [5, 5, 0], sizes = [8, 8, 32], strides = [1, 1, 1]} : vector<16x16x32xbf16> to vector<8x8x32xbf16>
    %102 = vector.extract_strided_slice %21 {offsets = [5, 6, 0], sizes = [8, 8, 32], strides = [1, 1, 1]} : vector<16x16x32xbf16> to vector<8x8x32xbf16>
    %103 = vector.extract_strided_slice %21 {offsets = [5, 7, 0], sizes = [8, 8, 32], strides = [1, 1, 1]} : vector<16x16x32xbf16> to vector<8x8x32xbf16>
    %104 = vector.extract_strided_slice %21 {offsets = [5, 8, 0], sizes = [8, 8, 32], strides = [1, 1, 1]} : vector<16x16x32xbf16> to vector<8x8x32xbf16>
    %105 = tpu.concatenate %96, %97, %98, %99, %100, %101, %102, %103, %104 in 2 : vector<8x8x32xbf16>, vector<8x8x32xbf16>, vector<8x8x32xbf16>, vector<8x8x32xbf16>, vector<8x8x32xbf16>, vector<8x8x32xbf16>, vector<8x8x32xbf16>, vector<8x8x32xbf16>, vector<8x8x32xbf16> -> vector<8x8x288xbf16>
    %106 = vector.shape_cast %105 : vector<8x8x288xbf16> to vector<64x288xbf16>
    %c5 = arith.constant 5 : index
    %c0_32 = arith.constant 0 : index
    %c0_33 = arith.constant 0 : index
    %107 = vector.load %arg6[%c5, %c0_32, %c0_33] : memref<9x288x32xbf16, #tpu.memory_space<vmem>>, vector<1x288x32xbf16>
    %108 = vector.shape_cast %107 : vector<1x288x32xbf16> to vector<288x32xbf16>
    %cst_34 = arith.constant dense<0.000000e+00> : vector<64x32xf32>
    %109 = tpu.matmul %106, %108, %cst_34 {dimension_numbers = #tpu.dot_dimension_numbers<[1], [0], [0], [1], [0, 0, 1, 1], [], []>} : vector<64x288xbf16>, vector<288x32xbf16>, vector<64x32xf32> -> vector<64x32xf32>
    %110 = arith.addf %95, %109 : vector<64x32xf32>
    %111 = vector.extract_strided_slice %21 {offsets = [6, 0, 0], sizes = [8, 8, 32], strides = [1, 1, 1]} : vector<16x16x32xbf16> to vector<8x8x32xbf16>
    %112 = vector.extract_strided_slice %21 {offsets = [6, 1, 0], sizes = [8, 8, 32], strides = [1, 1, 1]} : vector<16x16x32xbf16> to vector<8x8x32xbf16>
    %113 = vector.extract_strided_slice %21 {offsets = [6, 2, 0], sizes = [8, 8, 32], strides = [1, 1, 1]} : vector<16x16x32xbf16> to vector<8x8x32xbf16>
    %114 = vector.extract_strided_slice %21 {offsets = [6, 3, 0], sizes = [8, 8, 32], strides = [1, 1, 1]} : vector<16x16x32xbf16> to vector<8x8x32xbf16>
    %115 = vector.extract_strided_slice %21 {offsets = [6, 4, 0], sizes = [8, 8, 32], strides = [1, 1, 1]} : vector<16x16x32xbf16> to vector<8x8x32xbf16>
    %116 = vector.extract_strided_slice %21 {offsets = [6, 5, 0], sizes = [8, 8, 32], strides = [1, 1, 1]} : vector<16x16x32xbf16> to vector<8x8x32xbf16>
    %117 = vector.extract_strided_slice %21 {offsets = [6, 6, 0], sizes = [8, 8, 32], strides = [1, 1, 1]} : vector<16x16x32xbf16> to vector<8x8x32xbf16>
    %118 = vector.extract_strided_slice %21 {offsets = [6, 7, 0], sizes = [8, 8, 32], strides = [1, 1, 1]} : vector<16x16x32xbf16> to vector<8x8x32xbf16>
    %119 = vector.extract_strided_slice %21 {offsets = [6, 8, 0], sizes = [8, 8, 32], strides = [1, 1, 1]} : vector<16x16x32xbf16> to vector<8x8x32xbf16>
    %120 = tpu.concatenate %111, %112, %113, %114, %115, %116, %117, %118, %119 in 2 : vector<8x8x32xbf16>, vector<8x8x32xbf16>, vector<8x8x32xbf16>, vector<8x8x32xbf16>, vector<8x8x32xbf16>, vector<8x8x32xbf16>, vector<8x8x32xbf16>, vector<8x8x32xbf16>, vector<8x8x32xbf16> -> vector<8x8x288xbf16>
    %121 = vector.shape_cast %120 : vector<8x8x288xbf16> to vector<64x288xbf16>
    %c6 = arith.constant 6 : index
    %c0_35 = arith.constant 0 : index
    %c0_36 = arith.constant 0 : index
    %122 = vector.load %arg6[%c6, %c0_35, %c0_36] : memref<9x288x32xbf16, #tpu.memory_space<vmem>>, vector<1x288x32xbf16>
    %123 = vector.shape_cast %122 : vector<1x288x32xbf16> to vector<288x32xbf16>
    %cst_37 = arith.constant dense<0.000000e+00> : vector<64x32xf32>
    %124 = tpu.matmul %121, %123, %cst_37 {dimension_numbers = #tpu.dot_dimension_numbers<[1], [0], [0], [1], [0, 0, 1, 1], [], []>} : vector<64x288xbf16>, vector<288x32xbf16>, vector<64x32xf32> -> vector<64x32xf32>
    %125 = arith.addf %110, %124 : vector<64x32xf32>
    %126 = vector.extract_strided_slice %21 {offsets = [7, 0, 0], sizes = [8, 8, 32], strides = [1, 1, 1]} : vector<16x16x32xbf16> to vector<8x8x32xbf16>
    %127 = vector.extract_strided_slice %21 {offsets = [7, 1, 0], sizes = [8, 8, 32], strides = [1, 1, 1]} : vector<16x16x32xbf16> to vector<8x8x32xbf16>
    %128 = vector.extract_strided_slice %21 {offsets = [7, 2, 0], sizes = [8, 8, 32], strides = [1, 1, 1]} : vector<16x16x32xbf16> to vector<8x8x32xbf16>
    %129 = vector.extract_strided_slice %21 {offsets = [7, 3, 0], sizes = [8, 8, 32], strides = [1, 1, 1]} : vector<16x16x32xbf16> to vector<8x8x32xbf16>
    %130 = vector.extract_strided_slice %21 {offsets = [7, 4, 0], sizes = [8, 8, 32], strides = [1, 1, 1]} : vector<16x16x32xbf16> to vector<8x8x32xbf16>
    %131 = vector.extract_strided_slice %21 {offsets = [7, 5, 0], sizes = [8, 8, 32], strides = [1, 1, 1]} : vector<16x16x32xbf16> to vector<8x8x32xbf16>
    %132 = vector.extract_strided_slice %21 {offsets = [7, 6, 0], sizes = [8, 8, 32], strides = [1, 1, 1]} : vector<16x16x32xbf16> to vector<8x8x32xbf16>
    %133 = vector.extract_strided_slice %21 {offsets = [7, 7, 0], sizes = [8, 8, 32], strides = [1, 1, 1]} : vector<16x16x32xbf16> to vector<8x8x32xbf16>
    %134 = vector.extract_strided_slice %21 {offsets = [7, 8, 0], sizes = [8, 8, 32], strides = [1, 1, 1]} : vector<16x16x32xbf16> to vector<8x8x32xbf16>
    %135 = tpu.concatenate %126, %127, %128, %129, %130, %131, %132, %133, %134 in 2 : vector<8x8x32xbf16>, vector<8x8x32xbf16>, vector<8x8x32xbf16>, vector<8x8x32xbf16>, vector<8x8x32xbf16>, vector<8x8x32xbf16>, vector<8x8x32xbf16>, vector<8x8x32xbf16>, vector<8x8x32xbf16> -> vector<8x8x288xbf16>
    %136 = vector.shape_cast %135 : vector<8x8x288xbf16> to vector<64x288xbf16>
    %c7 = arith.constant 7 : index
    %c0_38 = arith.constant 0 : index
    %c0_39 = arith.constant 0 : index
    %137 = vector.load %arg6[%c7, %c0_38, %c0_39] : memref<9x288x32xbf16, #tpu.memory_space<vmem>>, vector<1x288x32xbf16>
    %138 = vector.shape_cast %137 : vector<1x288x32xbf16> to vector<288x32xbf16>
    %cst_40 = arith.constant dense<0.000000e+00> : vector<64x32xf32>
    %139 = tpu.matmul %136, %138, %cst_40 {dimension_numbers = #tpu.dot_dimension_numbers<[1], [0], [0], [1], [0, 0, 1, 1], [], []>} : vector<64x288xbf16>, vector<288x32xbf16>, vector<64x32xf32> -> vector<64x32xf32>
    %140 = arith.addf %125, %139 : vector<64x32xf32>
    %141 = vector.extract_strided_slice %21 {offsets = [8, 0, 0], sizes = [8, 8, 32], strides = [1, 1, 1]} : vector<16x16x32xbf16> to vector<8x8x32xbf16>
    %142 = vector.extract_strided_slice %21 {offsets = [8, 1, 0], sizes = [8, 8, 32], strides = [1, 1, 1]} : vector<16x16x32xbf16> to vector<8x8x32xbf16>
    %143 = vector.extract_strided_slice %21 {offsets = [8, 2, 0], sizes = [8, 8, 32], strides = [1, 1, 1]} : vector<16x16x32xbf16> to vector<8x8x32xbf16>
    %144 = vector.extract_strided_slice %21 {offsets = [8, 3, 0], sizes = [8, 8, 32], strides = [1, 1, 1]} : vector<16x16x32xbf16> to vector<8x8x32xbf16>
    %145 = vector.extract_strided_slice %21 {offsets = [8, 4, 0], sizes = [8, 8, 32], strides = [1, 1, 1]} : vector<16x16x32xbf16> to vector<8x8x32xbf16>
    %146 = vector.extract_strided_slice %21 {offsets = [8, 5, 0], sizes = [8, 8, 32], strides = [1, 1, 1]} : vector<16x16x32xbf16> to vector<8x8x32xbf16>
    %147 = vector.extract_strided_slice %21 {offsets = [8, 6, 0], sizes = [8, 8, 32], strides = [1, 1, 1]} : vector<16x16x32xbf16> to vector<8x8x32xbf16>
    %148 = vector.extract_strided_slice %21 {offsets = [8, 7, 0], sizes = [8, 8, 32], strides = [1, 1, 1]} : vector<16x16x32xbf16> to vector<8x8x32xbf16>
    %149 = vector.extract_strided_slice %21 {offsets = [8, 8, 0], sizes = [8, 8, 32], strides = [1, 1, 1]} : vector<16x16x32xbf16> to vector<8x8x32xbf16>
    %150 = tpu.concatenate %141, %142, %143, %144, %145, %146, %147, %148, %149 in 2 : vector<8x8x32xbf16>, vector<8x8x32xbf16>, vector<8x8x32xbf16>, vector<8x8x32xbf16>, vector<8x8x32xbf16>, vector<8x8x32xbf16>, vector<8x8x32xbf16>, vector<8x8x32xbf16>, vector<8x8x32xbf16> -> vector<8x8x288xbf16>
    %151 = vector.shape_cast %150 : vector<8x8x288xbf16> to vector<64x288xbf16>
    %c8 = arith.constant 8 : index
    %c0_41 = arith.constant 0 : index
    %c0_42 = arith.constant 0 : index
    %152 = vector.load %arg6[%c8, %c0_41, %c0_42] : memref<9x288x32xbf16, #tpu.memory_space<vmem>>, vector<1x288x32xbf16>
    %153 = vector.shape_cast %152 : vector<1x288x32xbf16> to vector<288x32xbf16>
    %cst_43 = arith.constant dense<0.000000e+00> : vector<64x32xf32>
    %154 = tpu.matmul %151, %153, %cst_43 {dimension_numbers = #tpu.dot_dimension_numbers<[1], [0], [0], [1], [0, 0, 1, 1], [], []>} : vector<64x288xbf16>, vector<288x32xbf16>, vector<64x32xf32> -> vector<64x32xf32>
    %155 = arith.addf %140, %154 : vector<64x32xf32>
    %c0_44 = arith.constant 0 : index
    %c0_45 = arith.constant 0 : index
    %156 = vector.load %arg7[%c0_44, %c0_45] : memref<1x32xf32, #tpu.memory_space<vmem>>, vector<1x32xf32>
    %157 = vector.broadcast %156 : vector<1x32xf32> to vector<64x32xf32>
    %158 = arith.addf %155, %157 : vector<64x32xf32>
    %cst_46 = arith.constant 0.000000e+00 : f32
    %159 = vector.broadcast %cst_46 : f32 to vector<64x32xf32>
    %160 = arith.maximumf %158, %159 : vector<64x32xf32>
    %161 = arith.truncf %160 : vector<64x32xf32> to vector<64x32xbf16>
    %c0_47 = arith.constant 0 : index
    %c0_48 = arith.constant 0 : index
    %162 = vector.load %arg8[%c0_47, %c0_48] : memref<32x64xbf16, #tpu.memory_space<vmem>>, vector<32x64xbf16>
    %cst_49 = arith.constant dense<0.000000e+00> : vector<64x64xf32>
    %163 = tpu.matmul %161, %162, %cst_49 {dimension_numbers = #tpu.dot_dimension_numbers<[1], [0], [0], [1], [0, 0, 1, 1], [], []>} : vector<64x32xbf16>, vector<32x64xbf16>, vector<64x64xf32> -> vector<64x64xf32>
    %c0_50 = arith.constant 0 : index
    %c0_51 = arith.constant 0 : index
    %164 = vector.load %arg9[%c0_50, %c0_51] : memref<1x64xf32, #tpu.memory_space<vmem>>, vector<1x64xf32>
    %165 = vector.broadcast %164 : vector<1x64xf32> to vector<64x64xf32>
    %166 = arith.addf %163, %165 : vector<64x64xf32>
    %167 = arith.addf %166, %6 : vector<64x64xf32>
    %cst_52 = arith.constant 0.000000e+00 : f32
    %168 = vector.broadcast %cst_52 : f32 to vector<64x64xf32>
    %169 = arith.maximumf %167, %168 : vector<64x64xf32>
    %c0_53 = arith.constant 0 : index
    %c0_54 = arith.constant 0 : index
    %c0_55 = arith.constant 0 : index
    %170 = vector.load %arg10[%c0_53, %c0_54, %c0_55] : memref<1x64x64xf32, #tpu.memory_space<vmem>>, vector<1x64x64xf32>
    %171 = vector.shape_cast %170 : vector<1x64x64xf32> to vector<64x64xf32>
    %172 = vector.shape_cast %169 : vector<64x64xf32> to vector<1x64x64xf32>
    tpu.vector_store %arg10[%c0_53, %c0_54, %c0_55], %172 {strides = array<i32>} : memref<1x64x64xf32, #tpu.memory_space<vmem>>, vector<1x64x64xf32>,
    return
  }
  func.func @transform_0(%arg0: i32) -> (i32, i32, i32) {
    %c0_i32 = arith.constant 0 : i32
    %c0_i32_0 = arith.constant 0 : i32
    %c0_i32_1 = arith.constant 0 : i32
    return %arg0, %c0_i32, %c0_i32_0 : i32, i32, i32
  }
  func.func @transform_1(%arg0: i32) -> (i32, i32) {
    %c0_i32 = arith.constant 0 : i32
    %c0_i32_0 = arith.constant 0 : i32
    %c0_i32_1 = arith.constant 0 : i32
    return %c0_i32, %c0_i32_0 : i32, i32
  }
  func.func @transform_2(%arg0: i32) -> (i32, i32) {
    %c0_i32 = arith.constant 0 : i32
    %c0_i32_0 = arith.constant 0 : i32
    %c0_i32_1 = arith.constant 0 : i32
    return %c0_i32, %c0_i32_0 : i32, i32
  }
  func.func @transform_3(%arg0: i32) -> (i32, i32) {
    %c0_i32 = arith.constant 0 : i32
    %c0_i32_0 = arith.constant 0 : i32
    %c0_i32_1 = arith.constant 0 : i32
    return %c0_i32, %c0_i32_0 : i32, i32
  }
  func.func @transform_4(%arg0: i32) -> (i32, i32) {
    %c0_i32 = arith.constant 0 : i32
    %c0_i32_0 = arith.constant 0 : i32
    %c0_i32_1 = arith.constant 0 : i32
    return %c0_i32, %c0_i32_0 : i32, i32
  }
  func.func @transform_5(%arg0: i32) -> (i32, i32, i32) {
    %c0_i32 = arith.constant 0 : i32
    %c0_i32_0 = arith.constant 0 : i32
    %c0_i32_1 = arith.constant 0 : i32
    %c0_i32_2 = arith.constant 0 : i32
    return %c0_i32, %c0_i32_0, %c0_i32_1 : i32, i32, i32
  }
  func.func @transform_6(%arg0: i32) -> (i32, i32) {
    %c0_i32 = arith.constant 0 : i32
    %c0_i32_0 = arith.constant 0 : i32
    %c0_i32_1 = arith.constant 0 : i32
    return %c0_i32, %c0_i32_0 : i32, i32
  }
  func.func @transform_7(%arg0: i32) -> (i32, i32) {
    %c0_i32 = arith.constant 0 : i32
    %c0_i32_0 = arith.constant 0 : i32
    %c0_i32_1 = arith.constant 0 : i32
    return %c0_i32, %c0_i32_0 : i32, i32
  }
  func.func @transform_8(%arg0: i32) -> (i32, i32) {
    %c0_i32 = arith.constant 0 : i32
    %c0_i32_0 = arith.constant 0 : i32
    %c0_i32_1 = arith.constant 0 : i32
    return %c0_i32, %c0_i32_0 : i32, i32
  }
  func.func @transform_9(%arg0: i32) -> (i32, i32, i32) {
    %c0_i32 = arith.constant 0 : i32
    %c0_i32_0 = arith.constant 0 : i32
    %c0_i32_1 = arith.constant 0 : i32
    return %arg0, %c0_i32, %c0_i32_0 : i32, i32, i32
  }
}

</mosaic_0001>

<bundles_post_ra>
// kernel: forward.4
= control target key start
LH: loop header
LB: loop body
LE: loop exit
PB: predicated region body
PF: predicated region fallthrough
CT: control target
= control target key end

     0   :  { %s1262_s30 = smov 0   ;;  %s1549_s0 = inlined_call_operand.vmem [shape: bf16[2,64,16], index: 0, kind: input, shape index: {}]   ;;  %s1550_s1 = inlined_call_operand.vmem [shape: bf16[16,32], index: 1, kind: input, shape index: {}]   ;;  %s1551_s2 = inlined_call_operand.vmem [shape: f32[1,32], index: 2, kind: input, shape index: {}]   ;;  %s1552_s3 = inlined_call_operand.vmem [shape: bf16[16,8], index: 3, kind: input, shape index: {}]   ;;  %s1553_s4 = inlined_call_operand.vmem [shape: f32[1,8], index: 4, kind: input, shape index: {}]   ;;  %s1554_s5 = inlined_call_operand.vmem [shape: bf16[3,24,8], index: 5, kind: input, shape index: {}]   ;;  %s1555_s6 = inlined_call_operand.vmem [shape: f32[1,8], index: 6, kind: input, shape index: {}]   ;;  %s1556_s7 = inlined_call_operand.vmem [shape: bf16[8,32], index: 7, kind: input, shape index: {}]   ;;  %s1557_s8 = inlined_call_operand.vmem [shape: f32[1,32], index: 8, kind: input, shape index: {}]   ;;  %s1558_s9 = inlined_call_operand.vmem [shape: bf16[2,64,32], index: 9, kind: output, shape index: {}]  }
   0x1 LB: > { %s1096_s10 = sadd.s32 4294967295, %s1207_s30   ;;  %p1100_p0 = scmp.ge.s32.totalorder %s1207_s30, 1  ;;  %s1207_s30 = sphi %s1262_s30, %s19_s30  }
   0x2   : > { %p287_p1 = scmp.lt.s32.totalorder %s1207_s30, 3 }
   0x4   : > { %p288_p2 = pnand %p1100_p0, %p287_p1 }
   0x5   : > { %p323_p3 = scmp.lt.s32.totalorder (!%p288_p2), %s1096_s10, 1  ;;  %s1210_s17 = smov (!%p288_p2), 8  }
   0x6   : > { %291 = sbr.rel (%p288_p2) target bundleno = 643 (0x283), region = 56  ;;  %s1211_s20 = smov (!%p288_p2), 16  }
   0xb   : > { %v1180_v0 = vld [vmem:[%s1552_s3] sm:$0xff]  ;;  %s1564_s10 = smov (!%p323_p3, %s1096_s10), 1  ;;  %vm374_vm0 = vcmask 130048   ;;  %v1209_v5 = vmov 0   ;;  %vm561_vm1 = vcmask 1040384   ;;  %vm572_vm3 = vcmask 1044480  }
   0xc   : > { %435 = vmatpush.bf16.msra.mxu1 %v1180_v0  ;;  %1185 = vmatpush.bf16.msra.mxu3 %v1180_v0  ;;  %s1173_s13 = sshll.u32 %s1564_s10, 5  ;;  %v1297_v6 = vrot.slane %v1209_v5, 1  ;;  %v1304_v7 = vld [vmem:[%s1553_s4] ss:$0 sm:$0xff]  ;;  %vm562_vm2 = vsmask.f32 256 }
   0xd   : > { %s327_s16 = scalar_lea.vmem %s1549_s0, %s1173_s13  ;;  %vm573_vm4 = vsmask.f32 4352  ;;  %vm1309_vm5 = vmand %vm561_vm1, %vm562_vm2  ;;  %vm786_vm7 = vcmask 1043456   ;;  %vm687_vm8 = vcmask 64512   ;;  %vm773_vm9 = vcmask 195584   ;;  %s1521_s27 = scalar_lea.vmem %s1558_s9, %s1173_s13 }
   0xe   : > { %v1281_v1 = vld [vmem:[%s327_s16] sm:$0xff]  ;;  %v1283_v2 = vld [vmem:[%s327_s16 + $0x10] sm:$0xff]  ;;  %v1289_v3 = vld [vmem:[%s327_s16 + $0x8] sm:$0xff]  ;;  %639 = vrot.lane.b32.xlu0 %v1297_v6, %s1210_s17  ;;  %vm1032_vm10 = vcmask 257024  }
   0xf   : > { %1133 = vmatmul.msk.bf16.vlgmr.msra.gmra.mxu1 %vm374_vm0, %v1281_v1  ;;  %1135 = vmatmul.msk.bf16.vlgmr.msra.gmra.mxu3 %vm374_vm0, %v1283_v2  ;;  %v1291_v4 = vld [vmem:[%s327_s16 + $0x18] sm:$0xff]  ;;  %vm1313_vm6 = vmand %vm572_vm3, %vm573_vm4 }
  0x1f   : > { %1134 = vmatmul.msk.bf16.gmra.mxu1 %vm374_vm0, %v1289_v3  ;;  %1136 = vmatmul.msk.bf16.gmra.mxu3 %vm374_vm0, %v1291_v4 }
  0x8c   : > { %v437_v8 = vpop.f32.mrf.mxu1 }
  0x8d   : > { %v438_v9 = vadd.f32 %v1304_v7, %v437_v8 }
  0x8f   : > { %v457_v10 = vmax.f32 %v438_v9, 0.0 }
  0x91   : > { %v465_v11 = vpack.c.bf16 %v457_v10, %v457_v10 }
  0x92   : > { %v447_v12 = vpop.f32.mrf.mxu3 }
  0x93   : > { %v481_v13 = vunpack.c.l.b16 %v465_v11  ;;  %v448_v15 = vadd.f32 %v1304_v7, %v447_v12 }
  0x94   : > { %v439_v14 = vpop.f32.mrf.mxu1 }
  0x95   : > { %v489_v16 = vpack.c.b16 %v481_v13, %v481_v13  ;;  %v440_v17 = vadd.f32 %v1304_v7, %v439_v14  ;;  %v461_v20 = vmax.f32 %v448_v15, 0.0 }
  0x97   : > { %v498_v18 = vshrl.u32 %v489_v16, 16  ;;  %v458_v19 = vmax.f32 %v440_v17, 0.0  ;;  %v501_v22 = vshll.u32 %v489_v16, 16  ;;  %v469_v31 = vpack.c.bf16 %v461_v20, %v461_v20 }
  0x99   : > { %v500_v21 = vrot.slane %v498_v18, 7  ;;  %v466_v23 = vpack.c.bf16 %v458_v19, %v458_v19  ;;  %v485_v40 = vunpack.c.l.b16 %v469_v31 }
  0x9a   : > { %v449_v25 = vpop.f32.mrf.mxu3 }
  0x9b   : > { %v503_v26 = vor.u32 %v501_v22, %v500_v21  ;;  %v482_v27 = vunpack.c.l.b16 %v466_v23  ;;  %v450_v29 = vadd.f32 %v1304_v7, %v449_v25  ;;  %v493_v54 = vpack.c.b16 %v485_v40, %v485_v40 }
  0x9c   : > { %v442_v30 = vpop.f32.mrf.mxu1 }
  0x9d   : > { %v490_v32 = vpack.c.b16 %v482_v27, %v482_v27  ;;  %v443_v33 = vadd.f32 %v1304_v7, %v442_v30  ;;  %v564_v34 = vsel %vm1309_vm5, 0, %v503_v26  ;;  %v462_v36 = vmax.f32 %v450_v29, 0.0 }
  0x9e   : > { %v1323_v35 = vsel %vm1313_vm6, %v564_v34, 0  ;;  %v526_v9 = vshrl.u32 %v493_v54, 16  ;;  %v529_v25 = vshll.u32 %v493_v54, 16 }
  0x9f   : > { %v505_v37 = vshrl.u32 %v490_v32, 16  ;;  %v459_v38 = vmax.f32 %v443_v33, 0.0  ;;  %v664_v39 = vrot.slane %v1323_v35, 1  ;;  %v593_v41 = vshll.u32 %v1323_v35, 16 }
  0xa0   : > { %v470_v42 = vpack.c.bf16 %v462_v36, %v462_v36  ;;  %v508_v44 = vshll.u32 %v490_v32, 16  ;;  %v591_v46 = vshrl.u32 %v1323_v35, 16  ;;  %v528_v23 = vrot.slane %v526_v9, 7 }
  0xa1   : > { %v507_v43 = vrot.slane %v505_v37, 7  ;;  %v467_v45 = vpack.c.bf16 %v459_v38, %v459_v38  ;;  %673 = vrot.lane.b32.xlu2 %v664_v39, %s1211_s20  ;;  %v595_v47 = vrot.slane %v593_v41, 1 }
  0xa2   : > { %v486_v48 = vunpack.c.l.b16 %v470_v42  ;;  %v452_v49 = vpop.f32.mrf.mxu3  ;;  %v531_v38 = vor.u32 %v529_v25, %v528_v23 }
  0xa3   : > { %v510_v50 = vor.u32 %v508_v44, %v507_v43  ;;  %v483_v51 = vunpack.c.l.b16 %v467_v45  ;;  %v453_v52 = vadd.f32 %v1304_v7, %v452_v49  ;;  %v596_v55 = vor.u32 %v595_v47, %v591_v46 }
  0xa4   : > { %v444_v53 = vpop.f32.mrf.mxu1  ;;  %v494_v56 = vpack.c.b16 %v486_v48, %v486_v48  ;;  %v568_v49 = vsel %vm1309_vm5, 0, %v531_v38  ;;  %v1158_v38 = vld [vmem:[%s1554_s5 + $0x20] sm:$0xf] }
  0xa5   : > { %v565_v57 = vsel %vm1309_vm5, 0, %v510_v50  ;;  %v491_v58 = vpack.c.b16 %v483_v51, %v483_v51  ;;  %v445_v59 = vadd.f32 %v1304_v7, %v444_v53  ;;  %641 = vrot.lane.b32.xlu0 %v596_v55, %s1210_s17  ;;  %v463_v62 = vmax.f32 %v453_v52, 0.0 }
  0xa6   : > { %v1336_v60 = vsel %vm1313_vm6, %v565_v57, 0  ;;  %v533_v61 = vshrl.u32 %v494_v56, 16  ;;  %v536_v14 = vshll.u32 %v494_v56, 16  ;;  %v1371_v54 = vsel %vm1313_vm6, %v568_v49, 0 }
  0xa7   : > { %v512_v63 = vshrl.u32 %v491_v58, 16  ;;  %v515_v0 = vshll.u32 %v491_v58, 16  ;;  %v460_v5 = vmax.f32 %v445_v59, 0.0  ;;  %v665_v8 = vrot.slane %v1336_v60, 1 }
  0xa8   : > { %v600_v10 = vshll.u32 %v1336_v60, 16  ;;  %v471_v11 = vpack.c.bf16 %v463_v62, %v463_v62  ;;  %v535_v15 = vrot.slane %v533_v61, 7  ;;  %v598_v16 = vshrl.u32 %v1336_v60, 16 }
  0xa9   : > { %v514_v12 = vrot.slane %v512_v63, 7  ;;  %v468_v13 = vpack.c.bf16 %v460_v5, %v460_v5  ;;  %675 = vrot.lane.b32.xlu2 %v665_v8, %s1211_s20  ;;  %v621_v62 = vshll.u32 %v1371_v54, 16 }
  0xaa   : > { %v602_v17 = vrot.slane %v600_v10, 1  ;;  %v487_v18 = vunpack.c.l.b16 %v471_v11  ;;  %v454_v19 = vpop.f32.mrf.mxu3  ;;  %v538_v33 = vor.u32 %v536_v14, %v535_v15 }
  0xab   : > { %v517_v20 = vor.u32 %v515_v0, %v514_v12  ;;  %v484_v21 = vunpack.c.l.b16 %v468_v13  ;;  %v455_v22 = vadd.f32 %v1304_v7, %v454_v19  ;;  %v619_v13 = vshrl.u32 %v1371_v54, 16 }
  0xac   : > { %v603_v26 = vor.u32 %v602_v17, %v598_v16  ;;  %v495_v27 = vpack.c.b16 %v487_v18, %v487_v18  ;;  %v569_v43 = vsel %vm1309_vm5, 0, %v538_v33  ;;  %v623_v14 = vrot.slane %v621_v62, 1  ;;  %v1179_v33 = vld [vmem:[%s1550_s1] sm:$0xff] }
  0xad   : > { %v566_v29 = vsel %vm1309_vm5, 0, %v517_v20  ;;  %v492_v30 = vpack.c.b16 %v484_v21, %v484_v21  ;;  %v464_v31 = vmax.f32 %v455_v22, 0.0  ;;  %v1365_v53 = vsel %vm1313_vm6, %v569_v43, 0  ;;  %1184 = vmatpush.bf16.msra.mxu2 %v1179_v33  ;;  %394 = vmatpush.bf16.msra.mxu0 %v1179_v33 }
  0xae   : > { %v1347_v32 = vsel %vm1313_vm6, %v566_v29, 0  ;;  %643 = vrot.lane.b32.xlu1 %v603_v26, %s1210_s17  ;;  %v540_v36 = vshrl.u32 %v495_v27, 16  ;;  %v543_v47 = vshll.u32 %v495_v27, 16  ;;  %v628_v61 = vshll.u32 %v1365_v53, 16 }
  0xaf   : > { %v519_v34 = vshrl.u32 %v492_v30, 16  ;;  %v605_v7 = vshrl.u32 %v1347_v32, 16  ;;  %v607_v37 = vshll.u32 %v1347_v32, 16  ;;  %v472_v39 = vpack.c.bf16 %v464_v31, %v464_v31 }
  0xb0   : > { %v522_v41 = vshll.u32 %v492_v30, 16  ;;  %v542_v46 = vrot.slane %v540_v36, 7  ;;  %v666_v9 = vrot.slane %v1347_v32, 1  ;;  %v626_v10 = vshrl.u32 %v1365_v53, 16  ;;  %1127 = vmatmul.msk.bf16.vlgmr.msra.gmra.mxu2 %vm374_vm0, %v1283_v2  ;;  %1125 = vmatmul.msk.bf16.vlgmr.msra.gmra.mxu0 %vm374_vm0, %v1281_v1  ;;  %v722_v36 = vld [vmem:[%s1554_s5 + $0x8] sm:$0xf] }
  0xb1   : > { %v521_v40 = vrot.slane %v519_v34, 7  ;;  %v609_v42 = vrot.slane %v607_v37, 1  ;;  %v488_v44 = vunpack.c.l.b16 %v472_v39  ;;  %v630_v11 = vrot.slane %v628_v61, 1  ;;  %v1139_v34 = vld [vmem:[%s1554_s5 + $0x14] sm:$0xf] }
  0xb2   : > { %v545_v55 = vor.u32 %v543_v47, %v542_v46  ;;  %v668_v16 = vrot.slane %v1371_v54, 1  ;;  %v624_v19 = vor.u32 %v623_v14, %v619_v13  ;;  %v669_v24 = vrot.slane %v1365_v53, 1  ;;  %v1183_v46 = vld [vmem:[%s1554_s5 + $0x18] sm:$0xff]  ;;  %v640_v47 = vpop.permute.xlu0 %639 }
  0xb3   : > { %v524_v45 = vor.u32 %v522_v41, %v521_v40  ;;  %v610_v48 = vor.u32 %v609_v42, %v605_v7  ;;  %v496_v50 = vpack.c.b16 %v488_v44, %v488_v44  ;;  %v631_v17 = vor.u32 %v630_v11, %v626_v10  ;;  %v1182_v44 = vld [vmem:[%s1554_s5 + $0xc] sm:$0xff] }
  0xb4   : > { %v570_v63 = vsel %vm1309_vm5, 0, %v545_v55  ;;  %v769_v7 = vunpack.c.l.b16 %v1139_v34  ;;  %v830_v37 = vunpack.c.l.b16 %v722_v36  ;;  %v888_v39 = vunpack.c.l.b16 %v1158_v38 }
  0xb5   : > { %v567_v51 = vsel %vm1309_vm5, 0, %v524_v45  ;;  %645 = vrot.lane.b32.xlu0 %v610_v48, %s1210_s17  ;;  %v547_v57 = vshrl.u32 %v496_v50, 16  ;;  %v550_v8 = vshll.u32 %v496_v50, 16  ;;  %v1386_v12 = vsel %vm1313_vm6, %v570_v63, 0  ;;  %v1181_v45 = vld [vmem:[%s1554_s5] sm:$0xff] }
  0xb6   : > { %v1361_v52 = vsel %vm1313_vm6, %v567_v51, 0  ;;  %671 = vrot.lane.b32.xlu1 %v1297_v6, %s1211_s20  ;;  %v635_v18 = vshll.u32 %v1386_v12, 16  ;;  %v633_v21 = vshrl.u32 %v1386_v12, 16  ;;  %v670_v26 = vrot.slane %v1386_v12, 1 }
  0xb7   : > { %v614_v56 = vshll.u32 %v1361_v52, 16  ;;  %v612_v58 = vshrl.u32 %v1361_v52, 16  ;;  %v667_v6 = vrot.slane %v1361_v52, 1  ;;  %v549_v5 = vrot.slane %v547_v57, 7 }
  0xb8   : > { %v637_v22 = vrot.slane %v635_v18, 1  ;;  %v771_v2 = vpack.c.b16 %v769_v7, %v769_v7  ;;  %v832_v40 = vpack.c.b16 %v830_v37, %v830_v37  ;;  %v890_v41 = vpack.c.b16 %v888_v39, %v888_v39 }
  0xb9   : > { %v616_v59 = vrot.slane %v614_v56, 1  ;;  %v552_v15 = vor.u32 %v550_v8, %v549_v5  ;;  %v689_v62 = vsel %vm687_vm8, 0, %v640_v47 }
  0xba   : > { %v638_v25 = vor.u32 %v637_v22, %v633_v21  ;;  %v788_v1 = vsel %vm786_vm7, %v771_v2, 0  ;;  %v847_v42 = vsel %vm786_vm7, %v832_v40, 0  ;;  %v896_v43 = vsel %vm786_vm7, %v890_v41, 0 }
  0xbb   : > { %v617_v0 = vor.u32 %v616_v59, %v612_v58  ;;  %v571_v20 = vsel %vm1309_vm5, 0, %v552_v15  ;;  %796 = vmatpush.bf16.msrb.mxu2 %v788_v1  ;;  %855 = vmatpush.bf16.msrb.mxu3 %v847_v42 }
  0xbc   : > { %v1400_v23 = vsel %vm1313_vm6, %v571_v20, 0  ;;  %904 = vmatpush.bf16.msrb.mxu0 %v896_v43 }
  0xbd   : > { %647 = vrot.lane.b32.xlu2 %v617_v0, %s1210_s17  ;;  %679 = vrot.lane.b32.xlu0 %v667_v6, %s1211_s20  ;;  %v726_v27 = vshll.u32 %v1400_v23, 16  ;;  %v724_v29 = vshrl.u32 %v1400_v23, 16  ;;  %v733_v28 = vrot.slane %v1400_v23, 1 }
  0xbe   : > { %677 = vrot.lane.b32.xlu1 %v666_v9, %s1211_s20 }
  0xbf   : > { %v728_v30 = vrot.slane %v726_v27, 1  ;;  %797 = vmatpush.bf16.msrb.mxu2 %v1182_v44  ;;  %856 = vmatpush.bf16.msrb.mxu3 %v1181_v45 }
  0xc0   : > { %1128 = vmatmul.msk.bf16.gmra.mxu2 %vm374_vm0, %v1291_v4  ;;  %1126 = vmatmul.msk.bf16.gmra.mxu0 %vm374_vm0, %v1289_v3 }
  0xc1   : > { %v729_v31 = vor.u32 %v728_v30, %v724_v29  ;;  %905 = vmatpush.bf16.msrb.mxu0 %v1183_v46 }
  0xc5   : > { %681 = vrot.lane.b32.xlu2 %v668_v16, %s1211_s20  ;;  %651 = vrot.lane.b32.xlu0 %v631_v17, %s1210_s17 }
  0xc6   : > { %649 = vrot.lane.b32.xlu1 %v624_v19, %s1210_s17 }
  0xcd   : > { %653 = vrot.lane.b32.xlu2 %v638_v25, %s1210_s17  ;;  %685 = vrot.lane.b32.xlu0 %v670_v26, %s1211_s20 }
  0xce   : > { %683 = vrot.lane.b32.xlu1 %v669_v24, %s1211_s20 }
  0xd5   : > { %734 = vrot.lane.b32.xlu2 %v733_v28, %s1211_s20 }
  0xd6   : > { %730 = vrot.lane.b32.xlu1 %v729_v31, %s1210_s17 }
  0xfb   : > { %v674_v4 = vpop.permute.xlu2 %673 }
 0x103   : > { %v676_v51 = vpop.permute.xlu2 %675 }
 0x117   : > { %v642_v48 = vpop.permute.xlu0 %641  ;;  %v648_v6 = vpop.permute.xlu2 %647 }
 0x118   : > { %v691_v3 = vsel %vm687_vm8, %v1323_v35, %v642_v48 }
 0x119   : > { %v707_v49 = vsel %vm374_vm0, %v691_v3, %v674_v4 }
 0x11a   : > { %v752_v57 = vunpack.c.l.b16 %v707_v49 }
 0x11f   : > { %v682_v19 = vpop.permute.xlu2 %681 }
 0x120   : > { %v644_v50 = vpop.permute.xlu1 %643 }
 0x121   : > { %v693_v55 = vsel %vm687_vm8, %v1336_v60, %v644_v50  ;;  %v697_v60 = vsel %vm687_vm8, %v1361_v52, %v648_v6 }
 0x122   : > { %v709_v56 = vsel %vm374_vm0, %v693_v55, %v676_v51  ;;  %v1199_v51 = vld [vmem:[%s1555_s6] ss:$0 sm:$0xff] }
 0x123   : > { %v753_v58 = vunpack.c.l.b16 %v709_v56 }
 0x125   : > { %v760_v59 = vpack.c.b16 %v753_v58, %v752_v57 }
 0x127   : > { %1144 = vmatmul.msk.bf16.vlgmr.msrb.gmra.mxu2 %vm773_vm9, %v760_v59  ;;  %v646_v61 = vpop.permute.xlu0 %645  ;;  %v654_v24 = vpop.permute.xlu2 %653 }
 0x128   : > { %v672_v63 = vpop.permute.xlu1 %671  ;;  %v695_v9 = vsel %vm687_vm8, %v1347_v32, %v646_v61  ;;  %v703_v33 = vsel %vm687_vm8, %v1386_v12, %v654_v24 }
 0x129   : > { %v705_v35 = vsel %vm374_vm0, %v689_v62, %v672_v63 }
 0x12a   : > { %v820_v0 = vunpack.c.l.b16 %v705_v35 }
 0x12c   : > { %v821_v5 = vpack.c.b16 %v752_v57, %v820_v0 }
 0x12d   : > { %v1490_v1 = vpop.f32.mrf.mxu0 }
 0x12e   : > { %1152 = vmatmul.msk.bf16.vlgmr.msrb.gmra.mxu3 %vm773_vm9, %v821_v5 }
 0x12f   : > { %v680_v8 = vpop.permute.xlu0 %679 }
 0x130   : > { %v678_v10 = vpop.permute.xlu1 %677  ;;  %v713_v11 = vsel %vm374_vm0, %v697_v60, %v680_v8 }
 0x131   : > { %v711_v13 = vsel %vm374_vm0, %v695_v9, %v678_v10  ;;  %v755_v14 = vunpack.c.l.b16 %v713_v11 }
 0x132   : > { %v754_v15 = vunpack.c.l.b16 %v711_v13 }
 0x133   : > { %v1486_v40 = vpop.f32.mrf.mxu2 }
 0x134   : > { %v822_v16 = vpack.c.b16 %v754_v15, %v753_v58  ;;  %v761_v17 = vpack.c.b16 %v755_v14, %v754_v15 }
 0x135   : > { %v1494_v43 = vpop.f32.mrf.mxu0 }
 0x136   : > { %1163 = vmatmul.msk.bf16.vlgmr.msrb.gmra.mxu0 %vm773_vm9, %v822_v16 }
 0x137   : > { %1145 = vmatmul.msk.bf16.gmra.mxu2 %vm773_vm9, %v761_v17  ;;  %v652_v20 = vpop.permute.xlu0 %651 }
 0x138   : > { %v650_v18 = vpop.permute.xlu1 %649  ;;  %v701_v22 = vsel %vm687_vm8, %v1365_v53, %v652_v20  ;;  %v735_v53 = vpop.permute.xlu2 %734 }
 0x139   : > { %v699_v52 = vsel %vm687_vm8, %v1371_v54, %v650_v18 }
 0x13a   : > { %v715_v32 = vsel %vm374_vm0, %v699_v52, %v682_v19 }
 0x13b   : > { %v756_v21 = vunpack.c.l.b16 %v715_v32  ;;  %v1488_v41 = vpop.f32.mrf.mxu2 }
 0x13d   : > { %v823_v29 = vpack.c.b16 %v756_v21, %v755_v14  ;;  %v1498_v45 = vpop.f32.mrf.mxu0 }
 0x13e   : > { %1153 = vmatmul.msk.bf16.gmra.mxu3 %vm773_vm9, %v822_v16 }
 0x13f   : > { %v686_v28 = vpop.permute.xlu0 %685 }
 0x140   : > { %v684_v25 = vpop.permute.xlu1 %683  ;;  %v719_v34 = vsel %vm374_vm0, %v703_v33, %v686_v28 }
 0x141   : > { %v717_v26 = vsel %vm374_vm0, %v701_v22, %v684_v25  ;;  %v758_v7 = vunpack.c.l.b16 %v719_v34 }
 0x142   : > { %v757_v27 = vunpack.c.l.b16 %v717_v26 }
 0x143   : > { %v1492_v42 = vpop.f32.mrf.mxu2 }
 0x144   : > { %v762_v30 = vpack.c.b16 %v757_v27, %v756_v21  ;;  %v824_v38 = vpack.c.b16 %v758_v7, %v757_v27 }
 0x145   : > { %v1500_v47 = vpop.f32.mrf.mxu0 }
 0x146   : > { %1164 = vmatmul.msk.bf16.gmra.mxu0 %vm773_vm9, %v823_v29 }
 0x147   : > { %1146 = vmatmul.msk.bf16.gmra.mxu2 %vm773_vm9, %v762_v30 }
 0x148   : > { %v731_v54 = vpop.permute.xlu1 %730 }
 0x149   : > { %v737_v31 = vsel %vm687_vm8, %v1400_v23, %v731_v54  ;;  %v959_v23 = vld [vmem:[%s1556_s7] sm:$0xf] }
 0x14a   : > { %v739_v36 = vsel %vm374_vm0, %v737_v31, %v735_v53  ;;  %v977_v12 = vsel %vm786_vm7, %v959_v23, 0 }
 0x14b   : > { %v759_v37 = vunpack.c.l.b16 %v739_v36  ;;  %986 = vmatpush.bf16.msrb.mxu1 %v977_v12  ;;  %v1496_v44 = vpop.f32.mrf.mxu2 }
 0x14d   : > { %v763_v39 = vpack.c.b16 %v759_v37, %v758_v7  ;;  %v882_v2 = vpack.c.b16 %v820_v0, %v759_v37 }
 0x14e   : > { %1154 = vmatmul.msk.bf16.gmra.mxu3 %vm773_vm9, %v823_v29 }
 0x156   : > { %1165 = vmatmul.msk.bf16.gmra.mxu0 %vm773_vm9, %v824_v38 }
 0x157   : > { %1147 = vmatmul.msk.bf16.gmra.mxu2 %vm773_vm9, %v763_v39 }
 0x15e   : > { %1155 = vmatmul.msk.bf16.gmra.mxu3 %vm773_vm9, %v824_v38 }
 0x166   : > { %1166 = vmatmul.msk.bf16.gmra.mxu0 %vm773_vm9, %v882_v2 }
 0x1aa   : > { %v799_v46 = vpop.f32.mrf.mxu2 }
 0x1b1   : > { %v858_v4 = vpop.f32.mrf.mxu3 }
 0x1b2   : > { %v801_v48 = vpop.f32.mrf.mxu2  ;;  %v859_v49 = vadd.f32 %v858_v4, %v799_v46 }
 0x1b3   : > { %v907_v3 = vpop.f32.mrf.mxu0 }
 0x1b4   : > { %v927_v50 = vadd.f32 %v907_v3, %v859_v49 }
 0x1b6   : > { %v939_v59 = vadd.f32 %v1199_v51, %v927_v50  ;;  %v1200_v50 = vld [vmem:[%s1557_s8] ss:$0 sm:$0xff] }
 0x1b8   : > { %v947_v63 = vmax.f32 %v939_v59, 0.0 }
 0x1b9   : > { %v860_v55 = vpop.f32.mrf.mxu3 }
 0x1ba   : > { %v861_v56 = vadd.f32 %v860_v55, %v801_v48  ;;  %v804_v57 = vpop.f32.mrf.mxu2  ;;  %v1198_v55 = vld [vmem:[%s1551_s2] ss:$0 sm:$0xff] }
 0x1bb   : > { %v909_v58 = vpop.f32.mrf.mxu0 }
 0x1bc   : > { %v928_v61 = vadd.f32 %v909_v58, %v861_v56 }
 0x1be   : > { %v940_v62 = vadd.f32 %v1199_v51, %v928_v61 }
 0x1c0   : > { %v948_v35 = vmax.f32 %v940_v62, 0.0 }
 0x1c1   : > { %v863_v0 = vpop.f32.mrf.mxu3 }
 0x1c2   : > { %v955_v6 = vpack.c.bf16 %v948_v35, %v947_v63  ;;  %v806_v5 = vpop.f32.mrf.mxu2  ;;  %v864_v8 = vadd.f32 %v863_v0, %v804_v57  ;;  %v397_v57 = vadd.f32 %v1198_v55, %v1490_v1  ;;  %v399_v63 = vadd.f32 %v1198_v55, %v1494_v43 }
 0x1c3   : > { %v912_v60 = vpop.f32.mrf.mxu0  ;;  %v404_v43 = vadd.f32 %v1198_v55, %v1500_v47  ;;  %v409_v47 = vadd.f32 %v1198_v55, %v1488_v41 }
 0x1c4   : > { %1167 = vmatmul.msk.bf16.vlgmr.msrb.gmra.mxu1 %vm687_vm8, %v955_v6  ;;  %v929_v9 = vadd.f32 %v912_v60, %v864_v8  ;;  %v402_v60 = vadd.f32 %v1198_v55, %v1498_v45  ;;  %v407_v45 = vadd.f32 %v1198_v55, %v1486_v40  ;;  %v412_v40 = vadd.f32 %v1198_v55, %v1492_v42 }
 0x1c6   : > { %v941_v15 = vadd.f32 %v1199_v51, %v929_v9 }
 0x1c8   : > { %v949_v18 = vmax.f32 %v941_v15, 0.0 }
 0x1c9   : > { %v865_v10 = vpop.f32.mrf.mxu3 }
 0x1ca   : > { %v866_v11 = vadd.f32 %v865_v10, %v806_v5  ;;  %v809_v13 = vpop.f32.mrf.mxu2 }
 0x1cb   : > { %v914_v14 = vpop.f32.mrf.mxu0 }
 0x1cc   : > { %v930_v16 = vadd.f32 %v914_v14, %v866_v11 }
 0x1ce   : > { %v942_v17 = vadd.f32 %v1199_v51, %v930_v16 }
 0x1d0   : > { %v950_v19 = vmax.f32 %v942_v17, 0.0 }
 0x1d1   : > { %v868_v52 = vpop.f32.mrf.mxu3 }
 0x1d2   : > { %v956_v32 = vpack.c.bf16 %v950_v19, %v949_v18  ;;  %v869_v21 = vadd.f32 %v868_v52, %v809_v13  ;;  %v811_v22 = vpop.f32.mrf.mxu2 }
 0x1d3   : > { %v917_v20 = vpop.f32.mrf.mxu0 }
 0x1d4   : > { %1168 = vmatmul.msk.bf16.gmra.mxu1 %vm687_vm8, %v956_v32  ;;  %v931_v25 = vadd.f32 %v917_v20, %v869_v21 }
 0x1d6   : > { %v943_v29 = vadd.f32 %v1199_v51, %v931_v25 }
 0x1d8   : > { %v951_v31 = vmax.f32 %v943_v29, 0.0 }
 0x1d9   : > { %v870_v26 = vpop.f32.mrf.mxu3 }
 0x1da   : > { %v871_v27 = vadd.f32 %v870_v26, %v811_v22  ;;  %v814_v28 = vpop.f32.mrf.mxu2 }
 0x1db   : > { %v919_v24 = vpop.f32.mrf.mxu0 }
 0x1dc   : > { %v932_v30 = vadd.f32 %v919_v24, %v871_v27 }
 0x1de   : > { %v944_v54 = vadd.f32 %v1199_v51, %v932_v30 }
 0x1e0   : > { %v952_v33 = vmax.f32 %v944_v54, 0.0 }
 0x1e1   : > { %v873_v53 = vpop.f32.mrf.mxu3 }
 0x1e2   : > { %v957_v34 = vpack.c.bf16 %v952_v33, %v951_v31  ;;  %v874_v7 = vadd.f32 %v873_v53, %v814_v28  ;;  %v816_v38 = vpop.f32.mrf.mxu2  ;;  %v414_v33 = vadd.f32 %v1198_v55, %v1496_v44 }
 0x1e3   : > { %v922_v36 = vpop.f32.mrf.mxu0 }
 0x1e4   : > { %1169 = vmatmul.msk.bf16.gmra.mxu1 %vm687_vm8, %v957_v34  ;;  %v933_v37 = vadd.f32 %v922_v36, %v874_v7 }
 0x1e6   : > { %v945_v2 = vadd.f32 %v1199_v51, %v933_v37 }
 0x1e8   : > { %v953_v48 = vmax.f32 %v945_v2, 0.0 }
 0x1e9   : > { %v875_v39 = vpop.f32.mrf.mxu3 }
 0x1ea   : > { %v876_v23 = vadd.f32 %v875_v39, %v816_v38 }
 0x1eb   : > { %v924_v12 = vpop.f32.mrf.mxu0 }
 0x1ec   : > { %v934_v46 = vadd.f32 %v924_v12, %v876_v23 }
 0x1ee   : > { %v946_v4 = vadd.f32 %v1199_v51, %v934_v46 }
 0x1f0   : > { %v954_v3 = vmax.f32 %v946_v4, 0.0 }
 0x1f2   : > { %v958_v49 = vpack.c.bf16 %v954_v3, %v953_v48 }
 0x1f4   : > { %1170 = vmatmul.msk.bf16.gmra.mxu1 %vm687_vm8, %v958_v49 }
 0x241   : > { %v988_v56 = vpop.f32.mrf.mxu1 }
 0x242   : > { %v989_v58 = vadd.f32 %v1200_v50, %v988_v56 }
 0x244   : > { %v1008_v59 = vadd.f32 %v989_v58, %v397_v57 }
 0x246   : > { %v1016_v61 = vmax.f32 %v1008_v59, 0.0 }
 0x248   : > { %v1024_v51 = vpack.c.bf16 %v1016_v61, %v1016_v61 }
 0x249   : > { %v990_v62 = vpop.f32.mrf.mxu1 }
 0x24a   : > { %1033 = vst.msk [vmem:[%s1521_s27] sm:$0xf] %vm1032_vm10, %v1024_v51  ;;  %v991_v1 = vadd.f32 %v1200_v50, %v990_v62 }
 0x24c   : > { %v1009_v35 = vadd.f32 %v991_v1, %v399_v63 }
 0x24e   : > { %v1017_v0 = vmax.f32 %v1009_v35, 0.0 }
 0x250   : > { %v1025_v6 = vpack.c.bf16 %v1017_v0, %v1017_v0 }
 0x251   : > { %v993_v5 = vpop.f32.mrf.mxu1 }
 0x252   : > { %1034 = vst.msk [vmem:[%s1521_s27 + $0x4] sm:$0xf] %vm1032_vm10, %v1025_v6  ;;  %v994_v8 = vadd.f32 %v1200_v50, %v993_v5 }
 0x254   : > { %v1010_v9 = vadd.f32 %v994_v8, %v402_v60 }
 0x256   : > { %v1018_v10 = vmax.f32 %v1010_v9, 0.0 }
 0x258   : > { %v1026_v11 = vpack.c.bf16 %v1018_v10, %v1018_v10 }
 0x259   : > { %v995_v13 = vpop.f32.mrf.mxu1 }
 0x25a   : > { %1035 = vst.msk [vmem:[%s1521_s27 + $0x8] sm:$0xf] %vm1032_vm10, %v1026_v11  ;;  %v996_v14 = vadd.f32 %v1200_v50, %v995_v13 }
 0x25c   : > { %v1011_v15 = vadd.f32 %v996_v14, %v404_v43 }
 0x25e   : > { %v1019_v16 = vmax.f32 %v1011_v15, 0.0 }
 0x260   : > { %v1027_v17 = vpack.c.bf16 %v1019_v16, %v1019_v16 }
 0x261   : > { %v998_v18 = vpop.f32.mrf.mxu1 }
 0x262   : > { %1036 = vst.msk [vmem:[%s1521_s27 + $0xc] sm:$0xf] %vm1032_vm10, %v1027_v17  ;;  %v999_v19 = vadd.f32 %v1200_v50, %v998_v18 }
 0x264   : > { %v1012_v52 = vadd.f32 %v999_v19, %v407_v45 }
 0x266   : > { %v1020_v32 = vmax.f32 %v1012_v52, 0.0 }
 0x268   : > { %v1028_v20 = vpack.c.bf16 %v1020_v32, %v1020_v32 }
 0x269   : > { %v1000_v21 = vpop.f32.mrf.mxu1 }
 0x26a   : > { %1037 = vst.msk [vmem:[%s1521_s27 + $0x10] sm:$0xf] %vm1032_vm10, %v1028_v20  ;;  %v1001_v22 = vadd.f32 %v1200_v50, %v1000_v21 }
 0x26c   : > { %v1013_v25 = vadd.f32 %v1001_v22, %v409_v47 }
 0x26e   : > { %v1021_v26 = vmax.f32 %v1013_v25, 0.0 }
 0x270   : > { %v1029_v27 = vpack.c.bf16 %v1021_v26, %v1021_v26 }
 0x271   : > { %v1003_v24 = vpop.f32.mrf.mxu1 }
 0x272   : > { %1038 = vst.msk [vmem:[%s1521_s27 + $0x14] sm:$0xf] %vm1032_vm10, %v1029_v27  ;;  %v1004_v29 = vadd.f32 %v1200_v50, %v1003_v24 }
 0x274   : > { %v1014_v30 = vadd.f32 %v1004_v29, %v412_v40 }
 0x276   : > { %v1022_v54 = vmax.f32 %v1014_v30, 0.0 }
 0x278   : > { %v1030_v28 = vpack.c.bf16 %v1022_v54, %v1022_v54 }
 0x279   : > { %v1005_v31 = vpop.f32.mrf.mxu1 }
 0x27a   : > { %1039 = vst.msk [vmem:[%s1521_s27 + $0x18] sm:$0xf] %vm1032_vm10, %v1030_v28  ;;  %v1006_v41 = vadd.f32 %v1200_v50, %v1005_v31 }
 0x27c   : > { %v1015_v53 = vadd.f32 %v1006_v41, %v414_v33 }
 0x27e   : > { %v1023_v34 = vmax.f32 %v1015_v53, 0.0 }
 0x280   : > { %v1031_v36 = vpack.c.bf16 %v1023_v34, %v1023_v34 }
 0x282   : > { %1040 = vst.msk [vmem:[%s1521_s27 + $0x1c] sm:$0xf] %vm1032_vm10, %v1031_v36 }
 0x283 PF: > { %s19_s30 = sadd.s32 1, %s1207_s30  }
 0x284   : > { %p16_p4 = scmp.ge.s32.totalorder %s19_s30, 4  }
 0x286   :  { %18 = sbr.rel (!%p16_p4) target bundleno = 1 (0x1), region = 88 }

// kernel: forward.3
= control target key start
LH: loop header
LB: loop body
LE: loop exit
PB: predicated region body
PF: predicated region fallthrough
CT: control target
= control target key end

     0   :  { %s2646_s12 = smov 0   ;;  %s3480_s0 = inlined_call_operand.vmem [shape: bf16[2,16,16,12], index: 0, kind: input, shape index: {}]   ;;  %s3481_s1 = inlined_call_operand.vmem [shape: bf16[4,48,16], index: 1, kind: input, shape index: {}]   ;;  %s3482_s2 = inlined_call_operand.vmem [shape: f32[1,16], index: 2, kind: input, shape index: {}]   ;;  %s3483_s3 = inlined_call_operand.vmem [shape: bf16[2,64,16], index: 3, kind: output, shape index: {}]  }
   0x1 LB: > { %s2363_s13 = sadd.s32 4294967295, %s2619_s12   ;;  %p2367_p0 = scmp.ge.s32.totalorder %s2619_s12, 1  ;;  %s2619_s12 = sphi %s2646_s12, %s13_s12  }
   0x2   : > { %p137_p1 = scmp.lt.s32.totalorder %s2619_s12, 3 }
   0x4   : > { %p138_p2 = pnand %p2367_p0, %p137_p1 }
   0x5   : > { %p161_p3 = scmp.lt.s32.totalorder (!%p138_p2), %s2363_s13, 1  ;;  %s2622_s15 = smov (!%p138_p2), 12  }
   0x6   : > { %141 = sbr.rel (%p138_p2) target bundleno = 566 (0x236), region = 32  ;;  %s2623_s19 = smov (!%p138_p2), 24  }
   0x7   : > { %s2624_s20 = smov (!%p138_p2), 36  }
   0xb   : > { %s3485_s13 = smov (!%p161_p3, %s2363_s13), 1  ;;  %v2621_v0 = vmov 0   ;;  %vm300_vm0 = vcmask 1040384   ;;  %vm557_vm1 = vcmask 1046528   ;;  %vm350_vm2 = vsmask.f32 7424 }
   0xc   : > { %v2656_v1 = vrot.slane %v2621_v0, 1  ;;  %s2568_s14 = sshll.u32 %s3485_s13, 7  ;;  %vm632_vm3 = vsmask.f32 6400  ;;  %v634_v47 = vrot.slane %v2621_v0, 2  ;;  %vm793_vm4 = vcmask 97280  }
   0xd   : > { %s2664_s18 = scalar_lea.vmem %s3480_s0, %s2568_s14  ;;  %vm855_vm5 = vcmask 293888   ;;  %vm824_vm6 = vcmask 195584   ;;  %vm953_vm7 = vcmask 392192   ;;  %vm1922_vm8 = vcmask 1045504  }
   0xe   : > { %498 = vrot.lane.b32.xlu2 %v2656_v1, %s2622_s15  ;;  %v2570_v2 = vld [vmem:[%s2664_s18] sm:$0xff]  ;;  %v2571_v3 = vld [vmem:[%s2664_s18 + $0x8] sm:$0xff]  ;;  %v2572_v18 = vld [vmem:[%s2664_s18 + $0x10] sm:$0xff]  ;;  %v635_v56 = vor.u32 %v634_v47, %v2656_v1  ;;  %vm2239_vm9 = vcmask 1041408   ;;  %vm2248_vm10 = vcmask 1042432   ;;  %vm2257_vm11 = vcmask 1043456  }
   0xf   : > { %v284_v4 = vrot.slane %v2570_v2, 7  ;;  %v285_v5 = vrot.slane %v2571_v3, 7  ;;  %v286_v32 = vrot.slane %v2572_v18, 7  ;;  %v2573_v45 = vld [vmem:[%s2664_s18 + $0x18] sm:$0xff]  ;;  %v2574_v2 = vld [vmem:[%s2664_s18 + $0x20] sm:$0xff]  ;;  %vm2266_vm12 = vcmask 1044480  }
  0x10   : > { %v287_v55 = vrot.slane %v2573_v45, 7  ;;  %vm2299_vm13 = vcmask 125952  }
  0x11   : > { %v2669_v6 = vsel %vm300_vm0, 0, %v284_v4  ;;  %v334_v7 = vsel %vm300_vm0, %v284_v4, 0  ;;  %v2673_v8 = vsel %vm300_vm0, 0, %v285_v5  ;;  %v335_v9 = vsel %vm300_vm0, %v285_v5, 0 }
  0x12   : > { %v560_v10 = vrot.slane %v2669_v6, 1  ;;  %v561_v11 = vrot.slane %v334_v7, 1  ;;  %v368_v12 = vshrl.u32 %v2673_v8, 16  ;;  %v370_v13 = vshll.u32 %v2673_v8, 16 }
  0x13   : > { %v374_v14 = vshll.u32 %v335_v9, 16  ;;  %v358_v15 = vshrl.u32 %v2669_v6, 16  ;;  %v360_v16 = vshll.u32 %v2669_v6, 16  ;;  %v364_v17 = vshll.u32 %v334_v7, 16 }
  0x14   : > { %v562_v19 = vsel %vm557_vm1, %v560_v10, %v561_v11  ;;  %v372_v20 = vrot.slane %v370_v13, 1  ;;  %v640_v21 = vshrl.u32 %v334_v7, 16  ;;  %v649_v31 = vshrl.u32 %v335_v9, 16 }
  0x15   : > { %604 = vrot.lane.b32.xlu0 %v562_v19, %s2623_s19  ;;  %v376_v22 = vrot.slane %v374_v14, 1  ;;  %v362_v23 = vrot.slane %v360_v16, 1  ;;  %v366_v24 = vrot.slane %v364_v17, 1  ;;  %v637_v25 = vrot.slane %v358_v15, 1 }
  0x16   : > { %v373_v26 = vor.u32 %v372_v20, %v368_v12  ;;  %v638_v27 = vrot.slane %v360_v16, 2  ;;  %v642_v28 = vrot.slane %v640_v21, 1  ;;  %v643_v29 = vrot.slane %v364_v17, 2 }
  0x17   : > { %v363_v30 = vor.u32 %v362_v23, %v358_v15  ;;  %v563_v34 = vrot.slane %v2673_v8, 1  ;;  %v646_v35 = vrot.slane %v368_v12, 1  ;;  %v647_v36 = vrot.slane %v370_v13, 2 }
  0x18   : > { %v377_v33 = vsel %vm350_vm2, %v373_v26, %v376_v22  ;;  %v652_v37 = vrot.slane %v374_v14, 2  ;;  %v564_v38 = vrot.slane %v335_v9, 1  ;;  %v639_v40 = vor.u32 %v638_v27, %v637_v25 }
  0x19   : > { %502 = vrot.lane.b32.xlu1 %v377_v33, %s2622_s15  ;;  %v367_v39 = vsel %vm350_vm2, %v363_v30, %v366_v24  ;;  %v644_v41 = vor.u32 %v643_v29, %v642_v28  ;;  %v651_v42 = vrot.slane %v649_v31, 1  ;;  %v2690_v44 = vsel %vm300_vm0, 0, %v286_v32  ;;  %v2575_v24 = vld [vmem:[%s2664_s18 + $0x28] sm:$0xff] }
  0x1a   : > { %v565_v43 = vsel %vm557_vm1, %v563_v34, %v564_v38  ;;  %v336_v46 = vsel %vm300_vm0, %v286_v32, 0  ;;  %v648_v48 = vor.u32 %v647_v36, %v646_v35  ;;  %v380_v51 = vshll.u32 %v2690_v44, 16 }
  0x1b   : > { %606 = vrot.lane.b32.xlu2 %v565_v43, %s2623_s19  ;;  %v645_v49 = vsel %vm632_vm3, %v639_v40, %v644_v41  ;;  %v653_v50 = vor.u32 %v652_v37, %v651_v42  ;;  %v658_v52 = vshrl.u32 %v336_v46, 16  ;;  %v378_v53 = vshrl.u32 %v2690_v44, 16 }
  0x1c   : > { %v384_v54 = vshll.u32 %v336_v46, 16  ;;  %v656_v58 = vrot.slane %v380_v51, 2  ;;  %v382_v62 = vrot.slane %v380_v51, 1  ;;  %v2703_v63 = vsel %vm300_vm0, 0, %v287_v55 }
  0x1d   : > { %500 = vrot.lane.b32.xlu0 %v367_v39, %s2622_s15  ;;  %v655_v57 = vrot.slane %v378_v53, 1  ;;  %v660_v59 = vrot.slane %v658_v52, 1  ;;  %v654_v61 = vsel %vm632_vm3, %v648_v48, %v653_v50  ;;  %v337_v0 = vsel %vm300_vm0, %v287_v55, 0 }
  0x1e   : > { %v661_v60 = vrot.slane %v384_v54, 2  ;;  %v667_v3 = vshrl.u32 %v337_v0, 16  ;;  %v386_v4 = vrot.slane %v384_v54, 1  ;;  %v383_v9 = vor.u32 %v382_v62, %v378_v53 }
  0x1f   : > { %v657_v5 = vor.u32 %v656_v58, %v655_v57  ;;  %v388_v10 = vshrl.u32 %v2703_v63, 16  ;;  %v390_v11 = vshll.u32 %v2703_v63, 16  ;;  %v394_v12 = vshll.u32 %v337_v0, 16 }
  0x20   : > { %v662_v7 = vor.u32 %v661_v60, %v660_v59  ;;  %v288_v13 = vrot.slane %v2574_v2, 7  ;;  %v669_v16 = vrot.slane %v667_v3, 1  ;;  %v387_v19 = vsel %vm350_vm2, %v383_v9, %v386_v4 }
  0x21   : > { %765 = vrot.lane.b32.xlu1 %v645_v49, %s2624_s20  ;;  %v664_v14 = vrot.slane %v388_v10, 1  ;;  %v665_v15 = vrot.slane %v390_v11, 2  ;;  %v670_v17 = vrot.slane %v394_v12, 2  ;;  %v566_v20 = vrot.slane %v2690_v44, 1 }
  0x22   : > { %v663_v18 = vsel %vm632_vm3, %v657_v5, %v662_v7  ;;  %v567_v21 = vrot.slane %v336_v46, 1  ;;  %v392_v22 = vrot.slane %v390_v11, 1  ;;  %v2717_v23 = vsel %vm300_vm0, 0, %v288_v13  ;;  %v2576_v46 = vld [vmem:[%s2664_s18 + $0x30] sm:$0xff]  ;;  %v2577_v7 = vld [vmem:[%s2664_s18 + $0x38] sm:$0xff] }
  0x23   : > { %763 = vrot.lane.b32.xlu2 %v635_v56, %s2624_s20  ;;  %v338_v25 = vsel %vm300_vm0, %v288_v13, 0  ;;  %v666_v26 = vor.u32 %v665_v15, %v664_v14  ;;  %v671_v27 = vor.u32 %v670_v17, %v669_v16  ;;  %v396_v30 = vrot.slane %v394_v12, 1 }
  0x24   : > { %v568_v28 = vsel %vm557_vm1, %v566_v20, %v567_v21  ;;  %v393_v29 = vor.u32 %v392_v22, %v388_v10  ;;  %v400_v31 = vshll.u32 %v2717_v23, 16  ;;  %v398_v32 = vshrl.u32 %v2717_v23, 16 }
  0x25   : > { %767 = vrot.lane.b32.xlu0 %v654_v61, %s2624_s20  ;;  %v404_v33 = vshll.u32 %v338_v25, 16  ;;  %v289_v34 = vrot.slane %v2575_v24, 7  ;;  %v569_v35 = vrot.slane %v2703_v63, 1  ;;  %v570_v36 = vrot.slane %v337_v0, 1 }
  0x26   : > { %v672_v37 = vsel %vm632_vm3, %v666_v26, %v671_v27  ;;  %v673_v38 = vrot.slane %v398_v32, 1  ;;  %v674_v39 = vrot.slane %v400_v31, 2  ;;  %v397_v42 = vsel %vm350_vm2, %v393_v29, %v396_v30 }
  0x27   : > { %v679_v41 = vrot.slane %v404_v33, 2  ;;  %v402_v43 = vrot.slane %v400_v31, 1  ;;  %v2731_v45 = vsel %vm300_vm0, 0, %v289_v34  ;;  %v339_v47 = vsel %vm300_vm0, %v289_v34, 0 }
  0x28   : > { %v571_v48 = vsel %vm557_vm1, %v569_v35, %v570_v36  ;;  %v675_v49 = vor.u32 %v674_v39, %v673_v38  ;;  %v685_v51 = vshrl.u32 %v339_v47, 16  ;;  %v406_v53 = vrot.slane %v404_v33, 1 }
  0x29   : > { %602 = vrot.lane.b32.xlu1 %v2656_v1, %s2623_s19  ;;  %v676_v1 = vshrl.u32 %v338_v25, 16  ;;  %v403_v52 = vor.u32 %v402_v43, %v398_v32  ;;  %v408_v54 = vshrl.u32 %v2731_v45, 16  ;;  %v410_v55 = vshll.u32 %v2731_v45, 16 }
  0x2a   : > { %v414_v56 = vshll.u32 %v339_v47, 16  ;;  %v290_v57 = vrot.slane %v2576_v46, 7  ;;  %v687_v61 = vrot.slane %v685_v51, 1  ;;  %v572_v2 = vrot.slane %v2717_v23, 1  ;;  %v2594_v46 = vld [vmem:[%s3481_s1 + $0x40] sm:$0xff] }
  0x2b   : > { %769 = vrot.lane.b32.xlu2 %v663_v18, %s2624_s20  ;;  %v678_v40 = vrot.slane %v676_v1, 1  ;;  %v682_v58 = vrot.slane %v408_v54, 1  ;;  %v683_v60 = vrot.slane %v410_v55, 2  ;;  %v407_v0 = vsel %vm350_vm2, %v403_v52, %v406_v53  ;;  %1250 = vmatpush.bf16.msra.mxu2 %v2594_v46 }
  0x2c   : > { %v688_v62 = vrot.slane %v414_v56, 2  ;;  %v573_v3 = vrot.slane %v338_v25, 1  ;;  %v412_v4 = vrot.slane %v410_v55, 1  ;;  %v2745_v5 = vsel %vm300_vm0, 0, %v290_v57 }
  0x2d   : > { %504 = vrot.lane.b32.xlu0 %v387_v19, %s2622_s15  ;;  %v680_v50 = vor.u32 %v679_v41, %v678_v40  ;;  %v684_v9 = vor.u32 %v683_v60, %v682_v58  ;;  %v416_v13 = vrot.slane %v414_v56, 1  ;;  %v420_v14 = vshll.u32 %v2745_v5, 16  ;;  %v2597_v58 = vld [vmem:[%s3481_s1 + $0x58] sm:$0xff] }
  0x2e   : > { %v689_v10 = vor.u32 %v688_v62, %v687_v61  ;;  %v574_v11 = vsel %vm557_vm1, %v572_v2, %v573_v3  ;;  %v413_v12 = vor.u32 %v412_v4, %v408_v54  ;;  %v340_v15 = vsel %vm300_vm0, %v290_v57, 0  ;;  %v2593_v57 = vld [vmem:[%s3481_s1 + $0x38] sm:$0xff]  ;;  %1396 = vmatpush.bf16.msra.mxu3 %v2597_v58  ;;  %v2592_v2 = vld [vmem:[%s3481_s1 + $0x30] sm:$0xff]  ;;  %v2591_v4 = vld [vmem:[%s3481_s1 + $0x28] sm:$0xff] }
  0x2f   : > { %v681_v59 = vsel %vm632_vm3, %v675_v49, %v680_v50  ;;  %v291_v16 = vrot.slane %v2577_v7, 7  ;;  %v575_v17 = vrot.slane %v2731_v45, 1  ;;  %v576_v18 = vrot.slane %v339_v47, 1  ;;  %v2578_v47 = vld [vmem:[%s2664_s18 + $0x40] sm:$0xff]  ;;  %1251 = vmatpush.bf16.msra.mxu2 %v2593_v57  ;;  %v2596_v3 = vld [vmem:[%s3481_s1 + $0x50] sm:$0xff]  ;;  %991 = vmatpush.bf16.msra.mxu0 %v2591_v4 }
  0x30   : > { %v690_v19 = vsel %vm632_vm3, %v684_v9, %v689_v10  ;;  %v417_v20 = vsel %vm350_vm2, %v413_v12, %v416_v13  ;;  %v418_v21 = vshrl.u32 %v2745_v5, 16  ;;  %v422_v22 = vrot.slane %v420_v14, 1  ;;  %v2588_v10 = vld [vmem:[%s3481_s1 + $0x10] sm:$0xff] }
  0x31   : > { %608 = vrot.lane.b32.xlu1 %v568_v28, %s2623_s19  ;;  %v424_v24 = vshll.u32 %v340_v15, 16  ;;  %v2759_v25 = vsel %vm300_vm0, 0, %v291_v16  ;;  %v577_v26 = vsel %vm557_vm1, %v575_v17, %v576_v18  ;;  %v2766_v29 = vsel %vm300_vm0, %v291_v16, 0  ;;  %1098 = vmatpush.bf16.msra.mxu1 %v2588_v10  ;;  %v2590_v16 = vld [vmem:[%s3481_s1 + $0x20] sm:$0xff]  ;;  %v2587_v17 = vld [vmem:[%s3481_s1 + $0x8] sm:$0xff] }
  0x32   : > { %v423_v27 = vor.u32 %v422_v22, %v418_v21  ;;  %v430_v28 = vshll.u32 %v2759_v25, 16  ;;  %v578_v30 = vrot.slane %v2745_v5, 1  ;;  %v579_v31 = vrot.slane %v340_v15, 1  ;;  %1397 = vmatpush.bf16.msra.mxu3 %v2596_v3 }
  0x33   : > { %771 = vrot.lane.b32.xlu2 %v672_v37, %s2624_s20  ;;  %v426_v1 = vrot.slane %v424_v24, 1  ;;  %v428_v33 = vshrl.u32 %v2759_v25, 16  ;;  %v434_v35 = vshll.u32 %v2766_v29, 16  ;;  %v581_v40 = vrot.slane %v2759_v25, 1  ;;  %1252 = vmatpush.bf16.msra.mxu2 %v2592_v2 }
  0x34   : > { %v432_v34 = vrot.slane %v430_v28, 1  ;;  %v580_v36 = vsel %vm557_vm1, %v578_v30, %v579_v31  ;;  %v582_v41 = vrot.slane %v2766_v29, 1  ;;  %v694_v43 = vshrl.u32 %v340_v15, 16  ;;  %v2595_v15 = vld [vmem:[%s3481_s1 + $0x48] sm:$0xff]  ;;  %992 = vmatpush.bf16.msra.mxu0 %v2590_v16 }
  0x35   : > { %506 = vrot.lane.b32.xlu0 %v397_v42, %s2622_s15  ;;  %v427_v32 = vsel %vm350_vm2, %v423_v27, %v426_v1  ;;  %v436_v38 = vrot.slane %v434_v35, 1  ;;  %v692_v49 = vrot.slane %v420_v14, 2  ;;  %v697_v51 = vrot.slane %v424_v24, 2  ;;  %1099 = vmatpush.bf16.msra.mxu1 %v2587_v17  ;;  %v2586_v27 = vld [vmem:[%s3481_s1] sm:$0xff] }
  0x36   : > { %v433_v37 = vor.u32 %v432_v34, %v428_v33  ;;  %v583_v42 = vsel %vm557_vm1, %v581_v40, %v582_v41  ;;  %v696_v50 = vrot.slane %v694_v43, 1  ;;  %v292_v52 = vrot.slane %v2578_v47, 7  ;;  %1398 = vmatpush.bf16.msra.mxu3 %v2595_v15  ;;  %v2580_v47 = vld [vmem:[%s2664_s18 + $0x50] sm:$0xff] }
  0x37   : > { %v703_v18 = vshrl.u32 %v2766_v29, 16  ;;  %v706_v24 = vrot.slane %v434_v35, 2 }
  0x38   : > { %v437_v39 = vsel %vm350_vm2, %v433_v37, %v436_v38  ;;  %v698_v54 = vor.u32 %v697_v51, %v696_v50  ;;  %v2789_v55 = vsel %vm300_vm0, 0, %v292_v52  ;;  %v2801_v60 = vsel %vm300_vm0, %v292_v52, 0 }
  0x39   : > { %610 = vrot.lane.b32.xlu1 %v571_v48, %s2623_s19  ;;  %v691_v48 = vrot.slane %v418_v21, 1  ;;  %v438_v61 = vshrl.u32 %v2789_v55, 16  ;;  %v585_v12 = vrot.slane %v2801_v60, 1  ;;  %v701_v21 = vrot.slane %v430_v28, 2  ;;  %1100 = vmatpush.bf16.msra.mxu1 %v2586_v27 }
  0x3a   : > { %v705_v22 = vrot.slane %v703_v18, 1  ;;  %v712_v43 = vshrl.u32 %v2801_v60, 16 }
  0x3b   : > { %773 = vrot.lane.b32.xlu2 %v681_v59, %s2624_s20  ;;  %v693_v53 = vor.u32 %v692_v49, %v691_v48  ;;  %v440_v59 = vshll.u32 %v2789_v55, 16  ;;  %v709_v49 = vrot.slane %v438_v61, 1 }
  0x3c   : > { %v707_v29 = vor.u32 %v706_v24, %v705_v22  ;;  %v714_v51 = vrot.slane %v712_v43, 1 }
  0x3d   : > { %508 = vrot.lane.b32.xlu0 %v407_v0, %s2622_s15  ;;  %v699_v56 = vsel %vm632_vm3, %v693_v53, %v698_v54  ;;  %v442_v62 = vrot.slane %v440_v59, 1  ;;  %v444_v0 = vshll.u32 %v2801_v60, 16  ;;  %v710_v50 = vrot.slane %v440_v59, 2 }
  0x3e   : > { %v294_v53 = vrot.slane %v2580_v47, 7 }
  0x3f   : > { %v443_v7 = vor.u32 %v442_v62, %v438_v61  ;;  %v446_v9 = vrot.slane %v444_v0, 1  ;;  %v715_v52 = vrot.slane %v444_v0, 2  ;;  %v711_v54 = vor.u32 %v710_v50, %v709_v49 }
  0x40   : > { %v2862_v58 = vsel %vm300_vm0, 0, %v294_v53  ;;  %v2868_v61 = vsel %vm300_vm0, %v294_v53, 0 }
  0x41   : > { %612 = vrot.lane.b32.xlu1 %v574_v11, %s2623_s19  ;;  %v584_v11 = vrot.slane %v2789_v55, 1  ;;  %v447_v13 = vsel %vm350_vm2, %v443_v7, %v446_v9  ;;  %v460_v60 = vshll.u32 %v2862_v58, 16  ;;  %v458_v59 = vshrl.u32 %v2862_v58, 16 }
  0x42   : > { %v464_v2 = vshll.u32 %v2868_v61, 16  ;;  %v590_v3 = vrot.slane %v2862_v58, 1  ;;  %v591_v7 = vrot.slane %v2868_v61, 1 }
  0x43   : > { %775 = vrot.lane.b32.xlu2 %v690_v19, %s2624_s20  ;;  %v586_v14 = vsel %vm557_vm1, %v584_v11, %v585_v12  ;;  %v2579_v19 = vld [vmem:[%s2664_s18 + $0x48] sm:$0xff]  ;;  %v462_v0 = vrot.slane %v460_v60, 1 }
  0x44   : > { %v293_v1 = vrot.slane %v2579_v19, 7  ;;  %v466_v11 = vrot.slane %v464_v2, 1  ;;  %v592_v12 = vsel %vm557_vm1, %v590_v3, %v591_v7  ;;  %v728_v3 = vrot.slane %v460_v60, 2 }
  0x45   : > { %510 = vrot.lane.b32.xlu0 %v417_v20, %s2622_s15  ;;  %v700_v20 = vrot.slane %v428_v33, 1  ;;  %v463_v10 = vor.u32 %v462_v0, %v458_v59  ;;  %v727_v0 = vrot.slane %v458_v59, 1  ;;  %v733_v7 = vrot.slane %v464_v2, 2 }
  0x46   : > { %v2845_v31 = vsel %vm300_vm0, 0, %v293_v1  ;;  %v343_v33 = vsel %vm300_vm0, %v293_v1, 0 }
  0x47   : > { %v702_v30 = vor.u32 %v701_v21, %v700_v20  ;;  %v448_v34 = vshrl.u32 %v2845_v31, 16  ;;  %v587_v37 = vrot.slane %v2845_v31, 1  ;;  %v588_v38 = vrot.slane %v343_v33, 1  ;;  %v2581_v21 = vld [vmem:[%s2664_s18 + $0x58] sm:$0xff] }
  0x48   : > { %v721_v18 = vshrl.u32 %v343_v33, 16  ;;  %v295_v1 = vrot.slane %v2581_v21, 7 }
  0x49   : > { %614 = vrot.lane.b32.xlu1 %v577_v26, %s2623_s19  ;;  %v2589_v26 = vld [vmem:[%s3481_s1 + $0x18] sm:$0xff]  ;;  %v708_v28 = vsel %vm632_vm3, %v702_v30, %v707_v29  ;;  %v589_v41 = vsel %vm557_vm1, %v587_v37, %v588_v38  ;;  %v718_v24 = vrot.slane %v448_v34, 1 }
  0x4a   : > { %993 = vmatpush.bf16.msra.mxu0 %v2589_v26  ;;  %v723_v27 = vrot.slane %v721_v18, 1  ;;  %v2903_v37 = vsel %vm300_vm0, 0, %v295_v1 }
  0x4b   : > { %777 = vrot.lane.b32.xlu2 %v699_v56, %s2624_s20  ;;  %v716_v56 = vor.u32 %v715_v52, %v714_v51  ;;  %v593_v43 = vrot.slane %v2903_v37, 1 }
  0x4d   : > { %512 = vrot.lane.b32.xlu0 %v427_v32, %s2622_s15  ;;  %v450_v32 = vshll.u32 %v2845_v31, 16  ;;  %v717_v62 = vsel %vm632_vm3, %v711_v54, %v716_v56 }
  0x4f   : > { %v452_v35 = vrot.slane %v450_v32, 1  ;;  %v719_v26 = vrot.slane %v450_v32, 2 }
  0x51   : > { %616 = vrot.lane.b32.xlu1 %v580_v36, %s2623_s19  ;;  %v454_v36 = vshll.u32 %v343_v33, 16  ;;  %v720_v29 = vor.u32 %v719_v26, %v718_v24 }
  0x53   : > { %779 = vrot.lane.b32.xlu2 %v708_v28, %s2624_s20  ;;  %v456_v40 = vrot.slane %v454_v36, 1 }
  0x55   : > { %514 = vrot.lane.b32.xlu0 %v437_v39, %s2622_s15  ;;  %v453_v39 = vor.u32 %v452_v35, %v448_v34  ;;  %v470_v34 = vshll.u32 %v2903_v37, 16 }
  0x59   : > { %618 = vrot.lane.b32.xlu1 %v583_v42, %s2623_s19  ;;  %v457_v42 = vsel %vm350_vm2, %v453_v39, %v456_v40  ;;  %v468_v40 = vshrl.u32 %v2903_v37, 16 }
  0x5b   : > { %781 = vrot.lane.b32.xlu2 %v717_v62, %s2624_s20  ;;  %v2582_v62 = vld [vmem:[%s2664_s18 + $0x60] sm:$0xff] }
  0x5d   : > { %516 = vrot.lane.b32.xlu0 %v447_v13, %s2622_s15 }
  0x61   : > { %620 = vrot.lane.b32.xlu1 %v586_v14, %s2623_s19  ;;  %v467_v14 = vsel %vm350_vm2, %v463_v10, %v466_v11  ;;  %v729_v10 = vor.u32 %v728_v3, %v727_v0  ;;  %v2584_v3 = vld [vmem:[%s2664_s18 + $0x70] sm:$0xff] }
  0x65   : > { %518 = vrot.lane.b32.xlu0 %v457_v42, %s2622_s15 }
  0x68   : > { %v499_v48 = vpop.permute.xlu2 %498 }
  0x69   : > { %622 = vrot.lane.b32.xlu1 %v589_v41, %s2623_s19  ;;  %v795_v28 = vsel %vm793_vm4, 0, %v499_v48  ;;  %v472_v41 = vrot.slane %v470_v34, 1 }
  0x6b   : > { %v473_v48 = vor.u32 %v472_v41, %v468_v40 }
  0x6d   : > { %520 = vrot.lane.b32.xlu0 %v467_v14, %s2622_s15 }
  0x71   : > { %624 = vrot.lane.b32.xlu1 %v592_v12, %s2623_s19 }
  0x75   : > { %v607_v13 = vpop.permute.xlu2 %606 }
  0x7d   : > { %v764_v30 = vpop.permute.xlu2 %763 }
  0x85   : > { %v770_v54 = vpop.permute.xlu2 %769 }
  0x87   : > { %v605_v46 = vpop.permute.xlu0 %604 }
  0x8b   : > { %v503_v57 = vpop.permute.xlu1 %502 }
  0x8c   : > { %v799_v16 = vsel %vm793_vm4, %v2673_v8, %v503_v57  ;;  %v724_v8 = vrot.slane %v454_v36, 2  ;;  %v2912_v36 = vsel %vm300_vm0, %v295_v1, 0 }
  0x8d   : > { %v830_v19 = vsel %vm824_vm6, %v799_v16, %v607_v13  ;;  %v474_v42 = vshll.u32 %v2912_v36, 16  ;;  %v594_v47 = vrot.slane %v2912_v36, 1 }
  0x8e   : > { %v725_v35 = vor.u32 %v724_v8, %v723_v27  ;;  %v772_v8 = vpop.permute.xlu2 %771 }
  0x8f   : > { %v501_v4 = vpop.permute.xlu0 %500  ;;  %v476_v49 = vrot.slane %v474_v42, 1  ;;  %v595_v51 = vsel %vm557_vm1, %v593_v43, %v594_v47 }
  0x90   : > { %v797_v9 = vsel %vm793_vm4, %v2669_v6, %v501_v4  ;;  %v726_v39 = vsel %vm632_vm3, %v720_v29, %v725_v35  ;;  %626 = vrot.lane.b32.xlu1 %v595_v51, %s2623_s19  ;;  %v736_v29 = vrot.slane %v468_v40, 1  ;;  %v742_v35 = vrot.slane %v474_v42, 2 }
  0x91   : > { %v828_v6 = vsel %vm824_vm6, %v797_v9, %v605_v46  ;;  %783 = vrot.lane.b32.xlu2 %v726_v39, %s2624_s20  ;;  %v477_v52 = vsel %vm350_vm2, %v473_v48, %v476_v49  ;;  %v296_v9 = vrot.slane %v2582_v62, 7 }
  0x92   : > { %522 = vrot.lane.b32.xlu0 %v477_v52, %s2622_s15 }
  0x93   : > { %v766_v15 = vpop.permute.xlu1 %765  ;;  %v2946_v12 = vsel %vm300_vm0, 0, %v296_v9  ;;  %v346_v60 = vsel %vm300_vm0, %v296_v9, 0 }
  0x94   : > { %v2890_v17 = vsel %vm855_vm5, %v828_v6, %v766_v15  ;;  %v480_v13 = vshll.u32 %v2946_v12, 16  ;;  %v484_v15 = vshll.u32 %v346_v60, 16  ;;  %v596_v6 = vrot.slane %v2946_v12, 1 }
  0x95   : > { %2516 = vmatmul.msk.bf16.vlgmr.msra.gmra.mxu2 %vm953_vm7, %v2890_v17  ;;  %v597_v16 = vrot.slane %v346_v60, 1 }
  0x96   : > { %v482_v2 = vrot.slane %v480_v13, 1  ;;  %v486_v21 = vrot.slane %v484_v15, 1  ;;  %v774_v62 = vpop.permute.xlu2 %773 }
  0x97   : > { %v768_v20 = vpop.permute.xlu0 %767  ;;  %v598_v24 = vsel %vm557_vm1, %v596_v6, %v597_v16 }
  0x98   : > { %v2897_v22 = vsel %vm855_vm5, %v830_v19, %v768_v20  ;;  %628 = vrot.lane.b32.xlu1 %v598_v24, %s2623_s19 }
  0x99   : > { %2550 = vmatmul.msk.bf16.vlgmr.msra.gmra.mxu3 %vm953_vm7, %v2897_v22 }
  0x9b   : > { %v603_v33 = vpop.permute.xlu1 %602 }
  0x9c   : > { %v826_v38 = vsel %vm824_vm6, %v795_v28, %v603_v33  ;;  %v737_v28 = vrot.slane %v470_v34, 2 }
  0x9d   : > { %v2908_v32 = vsel %vm855_vm5, %v826_v38, %v764_v30  ;;  %v2583_v30 = vld [vmem:[%s2664_s18 + $0x68] sm:$0xff] }
  0x9e   : > { %2454 = vmatmul.msk.bf16.vlgmr.msra.gmra.mxu0 %vm953_vm7, %v2908_v32  ;;  %2482 = vmatmul.msk.bf16.vlgmr.msra.gmra.mxu1 %vm953_vm7, %v2908_v32  ;;  %v297_v38 = vrot.slane %v2583_v30, 7  ;;  %v738_v39 = vor.u32 %v737_v28, %v736_v29  ;;  %v776_v30 = vpop.permute.xlu2 %775  ;;  %v2585_v28 = vld [vmem:[%s2664_s18 + $0x78] sm:$0xff] }
  0x9f   : > { %v505_v46 = vpop.permute.xlu0 %504 }
  0xa0   : > { %v801_v50 = vsel %vm793_vm4, %v2690_v44, %v505_v46  ;;  %v730_v44 = vshrl.u32 %v2868_v61, 16  ;;  %v478_v61 = vshrl.u32 %v2946_v12, 16  ;;  %v2975_v43 = vsel %vm300_vm0, 0, %v297_v38 }
  0xa1   : > { %v490_v46 = vshll.u32 %v2975_v43, 16  ;;  %v488_v34 = vshrl.u32 %v2975_v43, 16  ;;  %v599_v49 = vrot.slane %v2975_v43, 1 }
  0xa2   : > { %v732_v4 = vrot.slane %v730_v44, 1  ;;  %v483_v20 = vor.u32 %v482_v2, %v478_v61 }
  0xa3   : > { %v609_v53 = vpop.permute.xlu1 %608  ;;  %v492_v40 = vrot.slane %v490_v46, 1 }
  0xa4   : > { %v832_v56 = vsel %vm824_vm6, %v801_v50, %v609_v53  ;;  %v734_v11 = vor.u32 %v733_v7, %v732_v4  ;;  %v487_v26 = vsel %vm350_vm2, %v483_v20, %v486_v21  ;;  %v745_v4 = vrot.slane %v478_v61, 1 }
  0xa5   : > { %2517 = vmatmul.msk.bf16.gmra.mxu2 %vm953_vm7, %v2897_v22  ;;  %v2933_v57 = vsel %vm855_vm5, %v832_v56, %v770_v54  ;;  %524 = vrot.lane.b32.xlu0 %v487_v26, %s2622_s15  ;;  %v493_v53 = vor.u32 %v492_v40, %v488_v34  ;;  %v746_v7 = vrot.slane %v480_v13, 2 }
  0xa6   : > { %v735_v59 = vsel %vm632_vm3, %v729_v10, %v734_v11  ;;  %v751_v10 = vrot.slane %v484_v15, 2  ;;  %v298_v11 = vrot.slane %v2584_v3, 7  ;;  %v778_v3 = vpop.permute.xlu2 %777 }
  0xa7   : > { %v507_v14 = vpop.permute.xlu0 %506  ;;  %785 = vrot.lane.b32.xlu2 %v735_v59, %s2624_s20 }
  0xa8   : > { %v803_v18 = vsel %vm793_vm4, %v2703_v63, %v507_v14  ;;  %v739_v63 = vshrl.u32 %v2912_v36, 16  ;;  %v347_v36 = vsel %vm300_vm0, %v297_v38, 0  ;;  %v747_v14 = vor.u32 %v746_v7, %v745_v4 }
  0xa9   : > { %2551 = vmatmul.msk.bf16.gmra.mxu3 %vm953_vm7, %v2933_v57  ;;  %v494_v42 = vshll.u32 %v347_v36, 16  ;;  %v600_v50 = vrot.slane %v347_v36, 1  ;;  %v3003_v2 = vsel %vm300_vm0, 0, %v298_v11 }
  0xaa   : > { %v741_v33 = vrot.slane %v739_v63, 1  ;;  %v894_v6 = vshll.u32 %v3003_v2, 16  ;;  %v892_v13 = vshrl.u32 %v3003_v2, 16 }
  0xab   : > { %v611_v19 = vpop.permute.xlu1 %610  ;;  %v496_v54 = vrot.slane %v494_v42, 1  ;;  %v601_v56 = vsel %vm557_vm1, %v599_v49, %v600_v50 }
  0xac   : > { %v834_v27 = vsel %vm824_vm6, %v803_v18, %v611_v19  ;;  %v743_v41 = vor.u32 %v742_v35, %v741_v33  ;;  %630 = vrot.lane.b32.xlu1 %v601_v56, %s2623_s19  ;;  %v896_v61 = vrot.slane %v894_v6, 1  ;;  %v906_v19 = vrot.slane %v3003_v2, 1 }
  0xad   : > { %v2968_v1 = vsel %vm855_vm5, %v834_v27, %v772_v8  ;;  %v754_v33 = vrot.slane %v488_v34, 1  ;;  %v755_v35 = vrot.slane %v490_v46, 2  ;;  %v911_v7 = vrot.slane %v892_v13, 1 }
  0xae   : > { %2455 = vmatmul.msk.bf16.gmra.mxu0 %vm953_vm7, %v2890_v17  ;;  %2483 = vmatmul.msk.bf16.gmra.mxu1 %vm953_vm7, %v2908_v32  ;;  %v744_v48 = vsel %vm632_vm3, %v738_v39, %v743_v41  ;;  %v897_v26 = vor.u32 %v896_v61, %v892_v13  ;;  %v760_v39 = vrot.slane %v494_v42, 2  ;;  %v299_v41 = vrot.slane %v2585_v28, 7  ;;  %v780_v61 = vpop.permute.xlu2 %779 }
  0xaf   : > { %v509_v47 = vpop.permute.xlu0 %508  ;;  %787 = vrot.lane.b32.xlu2 %v744_v48, %s2624_s20 }
  0xb0   : > { %v805_v51 = vsel %vm793_vm4, %v2717_v23, %v509_v47  ;;  %v748_v23 = vshrl.u32 %v346_v60, 16  ;;  %v348_v60 = vsel %vm300_vm0, %v298_v11, 0  ;;  %v756_v47 = vor.u32 %v755_v35, %v754_v33 }
  0xb1   : > { %v898_v15 = vshll.u32 %v348_v60, 16  ;;  %v907_v20 = vrot.slane %v348_v60, 1  ;;  %v3031_v40 = vsel %vm300_vm0, 0, %v299_v41 }
  0xb2   : > { %v750_v9 = vrot.slane %v748_v23, 1  ;;  %v1184_v49 = vshll.u32 %v3031_v40, 16  ;;  %v1182_v46 = vshrl.u32 %v3031_v40, 16 }
  0xb3   : > { %v613_v52 = vpop.permute.xlu1 %612  ;;  %v900_v27 = vrot.slane %v898_v15, 1  ;;  %v908_v8 = vsel %vm557_vm1, %v906_v19, %v907_v20  ;;  %v917_v11 = vrot.slane %v898_v15, 2 }
  0xb4   : > { %v836_v44 = vsel %vm824_vm6, %v805_v51, %v613_v52  ;;  %v752_v59 = vor.u32 %v751_v10, %v750_v9  ;;  %909 = vrot.lane.b32.xlu1 %v908_v8, %s2623_s19  ;;  %v1186_v34 = vrot.slane %v1184_v49, 1  ;;  %v1196_v52 = vrot.slane %v3031_v40, 1 }
  0xb5   : > { %2518 = vmatmul.msk.bf16.gmra.mxu2 %vm953_vm7, %v2933_v57  ;;  %v2997_v0 = vsel %vm855_vm5, %v836_v44, %v774_v62  ;;  %v912_v9 = vrot.slane %v894_v6, 2  ;;  %v1201_v20 = vrot.slane %v1182_v46, 1 }
  0xb6   : > { %v753_v18 = vsel %vm632_vm3, %v747_v14, %v752_v59 }
  0xb7   : > { %v511_v16 = vpop.permute.xlu0 %510  ;;  %789 = vrot.lane.b32.xlu2 %v753_v18, %s2624_s20  ;;  %v913_v14 = vor.u32 %v912_v9, %v911_v7 }
  0xb8   : > { %v807_v21 = vsel %vm793_vm4, %v2731_v45, %v511_v16  ;;  %v757_v45 = vshrl.u32 %v347_v36, 16  ;;  %v349_v36 = vsel %vm300_vm0, %v299_v41, 0 }
  0xb9   : > { %2552 = vmatmul.msk.bf16.gmra.mxu3 %vm953_vm7, %v2968_v1  ;;  %v1188_v42 = vshll.u32 %v349_v36, 16  ;;  %v1204_v19 = vshrl.u32 %v349_v36, 16 }
  0xba   : > { %v759_v38 = vrot.slane %v757_v45, 1  ;;  %v782_v45 = vpop.permute.xlu2 %781 }
  0xbb   : > { %v615_v24 = vpop.permute.xlu1 %614  ;;  %v1190_v44 = vrot.slane %v1188_v42, 1 }
  0xbc   : > { %v838_v63 = vsel %vm824_vm6, %v807_v21, %v615_v24  ;;  %v761_v48 = vor.u32 %v760_v39, %v759_v38  ;;  %v1202_v21 = vrot.slane %v1184_v49, 2  ;;  %v1206_v24 = vrot.slane %v1204_v19, 1 }
  0xbd   : > { %v3025_v29 = vsel %vm855_vm5, %v838_v63, %v776_v30 }
  0xbe   : > { %2456 = vmatmul.msk.bf16.gmra.mxu0 %vm953_vm7, %v2897_v22  ;;  %2484 = vmatmul.msk.bf16.gmra.mxu1 %vm953_vm7, %v2890_v17  ;;  %v497_v17 = vsel %vm350_vm2, %v493_v53, %v496_v54  ;;  %v762_v51 = vsel %vm632_vm3, %v756_v47, %v761_v48  ;;  %v1197_v53 = vrot.slane %v349_v36, 1 }
  0xbf   : > { %526 = vrot.lane.b32.xlu0 %v497_v17, %s2622_s15  ;;  %v513_v50 = vpop.permute.xlu0 %512  ;;  %791 = vrot.lane.b32.xlu2 %v762_v51, %s2624_s20  ;;  %v1187_v17 = vor.u32 %v1186_v34, %v1182_v46 }
  0xc0   : > { %v809_v54 = vsel %vm793_vm4, %v2745_v5, %v513_v50  ;;  %v1198_v62 = vsel %vm557_vm1, %v1196_v52, %v1197_v53  ;;  %v914_v5 = vshrl.u32 %v348_v60, 16 }
  0xc1   : > { %v1191_v23 = vsel %vm350_vm2, %v1187_v17, %v1190_v44  ;;  %1199 = vrot.lane.b32.xlu1 %v1198_v62, %s2623_s19  ;;  %s2569_s19 = sshll.u32 %s3485_s13, 5 }
  0xc2   : > { %v916_v10 = vrot.slane %v914_v5, 1  ;;  %s3186_s25 = scalar_lea.vmem %s3483_s3, %s2569_s19 }
  0xc3   : > { %v617_v56 = vpop.permute.xlu1 %616 }
  0xc4   : > { %v918_v59 = vor.u32 %v917_v11, %v916_v10 }
  0xc5   : > { %2519 = vmatmul.msk.bf16.gmra.mxu2 %vm953_vm7, %v2968_v1 }
  0xc6   : > { %v919_v18 = vsel %vm632_vm3, %v913_v14, %v918_v59 }
  0xc7   : > { %v515_v16 = vpop.permute.xlu0 %514  ;;  %920 = vrot.lane.b32.xlu2 %v919_v18, %s2624_s20 }
  0xc8   : > { %v811_v6 = vsel %vm793_vm4, %v2759_v25, %v515_v16 }
  0xc9   : > { %2553 = vmatmul.msk.bf16.gmra.mxu3 %vm953_vm7, %v2997_v0 }
  0xcb   : > { %v619_v60 = vpop.permute.xlu1 %618 }
  0xcc   : > { %v842_v13 = vsel %vm824_vm6, %v811_v6, %v619_v60 }
  0xcd   : > { %v3065_v15 = vsel %vm855_vm5, %v842_v13, %v780_v61 }
  0xce   : > { %2457 = vmatmul.msk.bf16.gmra.mxu0 %vm953_vm7, %v2933_v57  ;;  %2485 = vmatmul.msk.bf16.gmra.mxu1 %vm953_vm7, %v2897_v22  ;;  %v901_v22 = vsel %vm350_vm2, %v897_v26, %v900_v27  ;;  %v1207_v26 = vrot.slane %v1188_v42, 2 }
  0xcf   : > { %902 = vrot.lane.b32.xlu0 %v901_v22, %s2622_s15  ;;  %v517_v8 = vpop.permute.xlu0 %516 }
  0xd0   : > { %v1208_v27 = vor.u32 %v1207_v26, %v1206_v24  ;;  %v813_v22 = vsel %vm793_vm4, %v2789_v55, %v517_v8 }
  0xd3   : > { %v621_v63 = vpop.permute.xlu1 %620 }
  0xd4   : > { %v844_v30 = vsel %vm824_vm6, %v813_v22, %v621_v63 }
  0xd5   : > { %2520 = vmatmul.msk.bf16.gmra.mxu2 %vm953_vm7, %v2997_v0  ;;  %v3081_v28 = vsel %vm855_vm5, %v844_v30, %v782_v45 }
  0xd7   : > { %1192 = vrot.lane.b32.xlu0 %v1191_v23, %s2622_s15  ;;  %v519_v33 = vpop.permute.xlu0 %518 }
  0xd8   : > { %v815_v55 = vsel %vm793_vm4, %v2845_v31, %v519_v33 }
  0xd9   : > { %2554 = vmatmul.msk.bf16.gmra.mxu3 %vm953_vm7, %v3025_v29 }
  0xde   : > { %2458 = vmatmul.msk.bf16.gmra.mxu0 %vm953_vm7, %v2968_v1  ;;  %2486 = vmatmul.msk.bf16.gmra.mxu1 %vm953_vm7, %v2933_v57  ;;  %v840_v57 = vsel %vm824_vm6, %v809_v54, %v617_v56  ;;  %v3107_v56 = vld [vmem:[%s3482_s2] ss:$0 sm:$0xff] }
  0xdf   : > { %v871_v4 = vsel %vm855_vm5, %v840_v57, %v778_v3  ;;  %v521_v50 = vpop.permute.xlu0 %520 }
  0xe0   : > { %v817_v36 = vsel %vm793_vm4, %v2862_v58, %v521_v50 }
  0xe5   : > { %2521 = vmatmul.msk.bf16.gmra.mxu2 %vm953_vm7, %v3025_v29 }
  0xe9   : > { %2555 = vmatmul.msk.bf16.gmra.mxu3 %vm953_vm7, %v871_v4 }
  0xeb   : > { %v784_v38 = vpop.permute.xlu2 %783 }
  0xee   : > { %2459 = vmatmul.msk.bf16.gmra.mxu0 %vm953_vm7, %v2997_v0  ;;  %2487 = vmatmul.msk.bf16.gmra.mxu1 %vm953_vm7, %v2968_v1  ;;  %v1203_v1 = vor.u32 %v1202_v21, %v1201_v20 }
  0xf0   : > { %v1209_v25 = vsel %vm632_vm3, %v1203_v1, %v1208_v27 }
  0xf1   : > { %1210 = vrot.lane.b32.xlu2 %v1209_v25, %s2624_s20 }
  0xf5   : > { %2522 = vmatmul.msk.bf16.gmra.mxu2 %vm953_vm7, %v871_v4 }
  0xf9   : > { %2556 = vmatmul.msk.bf16.gmra.mxu3 %vm953_vm7, %v3065_v15 }
  0xfe   : > { %2460 = vmatmul.msk.bf16.gmra.mxu0 %vm953_vm7, %v3025_v29  ;;  %2488 = vmatmul.msk.bf16.gmra.mxu1 %vm953_vm7, %v2997_v0  ;;  %v623_v0 = vpop.permute.xlu1 %622 }
  0xff   : > { %v846_v35 = vsel %vm824_vm6, %v815_v55, %v623_v0  ;;  %v2625_v55 = vmov 0.0  }
 0x100   : > { %v3094_v39 = vsel %vm855_vm5, %v846_v35, %v784_v38  ;;  %v1774_v0 = vrot.slane %v2625_v55, 1  ;;  %v1923_v50 = vrot.slane %v2625_v55, 2 }
 0x101   : > { %v786_v34 = vpop.permute.xlu2 %785 }
 0x104   : > { %v523_v59 = vpop.permute.xlu0 %522 }
 0x105   : > { %2523 = vmatmul.msk.bf16.gmra.mxu2 %vm953_vm7, %v3065_v15  ;;  %v819_v61 = vsel %vm793_vm4, %v2903_v37, %v523_v59 }
 0x106   : > { %v625_v46 = vpop.permute.xlu1 %624 }
 0x107   : > { %v848_v53 = vsel %vm824_vm6, %v817_v36, %v625_v46 }
 0x108   : > { %v3112_v58 = vsel %vm855_vm5, %v848_v53, %v786_v34 }
 0x109   : > { %2557 = vmatmul.msk.bf16.gmra.mxu3 %vm953_vm7, %v3081_v28  ;;  %v788_v24 = vpop.permute.xlu2 %787 }
 0x10e   : > { %2461 = vmatmul.msk.bf16.gmra.mxu0 %vm953_vm7, %v871_v4  ;;  %2489 = vmatmul.msk.bf16.gmra.mxu1 %vm953_vm7, %v3025_v29  ;;  %v627_v19 = vpop.permute.xlu1 %626 }
 0x10f   : > { %v850_v27 = vsel %vm824_vm6, %v819_v61, %v627_v19 }
 0x110   : > { %v3132_v45 = vsel %vm855_vm5, %v850_v27, %v788_v24 }
 0x111   : > { %v790_v19 = vpop.permute.xlu2 %789 }
 0x115   : > { %2524 = vmatmul.msk.bf16.gmra.mxu2 %vm953_vm7, %v3081_v28 }
 0x117   : > { %v525_v53 = vpop.permute.xlu0 %524 }
 0x118   : > { %v1254_v41 = vpop.f32.mrf.mxu2 }
 0x119   : > { %2558 = vmatmul.msk.bf16.gmra.mxu3 %vm953_vm7, %v3094_v39 }
 0x11b   : > { %v995_v47 = vpop.f32.mrf.mxu0  ;;  %v1102_v48 = vpop.f32.mrf.mxu1 }
 0x11c   : > { %v1103_v29 = vadd.f32 %v1102_v48, %v995_v47  ;;  %v1400_v49 = vpop.f32.mrf.mxu3 }
 0x11e   : > { %2462 = vmatmul.msk.bf16.gmra.mxu0 %vm953_vm7, %v3065_v15  ;;  %2490 = vmatmul.msk.bf16.gmra.mxu1 %vm953_vm7, %v871_v4  ;;  %v1334_v31 = vadd.f32 %v1254_v41, %v1103_v29 }
 0x120   : > { %v1256_v51 = vpop.f32.mrf.mxu2  ;;  %v1480_v54 = vadd.f32 %v1400_v49, %v1334_v31  ;;  %v1889_v49 = vmax.f32 %v1774_v0, 0.0 }
 0x122   : > { %v1516_v23 = vadd.f32 %v3107_v56, %v1480_v54 }
 0x123   : > { %v997_v42 = vpop.f32.mrf.mxu0  ;;  %v1104_v52 = vpop.f32.mrf.mxu1 }
 0x124   : > { %v1105_v17 = vadd.f32 %v1104_v52, %v997_v42  ;;  %v1402_v44 = vpop.f32.mrf.mxu3  ;;  %v1548_v9 = vmax.f32 %v1516_v23, 0.0 }
 0x125   : > { %2525 = vmatmul.msk.bf16.gmra.mxu2 %vm953_vm7, %v3094_v39 }
 0x126   : > { %v1335_v62 = vadd.f32 %v1256_v51, %v1105_v17  ;;  %v1612_v6 = vrot.slane %v1548_v9, 7 }
 0x128   : > { %v1481_v57 = vadd.f32 %v1402_v44, %v1335_v62  ;;  %v1259_v3 = vpop.f32.mrf.mxu2  ;;  %v1708_v25 = vsel %vm300_vm0, 0.0, %v1612_v6 }
 0x129   : > { %2559 = vmatmul.msk.bf16.gmra.mxu3 %vm953_vm7, %v3112_v58  ;;  %v1776_v33 = vrot.slane %v1708_v25, 1  ;;  %v1925_v54 = vrot.slane %v1708_v25, 2 }
 0x12a   : > { %v1517_v4 = vadd.f32 %v3107_v56, %v1481_v57 }
 0x12b   : > { %v1000_v5 = vpop.f32.mrf.mxu0  ;;  %v1107_v7 = vpop.f32.mrf.mxu1 }
 0x12c   : > { %v1549_v10 = vmax.f32 %v1517_v4, 0.0  ;;  %v1108_v11 = vadd.f32 %v1107_v7, %v1000_v5  ;;  %v1405_v14 = vpop.f32.mrf.mxu3  ;;  %v2038_v4 = vmax.f32 %v1889_v49, %v1923_v50  ;;  %v821_v5 = vsel %vm793_vm4, %v2946_v12, %v525_v53  ;;  %v629_v7 = vpop.permute.xlu1 %628 }
 0x12d   : > { %v852_v61 = vsel %vm824_vm6, %v821_v5, %v629_v7 }
 0x12e   : > { %v1613_v16 = vrot.slane %v1549_v10, 7  ;;  %v1336_v18 = vadd.f32 %v1259_v3, %v1108_v11  ;;  %2463 = vmatmul.msk.bf16.gmra.mxu0 %vm953_vm7, %v3081_v28  ;;  %2491 = vmatmul.msk.bf16.gmra.mxu1 %vm953_vm7, %v3065_v15 }
 0x130   : > { %v1482_v60 = vadd.f32 %v1405_v14, %v1336_v18  ;;  %v1261_v13 = vpop.f32.mrf.mxu2  ;;  %v1614_v20 = vsel %vm300_vm0, %v1612_v6, %v1613_v16  ;;  %v1724_v22 = vsel %vm300_vm0, %v1613_v16, 0.0 }
 0x131   : > { %v1777_v63 = vrot.slane %v1614_v20, 1  ;;  %v1779_v35 = vrot.slane %v1724_v22, 1  ;;  %v1926_v31 = vrot.slane %v1614_v20, 2  ;;  %v1928_v44 = vrot.slane %v1724_v22, 2 }
 0x132   : > { %v1518_v21 = vadd.f32 %v3107_v56, %v1482_v60 }
 0x133   : > { %v1002_v26 = vpop.f32.mrf.mxu0  ;;  %v1109_v1 = vpop.f32.mrf.mxu1  ;;  %v1778_v47 = vsel %vm557_vm1, %v1776_v33, %v1777_v63  ;;  %v1780_v46 = vsel %vm557_vm1, %v1777_v63, %v1779_v35  ;;  %v1927_v3 = vsel %vm1922_vm8, %v1925_v54, %v1926_v31 }
 0x134   : > { %v1110_v8 = vadd.f32 %v1109_v1, %v1002_v26  ;;  %v1407_v15 = vpop.f32.mrf.mxu3  ;;  %v1550_v30 = vmax.f32 %v1518_v21, 0.0  ;;  %v1890_v34 = vmax.f32 %v1708_v25, %v1778_v47  ;;  %v1891_v57 = vmax.f32 %v1614_v20, %v1780_v46  ;;  %v527_v54 = vpop.permute.xlu0 %526 }
 0x135   : > { %2526 = vmatmul.msk.bf16.gmra.mxu2 %vm953_vm7, %v3112_v58 }
 0x136   : > { %v1337_v37 = vadd.f32 %v1261_v13, %v1110_v8  ;;  %v1615_v48 = vrot.slane %v1550_v30, 7  ;;  %v2039_v9 = vmax.f32 %v1890_v34, %v1927_v3 }
 0x138   : > { %v1483_v38 = vadd.f32 %v1407_v15, %v1337_v37  ;;  %v1264_v41 = vpop.f32.mrf.mxu2  ;;  %v1709_v17 = vsel %vm300_vm0, 0.0, %v1615_v48  ;;  %v2071_v22 = vmax.f32 %v2038_v4, %v2039_v9  ;;  %v3158_v37 = vsel %vm855_vm5, %v852_v61, %v790_v19 }
 0x139   : > { %2560 = vmatmul.msk.bf16.gmra.mxu3 %vm953_vm7, %v3132_v45  ;;  %v1781_v10 = vrot.slane %v1709_v17, 1  ;;  %v1930_v12 = vrot.slane %v1709_v17, 2  ;;  %v823_v9 = vsel %vm793_vm4, %v2975_v43, %v527_v54  ;;  %v792_v43 = vpop.permute.xlu2 %791 }
 0x13a   : > { %v1519_v29 = vadd.f32 %v3107_v56, %v1483_v38 }
 0x13b   : > { %v1005_v51 = vpop.f32.mrf.mxu0  ;;  %v1112_v36 = vpop.f32.mrf.mxu1 }
 0x13c   : > { %v1551_v42 = vmax.f32 %v1519_v29, 0.0  ;;  %v1410_v52 = vpop.f32.mrf.mxu3  ;;  %v1113_v23 = vadd.f32 %v1112_v36, %v1005_v51 }
 0x13e   : > { %v1616_v62 = vrot.slane %v1551_v42, 7  ;;  %2464 = vmatmul.msk.bf16.gmra.mxu0 %vm953_vm7, %v3094_v39  ;;  %2492 = vmatmul.msk.bf16.gmra.mxu1 %vm953_vm7, %v3081_v28  ;;  %v1929_v28 = vsel %vm1922_vm8, %v1926_v31, %v1928_v44  ;;  %v1338_v13 = vadd.f32 %v1264_v41, %v1113_v23 }
 0x13f   : > { %v2040_v20 = vmax.f32 %v1891_v57, %v1929_v28 }
 0x140   : > { %v1617_v11 = vsel %vm300_vm0, %v1615_v48, %v1616_v62  ;;  %v1725_v14 = vsel %vm300_vm0, %v1616_v62, 0.0  ;;  %v1266_v59 = vpop.f32.mrf.mxu2  ;;  %v1484_v0 = vadd.f32 %v1410_v52, %v1338_v13 }
 0x141   : > { %v1782_v16 = vrot.slane %v1617_v11, 1  ;;  %v1784_v18 = vrot.slane %v1725_v14, 1  ;;  %v1931_v6 = vrot.slane %v1617_v11, 2  ;;  %v1933_v60 = vrot.slane %v1725_v14, 2 }
 0x142   : > { %v2072_v38 = vmax.f32 %v2038_v4, %v2040_v20  ;;  %v1520_v31 = vadd.f32 %v3107_v56, %v1484_v0 }
 0x143   : > { %v1783_v21 = vsel %vm557_vm1, %v1781_v10, %v1782_v16  ;;  %v1785_v24 = vsel %vm557_vm1, %v1782_v16, %v1784_v18  ;;  %v1007_v26 = vpop.f32.mrf.mxu0  ;;  %v1114_v1 = vpop.f32.mrf.mxu1  ;;  %v1932_v63 = vsel %vm1922_vm8, %v1930_v12, %v1931_v6  ;;  %v1934_v30 = vsel %vm1922_vm8, %v1931_v6, %v1933_v60 }
 0x144   : > { %v1892_v27 = vmax.f32 %v1709_v17, %v1783_v21  ;;  %v1893_v25 = vmax.f32 %v1617_v11, %v1785_v24  ;;  %v1115_v8 = vadd.f32 %v1114_v1, %v1007_v26  ;;  %v1412_v15 = vpop.f32.mrf.mxu3  ;;  %v1552_v3 = vmax.f32 %v1520_v31, 0.0  ;;  %v631_v18 = vpop.permute.xlu1 %630 }
 0x145   : > { %2527 = vmatmul.msk.bf16.gmra.mxu2 %vm953_vm7, %v3132_v45  ;;  %v854_v20 = vsel %vm824_vm6, %v823_v9, %v631_v18 }
 0x146   : > { %v3160_v33 = vmax.f32 %v1892_v27, %v1932_v63  ;;  %v3162_v55 = vmax.f32 %v1893_v25, %v1934_v30  ;;  %v1339_v35 = vadd.f32 %v1266_v59, %v1115_v8  ;;  %v1618_v60 = vrot.slane %v1552_v3, 7 }
 0x147   : > { %v3199_v8 = vsel %vm855_vm5, %v854_v20, %v792_v43 }
 0x148   : > { %v2087_v41 = vmax.f32 %v2071_v22, %v3160_v33  ;;  %v1485_v47 = vadd.f32 %v1412_v15, %v1339_v35  ;;  %v1269_v48 = vpop.f32.mrf.mxu2  ;;  %v2088_v29 = vmax.f32 %v2072_v38, %v3162_v55  ;;  %v1710_v27 = vsel %vm300_vm0, 0.0, %v1618_v60 }
 0x149   : > { %2561 = vmatmul.msk.bf16.gmra.mxu3 %vm953_vm7, %v3158_v37  ;;  %v1786_v0 = vrot.slane %v1710_v27, 1 }
 0x14a   : > { %v2111_v49 = vrot.slane %v2087_v41, 1  ;;  %v2127_v50 = vrot.slane %v2087_v41, 2  ;;  %v1521_v51 = vadd.f32 %v3107_v56, %v1485_v47  ;;  %v2143_v34 = vrot.slane %v2087_v41, 3 }
 0x14b   : > { %v1010_v36 = vpop.f32.mrf.mxu0  ;;  %v1117_v46 = vpop.f32.mrf.mxu1  ;;  %v2167_v17 = vrot.slane %v2088_v29, 4  ;;  %v2183_v23 = vrot.slane %v2088_v29, 5  ;;  %v2199_v5 = vrot.slane %v2088_v29, 6  ;;  %v2215_v10 = vrot.slane %v2088_v29, 7 }
 0x14c   : > { %v2231_v42 = vsel %vm300_vm0, %v2087_v41, %v2111_v49  ;;  %v1118_v52 = vadd.f32 %v1117_v46, %v1010_v36  ;;  %v1415_v53 = vpop.f32.mrf.mxu3  ;;  %v1553_v62 = vmax.f32 %v1521_v51, 0.0  ;;  %v903_v36 = vpop.permute.xlu0 %902  ;;  %v1935_v46 = vrot.slane %v1710_v27, 2 }
 0x14d   : > { %v2240_v44 = vsel %vm2239_vm9, %v2231_v42, %v2127_v50 }
 0x14e   : > { %v2249_v57 = vsel %vm2248_vm10, %v2240_v44, %v2143_v34  ;;  %v1340_v4 = vadd.f32 %v1269_v48, %v1118_v52  ;;  %2465 = vmatmul.msk.bf16.gmra.mxu0 %vm953_vm7, %v3112_v58  ;;  %2493 = vmatmul.msk.bf16.gmra.mxu1 %vm953_vm7, %v3094_v39  ;;  %v1619_v14 = vrot.slane %v1553_v62, 7  ;;  %v923_v44 = vsel %vm793_vm4, %v3003_v2, %v903_v36  ;;  %v910_v62 = vpop.permute.xlu1 %909 }
 0x14f   : > { %v2258_v7 = vsel %vm2257_vm11, %v2249_v57, %v2167_v17 }
 0x150   : > { %v2267_v11 = vsel %vm2266_vm12, %v2258_v7, %v2183_v23  ;;  %v1486_v59 = vadd.f32 %v1415_v53, %v1340_v4  ;;  %v1271_v16 = vpop.f32.mrf.mxu2  ;;  %v1620_v12 = vsel %vm300_vm0, %v1618_v60, %v1619_v14  ;;  %v1726_v26 = vsel %vm300_vm0, %v1619_v14, 0.0 }
 0x151   : > { %v2275_v6 = vsel %vm1922_vm8, %v2267_v11, %v2199_v5  ;;  %v1787_v15 = vrot.slane %v1620_v12, 1  ;;  %v1789_v22 = vrot.slane %v1726_v26, 1  ;;  %v1936_v47 = vrot.slane %v1620_v12, 2 }
 0x152   : > { %v2283_v39 = vsel %vm557_vm1, %v2275_v6, %v2215_v10  ;;  %v1522_v13 = vadd.f32 %v3107_v56, %v1486_v59  ;;  %v1938_v52 = vrot.slane %v1726_v26, 2  ;;  %v925_v59 = vsel %vm824_vm6, %v923_v44, %v910_v62 }
 0x153   : > { %v2291_v28 = vpack.c.bf16 %v2283_v39, %v2283_v39  ;;  %v1012_v61 = vpop.f32.mrf.mxu0  ;;  %v1119_v19 = vpop.f32.mrf.mxu1  ;;  %v1788_v41 = vsel %vm557_vm1, %v1786_v0, %v1787_v15  ;;  %v1790_v49 = vsel %vm557_vm1, %v1787_v15, %v1789_v22  ;;  %v1937_v17 = vsel %vm1922_vm8, %v1935_v46, %v1936_v47 }
 0x154   : > { %v1120_v21 = vadd.f32 %v1119_v19, %v1012_v61  ;;  %v1417_v24 = vpop.f32.mrf.mxu3  ;;  %v1554_v1 = vmax.f32 %v1522_v13, 0.0  ;;  %v1894_v42 = vmax.f32 %v1710_v27, %v1788_v41  ;;  %v1895_v54 = vmax.f32 %v1620_v12, %v1790_v49 }
 0x155   : > { %2300 = vst.msk [vmem:[%s3186_s25] sm:$0xf] %vm2299_vm13, %v2291_v28  ;;  %2528 = vmatmul.msk.bf16.gmra.mxu2 %vm953_vm7, %v3158_v37 }
 0x156   : > { %v1341_v25 = vadd.f32 %v1271_v16, %v1120_v21  ;;  %v1621_v35 = vrot.slane %v1554_v1, 7  ;;  %v2043_v14 = vmax.f32 %v1894_v42, %v1937_v17  ;;  %v921_v16 = vpop.permute.xlu2 %920 }
 0x158   : > { %v1487_v63 = vadd.f32 %v1417_v24, %v1341_v25  ;;  %v1274_v30 = vpop.f32.mrf.mxu2  ;;  %v1711_v34 = vsel %vm300_vm0, 0.0, %v1621_v35  ;;  %v3225_v24 = vsel %vm855_vm5, %v925_v59, %v921_v16  ;;  %v2073_v26 = vmax.f32 %v3160_v33, %v2043_v14 }
 0x159   : > { %2562 = vmatmul.msk.bf16.gmra.mxu3 %vm953_vm7, %v3199_v8  ;;  %v1791_v23 = vrot.slane %v1711_v34, 1  ;;  %v1940_v2 = vrot.slane %v1711_v34, 2 }
 0x15a   : > { %v1523_v38 = vadd.f32 %v3107_v56, %v1487_v63 }
 0x15b   : > { %v1015_v48 = vpop.f32.mrf.mxu0  ;;  %v1122_v29 = vpop.f32.mrf.mxu1 }
 0x15c   : > { %v1555_v50 = vmax.f32 %v1523_v38, 0.0  ;;  %v1123_v31 = vadd.f32 %v1122_v29, %v1015_v48  ;;  %v1420_v51 = vpop.f32.mrf.mxu3 }
 0x15e   : > { %v1622_v53 = vrot.slane %v1555_v50, 7  ;;  %2466 = vmatmul.msk.bf16.gmra.mxu0 %vm953_vm7, %v3132_v45  ;;  %2494 = vmatmul.msk.bf16.gmra.mxu1 %vm953_vm7, %v3112_v58  ;;  %v1342_v4 = vadd.f32 %v1274_v30, %v1123_v31  ;;  %v1939_v58 = vsel %vm1922_vm8, %v1936_v47, %v1938_v52 }
 0x15f   : > { %v2044_v18 = vmax.f32 %v1895_v54, %v1939_v58 }
 0x160   : > { %v1623_v57 = vsel %vm300_vm0, %v1621_v35, %v1622_v53  ;;  %v1727_v3 = vsel %vm300_vm0, %v1622_v53, 0.0  ;;  %v1276_v5 = vpop.f32.mrf.mxu2  ;;  %v1488_v61 = vadd.f32 %v1420_v51, %v1342_v4  ;;  %v1193_v51 = vpop.permute.xlu0 %1192 }
 0x161   : > { %v1792_v7 = vrot.slane %v1623_v57, 1  ;;  %v1794_v9 = vrot.slane %v1727_v3, 1  ;;  %v1941_v10 = vrot.slane %v1623_v57, 2  ;;  %v1943_v11 = vrot.slane %v1727_v3, 2 }
 0x162   : > { %v2074_v15 = vmax.f32 %v3162_v55, %v2044_v18  ;;  %v1524_v63 = vadd.f32 %v3107_v56, %v1488_v61  ;;  %v1213_v62 = vsel %vm793_vm4, %v3031_v40, %v1193_v51 }
 0x163   : > { %v1793_v6 = vsel %vm557_vm1, %v1791_v23, %v1792_v7  ;;  %v1795_v39 = vsel %vm557_vm1, %v1792_v7, %v1794_v9  ;;  %v1017_v60 = vpop.f32.mrf.mxu0  ;;  %v1124_v43 = vpop.f32.mrf.mxu1  ;;  %v1942_v12 = vsel %vm1922_vm8, %v1940_v2, %v1941_v10  ;;  %v1944_v21 = vsel %vm1922_vm8, %v1941_v10, %v1943_v11 }
 0x164   : > { %v1896_v28 = vmax.f32 %v1711_v34, %v1793_v6  ;;  %v1897_v13 = vmax.f32 %v1623_v57, %v1795_v39  ;;  %v1125_v19 = vadd.f32 %v1124_v43, %v1017_v60  ;;  %v1422_v20 = vpop.f32.mrf.mxu3  ;;  %v1556_v49 = vmax.f32 %v1524_v63, 0.0  ;;  %v1200_v7 = vpop.permute.xlu1 %1199 }
 0x165   : > { %2529 = vmatmul.msk.bf16.gmra.mxu2 %vm953_vm7, %v3199_v8  ;;  %v1211_v11 = vpop.permute.xlu2 %1210  ;;  %v1215_v16 = vsel %vm824_vm6, %v1213_v62, %v1200_v7 }
 0x166   : > { %v3228_v1 = vmax.f32 %v1896_v28, %v1942_v12  ;;  %v3230_v27 = vmax.f32 %v1897_v13, %v1944_v21  ;;  %v1343_v25 = vadd.f32 %v1276_v5, %v1125_v19  ;;  %v1624_v3 = vrot.slane %v1556_v49, 7 }
 0x167   : > { %v1217_v13 = vsel %vm855_vm5, %v1215_v16, %v1211_v11 }
 0x168   : > { %v2089_v22 = vmax.f32 %v2073_v26, %v3228_v1  ;;  %v1489_v30 = vadd.f32 %v1422_v20, %v1343_v25  ;;  %v1279_v0 = vpop.f32.mrf.mxu2  ;;  %v2090_v35 = vmax.f32 %v2074_v15, %v3230_v27  ;;  %v1712_v18 = vsel %vm300_vm0, 0.0, %v1624_v3 }
 0x169   : > { %2563 = vmatmul.msk.bf16.gmra.mxu3 %vm953_vm7, %v3225_v24  ;;  %v1796_v61 = vrot.slane %v1712_v18, 1 }
 0x16a   : > { %v2112_v38 = vrot.slane %v2089_v22, 1  ;;  %v2128_v33 = vrot.slane %v2089_v22, 2  ;;  %v1525_v41 = vadd.f32 %v3107_v56, %v1489_v30  ;;  %v2144_v29 = vrot.slane %v2089_v22, 3 }
 0x16b   : > { %v1020_v47 = vpop.f32.mrf.mxu0  ;;  %v1127_v48 = vpop.f32.mrf.mxu1  ;;  %v2168_v36 = vrot.slane %v2090_v35, 4  ;;  %v2184_v42 = vrot.slane %v2090_v35, 5  ;;  %v2200_v54 = vrot.slane %v2090_v35, 6  ;;  %v2216_v23 = vrot.slane %v2090_v35, 7 }
 0x16c   : > { %v2232_v55 = vsel %vm300_vm0, %v2089_v22, %v2112_v38  ;;  %v1128_v50 = vadd.f32 %v1127_v48, %v1020_v47  ;;  %v1425_v31 = vpop.f32.mrf.mxu3  ;;  %v1557_v34 = vmax.f32 %v1525_v41, 0.0 }
 0x16d   : > { %v2241_v46 = vsel %vm2239_vm9, %v2232_v55, %v2128_v33  ;;  %v1945_v33 = vrot.slane %v1712_v18, 2 }
 0x16e   : > { %v2250_v52 = vsel %vm2248_vm10, %v2241_v46, %v2144_v29  ;;  %v1344_v53 = vadd.f32 %v1279_v0, %v1128_v50  ;;  %2467 = vmatmul.msk.bf16.gmra.mxu0 %vm953_vm7, %v3158_v37  ;;  %2495 = vmatmul.msk.bf16.gmra.mxu1 %vm953_vm7, %v3132_v45  ;;  %v1625_v44 = vrot.slane %v1557_v34, 7 }
 0x16f   : > { %v2259_v17 = vsel %vm2257_vm11, %v2250_v52, %v2168_v36 }
 0x170   : > { %v2268_v57 = vsel %vm2266_vm12, %v2259_v17, %v2184_v42  ;;  %v1490_v4 = vadd.f32 %v1425_v31, %v1344_v53  ;;  %v1281_v5 = vpop.f32.mrf.mxu2  ;;  %v1626_v45 = vsel %vm300_vm0, %v1624_v3, %v1625_v44  ;;  %v1728_v39 = vsel %vm300_vm0, %v1625_v44, 0.0 }
 0x171   : > { %v2276_v9 = vsel %vm1922_vm8, %v2268_v57, %v2200_v54  ;;  %v1797_v60 = vrot.slane %v1626_v45, 1  ;;  %v1799_v19 = vrot.slane %v1728_v39, 1  ;;  %v1946_v15 = vrot.slane %v1626_v45, 2 }
 0x172   : > { %v2284_v10 = vsel %vm557_vm1, %v2276_v9, %v2216_v23  ;;  %v1526_v14 = vadd.f32 %v3107_v56, %v1490_v4  ;;  %v1948_v47 = vrot.slane %v1728_v39, 2 }
 0x173   : > { %v2292_v58 = vpack.c.bf16 %v2284_v10, %v2284_v10  ;;  %v1022_v59 = vpop.f32.mrf.mxu0  ;;  %v1129_v40 = vpop.f32.mrf.mxu1  ;;  %v1798_v21 = vsel %vm557_vm1, %v1796_v61, %v1797_v60  ;;  %v1800_v30 = vsel %vm557_vm1, %v1797_v60, %v1799_v19  ;;  %v1947_v49 = vsel %vm1922_vm8, %v1945_v33, %v1946_v15 }
 0x174   : > { %v1130_v2 = vadd.f32 %v1129_v40, %v1022_v59  ;;  %v1427_v6 = vpop.f32.mrf.mxu3  ;;  %v1558_v43 = vmax.f32 %v1526_v14, 0.0  ;;  %v1898_v0 = vmax.f32 %v1712_v18, %v1798_v21  ;;  %v1899_v55 = vmax.f32 %v1626_v45, %v1800_v30 }
 0x175   : > { %2301 = vst.msk [vmem:[%s3186_s25 + $0x4] sm:$0xf] %vm2299_vm13, %v2292_v58  ;;  %2530 = vmatmul.msk.bf16.gmra.mxu2 %vm953_vm7, %v3225_v24  ;;  %v1949_v54 = vsel %vm1922_vm8, %v1946_v15, %v1948_v47 }
 0x176   : > { %v1345_v28 = vadd.f32 %v1281_v5, %v1130_v2  ;;  %v1627_v26 = vrot.slane %v1558_v43, 7  ;;  %v2047_v50 = vmax.f32 %v1898_v0, %v1947_v49  ;;  %v2048_v44 = vmax.f32 %v1899_v55, %v1949_v54 }
 0x178   : > { %v1491_v20 = vadd.f32 %v1427_v6, %v1345_v28  ;;  %v1284_v12 = vpop.f32.mrf.mxu2  ;;  %v1713_v41 = vsel %vm300_vm0, 0.0, %v1627_v26  ;;  %v2075_v10 = vmax.f32 %v3228_v1, %v2047_v50  ;;  %v2076_v16 = vmax.f32 %v3230_v27, %v2048_v44 }
 0x179   : > { %2564 = vmatmul.msk.bf16.gmra.mxu3 %vm953_vm7, %v1217_v13  ;;  %v1801_v31 = vrot.slane %v1713_v41, 1  ;;  %v1950_v62 = vrot.slane %v1713_v41, 2 }
 0x17a   : > { %v1527_v25 = vadd.f32 %v3107_v56, %v1491_v20 }
 0x17b   : > { %v1025_v22 = vpop.f32.mrf.mxu0  ;;  %v1132_v63 = vpop.f32.mrf.mxu1 }
 0x17c   : > { %v1559_v35 = vmax.f32 %v1527_v25, 0.0  ;;  %v1430_v38 = vpop.f32.mrf.mxu3  ;;  %v1133_v29 = vadd.f32 %v1132_v63, %v1025_v22 }
 0x17e   : > { %v1628_v48 = vrot.slane %v1559_v35, 7  ;;  %2468 = vmatmul.msk.bf16.gmra.mxu0 %vm953_vm7, %v3199_v8  ;;  %2496 = vmatmul.msk.bf16.gmra.mxu1 %vm953_vm7, %v3158_v37  ;;  %v1346_v17 = vadd.f32 %v1284_v12, %v1133_v29 }
 0x180   : > { %v1629_v51 = vsel %vm300_vm0, %v1627_v26, %v1628_v48  ;;  %v1729_v36 = vsel %vm300_vm0, %v1628_v48, 0.0  ;;  %v1286_v46 = vpop.f32.mrf.mxu2  ;;  %v1492_v59 = vadd.f32 %v1430_v38, %v1346_v17 }
 0x181   : > { %v1802_v34 = vrot.slane %v1629_v51, 1  ;;  %v1804_v42 = vrot.slane %v1729_v36, 1  ;;  %v1951_v52 = vrot.slane %v1629_v51, 2  ;;  %v1953_v53 = vrot.slane %v1729_v36, 2 }
 0x182   : > { %v1528_v43 = vadd.f32 %v3107_v56, %v1492_v59 }
 0x183   : > { %v1803_v37 = vsel %vm557_vm1, %v1801_v31, %v1802_v34  ;;  %v1805_v23 = vsel %vm557_vm1, %v1802_v34, %v1804_v42  ;;  %v1027_v57 = vpop.f32.mrf.mxu0  ;;  %v1134_v3 = vpop.f32.mrf.mxu1  ;;  %v1952_v45 = vsel %vm1922_vm8, %v1950_v62, %v1951_v52  ;;  %v1954_v11 = vsel %vm1922_vm8, %v1951_v52, %v1953_v53 }
 0x184   : > { %v1900_v4 = vmax.f32 %v1713_v41, %v1803_v37  ;;  %v1901_v5 = vmax.f32 %v1629_v51, %v1805_v23  ;;  %v1135_v7 = vadd.f32 %v1134_v3, %v1027_v57  ;;  %v1432_v9 = vpop.f32.mrf.mxu3  ;;  %v1560_v22 = vmax.f32 %v1528_v43, 0.0 }
 0x185   : > { %2531 = vmatmul.msk.bf16.gmra.mxu2 %vm953_vm7, %v1217_v13 }
 0x186   : > { %v3281_v58 = vmax.f32 %v1900_v4, %v1952_v45  ;;  %v3283_v14 = vmax.f32 %v1901_v5, %v1954_v11  ;;  %v1347_v40 = vadd.f32 %v1286_v46, %v1135_v7  ;;  %v1630_v55 = vrot.slane %v1560_v22, 7 }
 0x188   : > { %v2091_v18 = vmax.f32 %v2075_v10, %v3281_v58  ;;  %v1493_v2 = vadd.f32 %v1432_v9, %v1347_v40  ;;  %v1289_v6 = vpop.f32.mrf.mxu2  ;;  %v2092_v1 = vmax.f32 %v2076_v16, %v3283_v14  ;;  %v1714_v42 = vsel %vm300_vm0, 0.0, %v1630_v55 }
 0x189   : > { %2565 = vmatmul.msk.bf16.gmra.mxu3 %vm953_vm7, %v2908_v32  ;;  %v1806_v62 = vrot.slane %v1714_v42, 1  ;;  %v1955_v11 = vrot.slane %v1714_v42, 2 }
 0x18a   : > { %v2113_v39 = vrot.slane %v2091_v18, 1  ;;  %v2129_v60 = vrot.slane %v2091_v18, 2  ;;  %v1529_v28 = vadd.f32 %v3107_v56, %v1493_v2  ;;  %v2145_v19 = vrot.slane %v2091_v18, 3 }
 0x18b   : > { %v1030_v13 = vpop.f32.mrf.mxu0  ;;  %v1137_v61 = vpop.f32.mrf.mxu1  ;;  %v2169_v21 = vrot.slane %v2092_v1, 4  ;;  %v2185_v15 = vrot.slane %v2092_v1, 5  ;;  %v2201_v30 = vrot.slane %v2092_v1, 6  ;;  %v2217_v35 = vrot.slane %v2092_v1, 7 }
 0x18c   : > { %v2233_v27 = vsel %vm300_vm0, %v2091_v18, %v2113_v39  ;;  %v1138_v20 = vadd.f32 %v1137_v61, %v1030_v13  ;;  %v1435_v12 = vpop.f32.mrf.mxu3  ;;  %v1561_v25 = vmax.f32 %v1529_v28, 0.0 }
 0x18d   : > { %v2242_v26 = vsel %vm2239_vm9, %v2233_v27, %v2129_v60 }
 0x18e   : > { %v2251_v32 = vsel %vm2248_vm10, %v2242_v26, %v2145_v19  ;;  %v1348_v63 = vadd.f32 %v1289_v6, %v1138_v20  ;;  %2469 = vmatmul.msk.bf16.gmra.mxu0 %vm953_vm7, %v3225_v24  ;;  %2497 = vmatmul.msk.bf16.gmra.mxu1 %vm953_vm7, %v3199_v8  ;;  %v1631_v33 = vrot.slane %v1561_v25, 7 }
 0x18f   : > { %v2260_v0 = vsel %vm2257_vm11, %v2251_v32, %v2169_v21 }
 0x190   : > { %v2269_v38 = vsel %vm2266_vm12, %v2260_v0, %v2185_v15  ;;  %v1494_v41 = vadd.f32 %v1435_v12, %v1348_v63  ;;  %v1291_v47 = vpop.f32.mrf.mxu2  ;;  %v1632_v31 = vsel %vm300_vm0, %v1630_v55, %v1631_v33  ;;  %v1730_v46 = vsel %vm300_vm0, %v1631_v33, 0.0 }
 0x191   : > { %v2277_v48 = vsel %vm1922_vm8, %v2269_v38, %v2201_v30  ;;  %v1807_v53 = vrot.slane %v1632_v31, 1  ;;  %v1809_v54 = vrot.slane %v1730_v46, 1  ;;  %v1956_v3 = vrot.slane %v1632_v31, 2 }
 0x192   : > { %v2285_v29 = vsel %vm557_vm1, %v2277_v48, %v2217_v35  ;;  %v1530_v24 = vadd.f32 %v3107_v56, %v1494_v41  ;;  %v1958_v16 = vrot.slane %v1730_v46, 2 }
 0x193   : > { %v2293_v49 = vpack.c.bf16 %v2285_v29, %v2285_v29  ;;  %v1032_v50 = vpop.f32.mrf.mxu0  ;;  %v1139_v8 = vpop.f32.mrf.mxu1  ;;  %v1808_v57 = vsel %vm557_vm1, %v1806_v62, %v1807_v53  ;;  %v1810_v7 = vsel %vm557_vm1, %v1807_v53, %v1809_v54  ;;  %v1957_v6 = vsel %vm1922_vm8, %v1955_v11, %v1956_v3 }
 0x194   : > { %v1140_v51 = vadd.f32 %v1139_v8, %v1032_v50  ;;  %v1437_v36 = vpop.f32.mrf.mxu3  ;;  %v1562_v34 = vmax.f32 %v1530_v24, 0.0  ;;  %v1902_v40 = vmax.f32 %v1714_v42, %v1808_v57  ;;  %v1903_v2 = vmax.f32 %v1632_v31, %v1810_v7 }
 0x195   : > { %2302 = vst.msk [vmem:[%s3186_s25 + $0x8] sm:$0xf] %vm2299_vm13, %v2293_v49  ;;  %v1959_v20 = vsel %vm1922_vm8, %v1956_v3, %v1958_v16 }
 0x196   : > { %v1349_v52 = vadd.f32 %v1291_v47, %v1140_v51  ;;  %v1633_v37 = vrot.slane %v1562_v34, 7  ;;  %v2051_v12 = vmax.f32 %v1902_v40, %v1957_v6  ;;  %v2052_v21 = vmax.f32 %v1903_v2, %v1959_v20 }
 0x198   : > { %v1495_v17 = vadd.f32 %v1437_v36, %v1349_v52  ;;  %v1294_v44 = vpop.f32.mrf.mxu2  ;;  %v1715_v59 = vsel %vm300_vm0, 0.0, %v1633_v37  ;;  %v2077_v47 = vmax.f32 %v3281_v58, %v2051_v12  ;;  %v2078_v49 = vmax.f32 %v3283_v14, %v2052_v21 }
 0x199   : > { %v1811_v1 = vrot.slane %v1715_v59, 1  ;;  %v1960_v26 = vrot.slane %v1715_v59, 2 }
 0x19a   : > { %v1531_v23 = vadd.f32 %v3107_v56, %v1495_v17 }
 0x19b   : > { %v1035_v4 = vpop.f32.mrf.mxu0  ;;  %v1142_v5 = vpop.f32.mrf.mxu1 }
 0x19c   : > { %v1563_v9 = vmax.f32 %v1531_v23, 0.0  ;;  %v1143_v10 = vadd.f32 %v1142_v5, %v1035_v4  ;;  %v1440_v45 = vpop.f32.mrf.mxu3 }
 0x19e   : > { %v1634_v18 = vrot.slane %v1563_v9, 7  ;;  %v1350_v43 = vadd.f32 %v1294_v44, %v1143_v10 }
 0x1a0   : > { %v1635_v39 = vsel %vm300_vm0, %v1633_v37, %v1634_v18  ;;  %v1731_v60 = vsel %vm300_vm0, %v1634_v18, 0.0  ;;  %v1296_v28 = vpop.f32.mrf.mxu2  ;;  %v1496_v0 = vadd.f32 %v1440_v45, %v1350_v43 }
 0x1a1   : > { %v1812_v13 = vrot.slane %v1635_v39, 1  ;;  %v1814_v61 = vrot.slane %v1731_v60, 1  ;;  %v1961_v19 = vrot.slane %v1635_v39, 2  ;;  %v1963_v27 = vrot.slane %v1731_v60, 2 }
 0x1a2   : > { %v1532_v50 = vadd.f32 %v3107_v56, %v1496_v0 }
 0x1a3   : > { %v1813_v25 = vsel %vm557_vm1, %v1811_v1, %v1812_v13  ;;  %v1815_v15 = vsel %vm557_vm1, %v1812_v13, %v1814_v61  ;;  %v1037_v32 = vpop.f32.mrf.mxu0  ;;  %v1144_v22 = vpop.f32.mrf.mxu1  ;;  %v1962_v33 = vsel %vm1922_vm8, %v1960_v26, %v1961_v19  ;;  %v1964_v41 = vsel %vm1922_vm8, %v1961_v19, %v1963_v27 }
 0x1a4   : > { %v1904_v63 = vmax.f32 %v1715_v59, %v1813_v25  ;;  %v1905_v30 = vmax.f32 %v1635_v39, %v1815_v15  ;;  %v1145_v35 = vadd.f32 %v1144_v22, %v1037_v32  ;;  %v1442_v38 = vpop.f32.mrf.mxu3  ;;  %v1564_v54 = vmax.f32 %v1532_v50, 0.0 }
 0x1a6   : > { %v3322_v48 = vmax.f32 %v1904_v63, %v1962_v33  ;;  %v3324_v29 = vmax.f32 %v1905_v30, %v1964_v41  ;;  %v1351_v55 = vadd.f32 %v1296_v28, %v1145_v35  ;;  %v1636_v45 = vrot.slane %v1564_v54, 7 }
 0x1a8   : > { %v2093_v24 = vmax.f32 %v2077_v47, %v3322_v48  ;;  %v1497_v8 = vadd.f32 %v1442_v38, %v1351_v55  ;;  %v1299_v31 = vpop.f32.mrf.mxu2  ;;  %v2094_v51 = vmax.f32 %v2078_v49, %v3324_v29  ;;  %v1716_v60 = vsel %vm300_vm0, 0.0, %v1636_v45 }
 0x1a9   : > { %v1816_v20 = vrot.slane %v1716_v60, 1  ;;  %v1965_v41 = vrot.slane %v1716_v60, 2 }
 0x1aa   : > { %v2114_v36 = vrot.slane %v2093_v24, 1  ;;  %v2130_v46 = vrot.slane %v2093_v24, 2  ;;  %v1533_v34 = vadd.f32 %v3107_v56, %v1497_v8  ;;  %v2146_v52 = vrot.slane %v2093_v24, 3 }
 0x1ab   : > { %v1040_v58 = vpop.f32.mrf.mxu0  ;;  %v1147_v42 = vpop.f32.mrf.mxu1  ;;  %v2170_v44 = vrot.slane %v2094_v51, 4  ;;  %v2186_v23 = vrot.slane %v2094_v51, 5  ;;  %v2202_v4 = vrot.slane %v2094_v51, 6  ;;  %v2218_v9 = vrot.slane %v2094_v51, 7 }
 0x1ac   : > { %v2234_v53 = vsel %vm300_vm0, %v2093_v24, %v2114_v36  ;;  %v1148_v17 = vadd.f32 %v1147_v42, %v1040_v58  ;;  %v1445_v14 = vpop.f32.mrf.mxu3  ;;  %v1565_v37 = vmax.f32 %v1533_v34, 0.0 }
 0x1ad   : > { %v2243_v62 = vsel %vm2239_vm9, %v2234_v53, %v2130_v46 }
 0x1ae   : > { %v2252_v57 = vsel %vm2248_vm10, %v2243_v62, %v2146_v52  ;;  %v1352_v3 = vadd.f32 %v1299_v31, %v1148_v17  ;;  %v1637_v7 = vrot.slane %v1565_v37, 7 }
 0x1af   : > { %v2261_v5 = vsel %vm2257_vm11, %v2252_v57, %v2170_v44 }
 0x1b0   : > { %v2270_v10 = vsel %vm2266_vm12, %v2261_v5, %v2186_v23  ;;  %v1498_v11 = vadd.f32 %v1445_v14, %v1352_v3  ;;  %v1301_v59 = vpop.f32.mrf.mxu2  ;;  %v1638_v18 = vsel %vm300_vm0, %v1636_v45, %v1637_v7  ;;  %v1732_v13 = vsel %vm300_vm0, %v1637_v7, 0.0 }
 0x1b1   : > { %v2278_v40 = vsel %vm1922_vm8, %v2270_v10, %v2202_v4  ;;  %v1817_v61 = vrot.slane %v1638_v18, 1  ;;  %v1819_v12 = vrot.slane %v1732_v13, 1  ;;  %v1966_v22 = vrot.slane %v1638_v18, 2 }
 0x1b2   : > { %v2286_v16 = vsel %vm557_vm1, %v2278_v40, %v2218_v9  ;;  %v1534_v6 = vadd.f32 %v3107_v56, %v1498_v11  ;;  %v1968_v55 = vrot.slane %v1732_v13, 2 }
 0x1b3   : > { %v2294_v2 = vpack.c.bf16 %v2286_v16, %v2286_v16  ;;  %v1042_v1 = vpop.f32.mrf.mxu0  ;;  %v1149_v39 = vpop.f32.mrf.mxu1  ;;  %v1818_v25 = vsel %vm557_vm1, %v1816_v20, %v1817_v61  ;;  %v1820_v0 = vsel %vm557_vm1, %v1817_v61, %v1819_v12  ;;  %v1967_v8 = vsel %vm1922_vm8, %v1965_v41, %v1966_v22 }
 0x1b4   : > { %v1150_v43 = vadd.f32 %v1149_v39, %v1042_v1  ;;  %v1447_v28 = vpop.f32.mrf.mxu3  ;;  %v1566_v19 = vmax.f32 %v1534_v6, 0.0  ;;  %v1906_v35 = vmax.f32 %v1716_v60, %v1818_v25  ;;  %v1907_v50 = vmax.f32 %v1638_v18, %v1820_v0  ;;  %v3367_v60 = vld [vmem:[%s3482_s2] ss:$0 sm:$0xff] }
 0x1b5   : > { %2303 = vst.msk [vmem:[%s3186_s25 + $0xc] sm:$0xf] %vm2299_vm13, %v2294_v2  ;;  %v1969_v53 = vsel %vm1922_vm8, %v1966_v22, %v1968_v55 }
 0x1b6   : > { %v1353_v27 = vadd.f32 %v1301_v59, %v1150_v43  ;;  %v1639_v15 = vrot.slane %v1566_v19, 7  ;;  %v2055_v31 = vmax.f32 %v1906_v35, %v1967_v8  ;;  %v2056_v17 = vmax.f32 %v1907_v50, %v1969_v53 }
 0x1b8   : > { %v1499_v21 = vadd.f32 %v1447_v28, %v1353_v27  ;;  %v1304_v26 = vpop.f32.mrf.mxu2  ;;  %v1717_v47 = vsel %vm300_vm0, 0.0, %v1639_v15  ;;  %v2079_v7 = vmax.f32 %v3322_v48, %v2055_v31  ;;  %v2080_v16 = vmax.f32 %v3324_v29, %v2056_v17 }
 0x1b9   : > { %v1821_v51 = vrot.slane %v1717_v47, 1  ;;  %v1970_v14 = vrot.slane %v1717_v47, 2 }
 0x1ba   : > { %v1535_v32 = vadd.f32 %v3107_v56, %v1499_v21 }
 0x1bb   : > { %v1045_v63 = vpop.f32.mrf.mxu0  ;;  %v1152_v30 = vpop.f32.mrf.mxu1 }
 0x1bc   : > { %v1567_v38 = vmax.f32 %v1535_v32, 0.0  ;;  %v1450_v33 = vpop.f32.mrf.mxu3  ;;  %v1153_v24 = vadd.f32 %v1152_v30, %v1045_v63 }
 0x1be   : > { %v1640_v49 = vrot.slane %v1567_v38, 7  ;;  %v1354_v54 = vadd.f32 %v1304_v26, %v1153_v24 }
 0x1c0   : > { %v1641_v56 = vsel %vm300_vm0, %v1639_v15, %v1640_v49  ;;  %v1733_v36 = vsel %vm300_vm0, %v1640_v49, 0.0  ;;  %v1306_v46 = vpop.f32.mrf.mxu2  ;;  %v1500_v59 = vadd.f32 %v1450_v33, %v1354_v54 }
 0x1c1   : > { %v1822_v34 = vrot.slane %v1641_v56, 1  ;;  %v1824_v58 = vrot.slane %v1733_v36, 1  ;;  %v1971_v42 = vrot.slane %v1641_v56, 2  ;;  %v1973_v52 = vrot.slane %v1733_v36, 2 }
 0x1c2   : > { %v1536_v43 = vadd.f32 %v3367_v60, %v1500_v59 }
 0x1c3   : > { %v1823_v44 = vsel %vm557_vm1, %v1821_v51, %v1822_v34  ;;  %v1825_v62 = vsel %vm557_vm1, %v1822_v34, %v1824_v58  ;;  %v1047_v37 = vpop.f32.mrf.mxu0  ;;  %v1154_v23 = vpop.f32.mrf.mxu1  ;;  %v1972_v9 = vsel %vm1922_vm8, %v1970_v14, %v1971_v42  ;;  %v1974_v10 = vsel %vm1922_vm8, %v1971_v42, %v1973_v52 }
 0x1c4   : > { %v1908_v57 = vmax.f32 %v1717_v47, %v1823_v44  ;;  %v1909_v3 = vmax.f32 %v1641_v56, %v1825_v62  ;;  %v1155_v4 = vadd.f32 %v1154_v23, %v1047_v37  ;;  %v1452_v5 = vpop.f32.mrf.mxu3  ;;  %v1568_v32 = vmax.f32 %v1536_v43, 0.0 }
 0x1c6   : > { %v3357_v45 = vmax.f32 %v1908_v57, %v1972_v9  ;;  %v3359_v11 = vmax.f32 %v1909_v3, %v1974_v10  ;;  %v1355_v40 = vadd.f32 %v1306_v46, %v1155_v4  ;;  %v1642_v49 = vrot.slane %v1568_v32, 7 }
 0x1c8   : > { %v2095_v18 = vmax.f32 %v2079_v7, %v3357_v45  ;;  %v1501_v2 = vadd.f32 %v1452_v5, %v1355_v40  ;;  %v1309_v6 = vpop.f32.mrf.mxu2  ;;  %v2096_v1 = vmax.f32 %v2080_v16, %v3359_v11  ;;  %v1718_v58 = vsel %vm300_vm0, 0.0, %v1642_v49 }
 0x1c9   : > { %v1826_v14 = vrot.slane %v1718_v58, 1  ;;  %v1975_v10 = vrot.slane %v1718_v58, 2 }
 0x1ca   : > { %v2115_v39 = vrot.slane %v2095_v18, 1  ;;  %v2131_v48 = vrot.slane %v2095_v18, 2  ;;  %v1537_v28 = vadd.f32 %v3367_v60, %v1501_v2  ;;  %v2147_v29 = vrot.slane %v2095_v18, 3 }
 0x1cb   : > { %v1050_v13 = vpop.f32.mrf.mxu0  ;;  %v1157_v61 = vpop.f32.mrf.mxu1  ;;  %v2171_v12 = vrot.slane %v2096_v1, 4  ;;  %v2187_v25 = vrot.slane %v2096_v1, 5  ;;  %v2203_v63 = vrot.slane %v2096_v1, 6  ;;  %v2219_v0 = vrot.slane %v2096_v1, 7 }
 0x1cc   : > { %v2235_v19 = vsel %vm300_vm0, %v2095_v18, %v2115_v39  ;;  %v1158_v27 = vadd.f32 %v1157_v61, %v1050_v13  ;;  %v1455_v20 = vpop.f32.mrf.mxu3  ;;  %v1569_v26 = vmax.f32 %v1537_v28, 0.0 }
 0x1cd   : > { %v2244_v21 = vsel %vm2239_vm9, %v2235_v19, %v2131_v48 }
 0x1ce   : > { %v2253_v15 = vsel %vm2248_vm10, %v2244_v21, %v2147_v29  ;;  %v1356_v22 = vadd.f32 %v1309_v6, %v1158_v27  ;;  %v1643_v38 = vrot.slane %v1569_v26, 7 }
 0x1cf   : > { %v2262_v30 = vsel %vm2257_vm11, %v2253_v15, %v2171_v12 }
 0x1d0   : > { %v2271_v35 = vsel %vm2266_vm12, %v2262_v30, %v2187_v25  ;;  %v1502_v33 = vadd.f32 %v1455_v20, %v1356_v22  ;;  %v1311_v41 = vpop.f32.mrf.mxu2  ;;  %v1644_v51 = vsel %vm300_vm0, %v1642_v49, %v1643_v38  ;;  %v1734_v46 = vsel %vm300_vm0, %v1643_v38, 0.0 }
 0x1d1   : > { %v2279_v47 = vsel %vm1922_vm8, %v2271_v35, %v2203_v63  ;;  %v1827_v52 = vrot.slane %v1644_v51, 1  ;;  %v1829_v53 = vrot.slane %v1734_v46, 1  ;;  %v1976_v23 = vrot.slane %v1644_v51, 2 }
 0x1d2   : > { %v2287_v55 = vsel %vm557_vm1, %v2279_v47, %v2219_v0  ;;  %v1538_v50 = vadd.f32 %v3367_v60, %v1502_v33  ;;  %v1978_v16 = vrot.slane %v1734_v46, 2 }
 0x1d3   : > { %v2295_v24 = vpack.c.bf16 %v2287_v55, %v2287_v55  ;;  %v1052_v8 = vpop.f32.mrf.mxu0  ;;  %v1159_v31 = vpop.f32.mrf.mxu1  ;;  %v1828_v37 = vsel %vm557_vm1, %v1826_v14, %v1827_v52  ;;  %v1830_v4 = vsel %vm557_vm1, %v1827_v52, %v1829_v53  ;;  %v1977_v6 = vsel %vm1922_vm8, %v1975_v10, %v1976_v23 }
 0x1d4   : > { %v1160_v56 = vadd.f32 %v1159_v31, %v1052_v8  ;;  %v1457_v36 = vpop.f32.mrf.mxu3  ;;  %v1570_v34 = vmax.f32 %v1538_v50, 0.0  ;;  %v1910_v40 = vmax.f32 %v1718_v58, %v1828_v37  ;;  %v1911_v2 = vmax.f32 %v1644_v51, %v1830_v4 }
 0x1d5   : > { %2304 = vst.msk [vmem:[%s3186_s25 + $0x10] sm:$0xf] %vm2299_vm13, %v2295_v24  ;;  %v1979_v27 = vsel %vm1922_vm8, %v1976_v23, %v1978_v16 }
 0x1d6   : > { %v1357_v42 = vadd.f32 %v1311_v41, %v1160_v56  ;;  %v1645_v44 = vrot.slane %v1570_v34, 7  ;;  %v2059_v20 = vmax.f32 %v1910_v40, %v1977_v6  ;;  %v2060_v12 = vmax.f32 %v1911_v2, %v1979_v27 }
 0x1d8   : > { %v1503_v54 = vadd.f32 %v1457_v36, %v1357_v42  ;;  %v1314_v17 = vpop.f32.mrf.mxu2  ;;  %v1719_v59 = vsel %vm300_vm0, 0.0, %v1645_v44  ;;  %v2081_v41 = vmax.f32 %v3357_v45, %v2059_v20  ;;  %v2082_v24 = vmax.f32 %v3359_v11, %v2060_v12 }
 0x1d9   : > { %v1831_v1 = vrot.slane %v1719_v59, 1  ;;  %v1980_v21 = vrot.slane %v1719_v59, 2 }
 0x1da   : > { %v1539_v62 = vadd.f32 %v3367_v60, %v1503_v54 }
 0x1db   : > { %v1055_v57 = vpop.f32.mrf.mxu0  ;;  %v1162_v3 = vpop.f32.mrf.mxu1 }
 0x1dc   : > { %v1571_v5 = vmax.f32 %v1539_v62, 0.0  ;;  %v1163_v7 = vadd.f32 %v1162_v3, %v1055_v57  ;;  %v1460_v9 = vpop.f32.mrf.mxu3 }
 0x1de   : > { %v1646_v18 = vrot.slane %v1571_v5, 7  ;;  %v1358_v43 = vadd.f32 %v1314_v17, %v1163_v7 }
 0x1e0   : > { %v1647_v39 = vsel %vm300_vm0, %v1645_v44, %v1646_v18  ;;  %v1735_v48 = vsel %vm300_vm0, %v1646_v18, 0.0  ;;  %v1316_v28 = vpop.f32.mrf.mxu2  ;;  %v1504_v30 = vadd.f32 %v1460_v9, %v1358_v43 }
 0x1e1   : > { %v1832_v13 = vrot.slane %v1647_v39, 1  ;;  %v1834_v61 = vrot.slane %v1735_v48, 1  ;;  %v1981_v29 = vrot.slane %v1647_v39, 2  ;;  %v1983_v19 = vrot.slane %v1735_v48, 2 }
 0x1e2   : > { %v1540_v8 = vadd.f32 %v3367_v60, %v1504_v30 }
 0x1e3   : > { %v1833_v26 = vsel %vm557_vm1, %v1831_v1, %v1832_v13  ;;  %v1835_v25 = vsel %vm557_vm1, %v1832_v13, %v1834_v61  ;;  %v1057_v15 = vpop.f32.mrf.mxu0  ;;  %v1164_v32 = vpop.f32.mrf.mxu1  ;;  %v1982_v38 = vsel %vm1922_vm8, %v1980_v21, %v1981_v29  ;;  %v1984_v33 = vsel %vm1922_vm8, %v1981_v29, %v1983_v19 }
 0x1e4   : > { %v1912_v22 = vmax.f32 %v1719_v59, %v1833_v26  ;;  %v1913_v63 = vmax.f32 %v1647_v39, %v1835_v25  ;;  %v1165_v0 = vadd.f32 %v1164_v32, %v1057_v15  ;;  %v1462_v35 = vpop.f32.mrf.mxu3  ;;  %v1572_v53 = vmax.f32 %v1540_v8, 0.0 }
 0x1e6   : > { %v3397_v47 = vmax.f32 %v1912_v22, %v1982_v38  ;;  %v3399_v55 = vmax.f32 %v1913_v63, %v1984_v33  ;;  %v1359_v49 = vadd.f32 %v1316_v28, %v1165_v0  ;;  %v1648_v9 = vrot.slane %v1572_v53, 7 }
 0x1e8   : > { %v2097_v50 = vmax.f32 %v2081_v41, %v3397_v47  ;;  %v1505_v31 = vadd.f32 %v1462_v35, %v1359_v49  ;;  %v1319_v51 = vpop.f32.mrf.mxu2  ;;  %v2098_v56 = vmax.f32 %v2082_v24, %v3399_v55  ;;  %v1720_v48 = vsel %vm300_vm0, 0.0, %v1648_v9 }
 0x1e9   : > { %v1836_v27 = vrot.slane %v1720_v48, 1  ;;  %v1985_v33 = vrot.slane %v1720_v48, 2 }
 0x1ea   : > { %v2116_v36 = vrot.slane %v2097_v50, 1  ;;  %v2132_v46 = vrot.slane %v2097_v50, 2  ;;  %v1541_v34 = vadd.f32 %v3367_v60, %v1505_v31  ;;  %v2148_v42 = vrot.slane %v2097_v50, 3 }
 0x1eb   : > { %v1060_v45 = vpop.f32.mrf.mxu0  ;;  %v1167_v58 = vpop.f32.mrf.mxu1  ;;  %v2172_v17 = vrot.slane %v2098_v56, 4  ;;  %v2188_v62 = vrot.slane %v2098_v56, 5  ;;  %v2204_v57 = vrot.slane %v2098_v56, 6  ;;  %v2220_v5 = vrot.slane %v2098_v56, 7 }
 0x1ec   : > { %v2236_v52 = vsel %vm300_vm0, %v2097_v50, %v2116_v36  ;;  %v1168_v54 = vadd.f32 %v1167_v58, %v1060_v45  ;;  %v1465_v11 = vpop.f32.mrf.mxu3  ;;  %v1573_v44 = vmax.f32 %v1541_v34, 0.0 }
 0x1ed   : > { %v2245_v14 = vsel %vm2239_vm9, %v2236_v52, %v2132_v46 }
 0x1ee   : > { %v2254_v37 = vsel %vm2248_vm10, %v2245_v14, %v2148_v42  ;;  %v1360_v23 = vadd.f32 %v1319_v51, %v1168_v54  ;;  %v1649_v4 = vrot.slane %v1573_v44, 7 }
 0x1ef   : > { %v2263_v3 = vsel %vm2257_vm11, %v2254_v37, %v2172_v17 }
 0x1f0   : > { %v2272_v7 = vsel %vm2266_vm12, %v2263_v3, %v2188_v62  ;;  %v1506_v10 = vadd.f32 %v1465_v11, %v1360_v23  ;;  %v1321_v59 = vpop.f32.mrf.mxu2  ;;  %v1650_v18 = vsel %vm300_vm0, %v1648_v9, %v1649_v4  ;;  %v1736_v13 = vsel %vm300_vm0, %v1649_v4, 0.0 }
 0x1f1   : > { %v2280_v40 = vsel %vm1922_vm8, %v2272_v7, %v2204_v57  ;;  %v1837_v61 = vrot.slane %v1650_v18, 1  ;;  %v1839_v20 = vrot.slane %v1736_v13, 1  ;;  %v1986_v32 = vrot.slane %v1650_v18, 2 }
 0x1f2   : > { %v2288_v16 = vsel %vm557_vm1, %v2280_v40, %v2220_v5  ;;  %v1542_v6 = vadd.f32 %v3367_v60, %v1506_v10  ;;  %v1988_v49 = vrot.slane %v1736_v13, 2 }
 0x1f3   : > { %v2296_v2 = vpack.c.bf16 %v2288_v16, %v2288_v16  ;;  %v1062_v1 = vpop.f32.mrf.mxu0  ;;  %v1169_v39 = vpop.f32.mrf.mxu1  ;;  %v1838_v26 = vsel %vm557_vm1, %v1836_v27, %v1837_v61  ;;  %v1840_v30 = vsel %vm557_vm1, %v1837_v61, %v1839_v20  ;;  %v1987_v31 = vsel %vm1922_vm8, %v1985_v33, %v1986_v32 }
 0x1f4   : > { %v1170_v43 = vadd.f32 %v1169_v39, %v1062_v1  ;;  %v1467_v28 = vpop.f32.mrf.mxu3  ;;  %v1574_v29 = vmax.f32 %v1542_v6, 0.0  ;;  %v1914_v0 = vmax.f32 %v1720_v48, %v1838_v26  ;;  %v1915_v8 = vmax.f32 %v1650_v18, %v1840_v30 }
 0x1f5   : > { %2305 = vst.msk [vmem:[%s3186_s25 + $0x14] sm:$0xf] %vm2299_vm13, %v2296_v2  ;;  %v1989_v53 = vsel %vm1922_vm8, %v1986_v32, %v1988_v49 }
 0x1f6   : > { %v1361_v19 = vadd.f32 %v1321_v59, %v1170_v43  ;;  %v1651_v25 = vrot.slane %v1574_v29, 7  ;;  %v2063_v51 = vmax.f32 %v1914_v0, %v1987_v31  ;;  %v2064_v11 = vmax.f32 %v1915_v8, %v1989_v53 }
 0x1f8   : > { %v1507_v12 = vadd.f32 %v1467_v28, %v1361_v19  ;;  %v1324_v21 = vpop.f32.mrf.mxu2  ;;  %v1721_v41 = vsel %vm300_vm0, 0.0, %v1651_v25  ;;  %v2083_v5 = vmax.f32 %v3397_v47, %v2063_v51  ;;  %v2084_v18 = vmax.f32 %v3399_v55, %v2064_v11 }
 0x1f9   : > { %v1841_v56 = vrot.slane %v1721_v41, 1  ;;  %v1990_v17 = vrot.slane %v1721_v41, 2 }
 0x1fa   : > { %v1543_v15 = vadd.f32 %v3367_v60, %v1507_v12 }
 0x1fb   : > { %v1065_v22 = vpop.f32.mrf.mxu0  ;;  %v1172_v63 = vpop.f32.mrf.mxu1 }
 0x1fc   : > { %v1575_v35 = vmax.f32 %v1543_v15, 0.0  ;;  %v1470_v38 = vpop.f32.mrf.mxu3  ;;  %v1173_v50 = vadd.f32 %v1172_v63, %v1065_v22 }
 0x1fe   : > { %v1652_v24 = vrot.slane %v1575_v35, 7  ;;  %v1362_v54 = vadd.f32 %v1324_v21, %v1173_v50 }
 0x200   : > { %v1653_v36 = vsel %vm300_vm0, %v1651_v25, %v1652_v24  ;;  %v1737_v46 = vsel %vm300_vm0, %v1652_v24, 0.0  ;;  %v1326_v34 = vpop.f32.mrf.mxu2  ;;  %v1508_v40 = vadd.f32 %v1470_v38, %v1362_v54 }
 0x201   : > { %v1842_v45 = vrot.slane %v1653_v36, 1  ;;  %v1844_v58 = vrot.slane %v1737_v46, 1  ;;  %v1991_v42 = vrot.slane %v1653_v36, 2  ;;  %v1993_v52 = vrot.slane %v1737_v46, 2 }
 0x202   : > { %v1544_v47 = vadd.f32 %v3367_v60, %v1508_v40 }
 0x203   : > { %v1843_v14 = vsel %vm557_vm1, %v1841_v56, %v1842_v45  ;;  %v1845_v44 = vsel %vm557_vm1, %v1842_v45, %v1844_v58  ;;  %v1067_v62 = vpop.f32.mrf.mxu0  ;;  %v1174_v37 = vpop.f32.mrf.mxu1  ;;  %v1992_v7 = vsel %vm1922_vm8, %v1990_v17, %v1991_v42  ;;  %v1994_v9 = vsel %vm1922_vm8, %v1991_v42, %v1993_v52 }
 0x204   : > { %v1916_v23 = vmax.f32 %v1721_v41, %v1843_v14  ;;  %v1917_v57 = vmax.f32 %v1653_v36, %v1845_v44  ;;  %v1175_v3 = vadd.f32 %v1174_v37, %v1067_v62  ;;  %v1472_v4 = vpop.f32.mrf.mxu3  ;;  %v1576_v15 = vmax.f32 %v1544_v47, 0.0 }
 0x206   : > { %v3432_v10 = vmax.f32 %v1916_v23, %v1992_v7  ;;  %v3434_v59 = vmax.f32 %v1917_v57, %v1994_v9  ;;  %v1363_v16 = vadd.f32 %v1326_v34, %v1175_v3  ;;  %v1654_v49 = vrot.slane %v1576_v15, 7 }
 0x208   : > { %v2099_v2 = vmax.f32 %v2083_v5, %v3432_v10  ;;  %v1509_v6 = vadd.f32 %v1472_v4, %v1363_v16  ;;  %v2100_v1 = vmax.f32 %v2084_v18, %v3434_v59  ;;  %v1329_v43 = vpop.f32.mrf.mxu2  ;;  %v1722_v45 = vsel %vm300_vm0, 0.0, %v1654_v49 }
 0x209   : > { %v1846_v11 = vrot.slane %v1722_v45, 1  ;;  %v1995_v3 = vrot.slane %v1722_v45, 2 }
 0x20a   : > { %v2117_v39 = vrot.slane %v2099_v2, 1  ;;  %v2133_v48 = vrot.slane %v2099_v2, 2  ;;  %v1545_v28 = vadd.f32 %v3367_v60, %v1509_v6  ;;  %v2149_v29 = vrot.slane %v2099_v2, 3 }
 0x20b   : > { %v1070_v13 = vpop.f32.mrf.mxu0  ;;  %v1177_v61 = vpop.f32.mrf.mxu1  ;;  %v2173_v20 = vrot.slane %v2100_v1, 4  ;;  %v2189_v26 = vrot.slane %v2100_v1, 5  ;;  %v2205_v22 = vrot.slane %v2100_v1, 6  ;;  %v2221_v30 = vrot.slane %v2100_v1, 7 }
 0x20c   : > { %v2237_v19 = vsel %vm300_vm0, %v2099_v2, %v2117_v39  ;;  %v1178_v27 = vadd.f32 %v1177_v61, %v1070_v13  ;;  %v1577_v12 = vmax.f32 %v1545_v28, 0.0  ;;  %v1475_v21 = vpop.f32.mrf.mxu3 }
 0x20d   : > { %v2246_v55 = vsel %vm2239_vm9, %v2237_v19, %v2133_v48 }
 0x20e   : > { %v2255_v25 = vsel %vm2248_vm10, %v2246_v55, %v2149_v29  ;;  %v1364_v32 = vadd.f32 %v1329_v43, %v1178_v27  ;;  %v1655_v35 = vrot.slane %v1577_v12, 7 }
 0x20f   : > { %v2264_v63 = vsel %vm2257_vm11, %v2255_v25, %v2173_v20 }
 0x210   : > { %v2273_v0 = vsel %vm2266_vm12, %v2264_v63, %v2189_v26  ;;  %v1510_v38 = vadd.f32 %v1475_v21, %v1364_v32  ;;  %v1656_v51 = vsel %vm300_vm0, %v1654_v49, %v1655_v35  ;;  %v1738_v36 = vsel %vm300_vm0, %v1655_v35, 0.0  ;;  %v1331_v34 = vpop.f32.mrf.mxu2 }
 0x211   : > { %v2281_v33 = vsel %vm1922_vm8, %v2273_v0, %v2205_v22  ;;  %v1847_v42 = vrot.slane %v1656_v51, 1  ;;  %v1849_v53 = vrot.slane %v1738_v36, 1  ;;  %v1996_v37 = vrot.slane %v1656_v51, 2 }
 0x212   : > { %v2289_v41 = vsel %vm557_vm1, %v2281_v33, %v2221_v30  ;;  %v1546_v50 = vadd.f32 %v3367_v60, %v1510_v38  ;;  %v1998_v5 = vrot.slane %v1738_v36, 2 }
 0x213   : > { %v2297_v24 = vpack.c.bf16 %v2289_v41, %v2289_v41  ;;  %v1072_v8 = vpop.f32.mrf.mxu0  ;;  %v1179_v31 = vpop.f32.mrf.mxu1  ;;  %v1848_v44 = vsel %vm557_vm1, %v1846_v11, %v1847_v42  ;;  %v1850_v62 = vsel %vm557_vm1, %v1847_v42, %v1849_v53  ;;  %v1997_v40 = vsel %vm1922_vm8, %v1995_v3, %v1996_v37 }
 0x214   : > { %v1180_v56 = vadd.f32 %v1179_v31, %v1072_v8  ;;  %v1578_v46 = vmax.f32 %v1546_v50, 0.0  ;;  %v1477_v52 = vpop.f32.mrf.mxu3  ;;  %v1918_v4 = vmax.f32 %v1722_v45, %v1848_v44  ;;  %v1919_v9 = vmax.f32 %v1656_v51, %v1850_v62 }
 0x215   : > { %2306 = vst.msk [vmem:[%s3186_s25 + $0x18] sm:$0xf] %vm2299_vm13, %v2297_v24  ;;  %v1999_v48 = vsel %vm1922_vm8, %v1996_v37, %v1998_v5 }
 0x216   : > { %v1365_v58 = vadd.f32 %v1331_v34, %v1180_v56  ;;  %v1657_v17 = vrot.slane %v1578_v46, 7  ;;  %v2067_v47 = vmax.f32 %v1918_v4, %v1997_v40  ;;  %v2068_v43 = vmax.f32 %v1919_v9, %v1999_v48 }
 0x218   : > { %v1511_v54 = vadd.f32 %v1477_v52, %v1365_v58  ;;  %v1723_v57 = vsel %vm300_vm0, 0.0, %v1657_v17  ;;  %v2085_v55 = vmax.f32 %v3432_v10, %v2067_v47  ;;  %v2086_v26 = vmax.f32 %v3434_v59, %v2068_v43 }
 0x219   : > { %v1851_v16 = vrot.slane %v1723_v57, 1  ;;  %v2000_v28 = vrot.slane %v1723_v57, 2 }
 0x21a   : > { %v1547_v14 = vadd.f32 %v3367_v60, %v1511_v54 }
 0x21c   : > { %v1579_v23 = vmax.f32 %v1547_v14, 0.0 }
 0x21e   : > { %v1658_v7 = vrot.slane %v1579_v23, 7 }
 0x220   : > { %v1659_v18 = vsel %vm300_vm0, %v1657_v17, %v1658_v7  ;;  %v1739_v60 = vsel %vm300_vm0, %v1658_v7, 0.0 }
 0x221   : > { %v1852_v2 = vrot.slane %v1659_v18, 1  ;;  %v1854_v6 = vrot.slane %v1739_v60, 1  ;;  %v2001_v1 = vrot.slane %v1659_v18, 2  ;;  %v2003_v39 = vrot.slane %v1739_v60, 2 }
 0x223   : > { %v1853_v13 = vsel %vm557_vm1, %v1851_v16, %v1852_v2  ;;  %v1855_v61 = vsel %vm557_vm1, %v1852_v2, %v1854_v6  ;;  %v2002_v27 = vsel %vm1922_vm8, %v2000_v28, %v2001_v1  ;;  %v2004_v20 = vsel %vm1922_vm8, %v2001_v1, %v2003_v39 }
 0x224   : > { %v1920_v29 = vmax.f32 %v1723_v57, %v1853_v13  ;;  %v1921_v19 = vmax.f32 %v1659_v18, %v1855_v61 }
 0x226   : > { %v2069_v12 = vmax.f32 %v1920_v29, %v2002_v27  ;;  %v2070_v21 = vmax.f32 %v1921_v19, %v2004_v20 }
 0x228   : > { %v2101_v25 = vmax.f32 %v2085_v55, %v2069_v12  ;;  %v2102_v15 = vmax.f32 %v2086_v26, %v2070_v21 }
 0x22a   : > { %v2118_v32 = vrot.slane %v2101_v25, 1  ;;  %v2134_v22 = vrot.slane %v2101_v25, 2  ;;  %v2150_v63 = vrot.slane %v2101_v25, 3  ;;  %v2174_v0 = vrot.slane %v2102_v15, 4 }
 0x22b   : > { %v2190_v38 = vrot.slane %v2102_v15, 5  ;;  %v2206_v41 = vrot.slane %v2102_v15, 6  ;;  %v2222_v49 = vrot.slane %v2102_v15, 7 }
 0x22c   : > { %v2238_v30 = vsel %vm300_vm0, %v2101_v25, %v2118_v32 }
 0x22d   : > { %v2247_v35 = vsel %vm2239_vm9, %v2238_v30, %v2134_v22 }
 0x22e   : > { %v2256_v33 = vsel %vm2248_vm10, %v2247_v35, %v2150_v63 }
 0x22f   : > { %v2265_v10 = vsel %vm2257_vm11, %v2256_v33, %v2174_v0 }
 0x230   : > { %v2274_v59 = vsel %vm2266_vm12, %v2265_v10, %v2190_v38 }
 0x231   : > { %v2282_v24 = vsel %vm1922_vm8, %v2274_v59, %v2206_v41 }
 0x232   : > { %v2290_v50 = vsel %vm557_vm1, %v2282_v24, %v2222_v49 }
 0x233   : > { %v2298_v8 = vpack.c.bf16 %v2290_v50, %v2290_v50 }
 0x235   : > { %2307 = vst.msk [vmem:[%s3186_s25 + $0x1c] sm:$0xf] %vm2299_vm13, %v2298_v8 }
 0x236 PF: > { %s13_s12 = sadd.s32 1, %s2619_s12  }
 0x237   : > { %p10_p4 = scmp.ge.s32.totalorder %s13_s12, 4  }
 0x239   :  { %12 = sbr.rel (!%p10_p4) target bundleno = 1 (0x1), region = 65 }

// kernel: forward.5
= control target key start
LH: loop header
LB: loop body
LE: loop exit
PB: predicated region body
PF: predicated region fallthrough
CT: control target
= control target key end

     0   :  { %14 = vsyncpa [#allocation3], 0  ;;  %s6378_s0 = inlined_call_operand.vmem [shape: bf16[2,64,32], index: 0, kind: input, shape index: {}]   ;;  %s6379_s1 = inlined_call_operand.vmem [shape: bf16[32,64], index: 1, kind: input, shape index: {}]   ;;  %s6380_s2 = inlined_call_operand.vmem [shape: f32[1,64], index: 2, kind: input, shape index: {}]   ;;  %s6381_s3 = inlined_call_operand.vmem [shape: bf16[32,32], index: 3, kind: input, shape index: {}]   ;;  %s6382_s4 = inlined_call_operand.vmem [shape: f32[1,32], index: 4, kind: input, shape index: {}]   ;;  %s6383_s5 = inlined_call_operand.vmem [shape: bf16[9,288,32], index: 5, kind: input, shape index: {}]   ;;  %s6384_s6 = inlined_call_operand.vmem [shape: f32[1,32], index: 6, kind: input, shape index: {}]   ;;  %s6385_s7 = inlined_call_operand.vmem [shape: bf16[32,64], index: 7, kind: input, shape index: {}]   ;;  %s6386_s8 = inlined_call_operand.vmem [shape: f32[1,64], index: 8, kind: input, shape index: {}]   ;;  %s6387_s9 = inlined_call_operand.hbm [shape: f32[2,64,64], index: 9, kind: output, shape index: {}]  }
   0x1   :  { %16 = vsyncpa [#allocation3 + $0x1], 0  ;;  %s4796_s30 = smov 0   ;;  %s4798_s10 = smov 0  }
   0x2   :  { %s4800_s11 = smov 0   ;;  %s4802_s12 = smov 0  }
   0x3 LB: > { %s4817_s13 = sadd.s32 4294967295, %s4738_s12   ;;  %s3408_s14 = sadd.s32 4294967294, %s4738_s12   ;;  %s4738_s12 = sphi %s4802_s12, %s6413_s12   ;;  %s4734_s11 = sphi %s4800_s11, %s6412_s11   ;;  %s4730_s10 = sphi %s4798_s10, %s6411_s10   ;;  %s4726_s30 = sphi %s4796_s30, %s6410_s30  }
   0x4   : > { %s4821_s15 = sadd.s32 1, %s4738_s12   ;;  %s223_s16 = sadd.s32 1, %s4734_s11 }
   0x5   : > { %s220_s17 = ssub.s32 %s4738_s12, %s4821_s15  ;;  %p233_p0 = scmp.ne.s32.totalorder %s4734_s11, %s4730_s10 }
   0x6   : > { %p221_p1 = scmp.eq.s32.totalorder %s220_s17, 0  ;;  %p234_p2 = scmp.eq.s32.totalorder %s4817_s13, 1 }
   0x7   : > { %p239_p3 = scmp.ne.s32.totalorder %s4730_s10, %s4726_s30  ;;  %p240_p4 = scmp.eq.s32.totalorder %s3408_s14, 1 }
   0x8   : > { %s4832_s18 = scalar_select %p221_p1, %s4734_s11, %s223_s16  }
   0x9   : > { %p4834_p5 = por %p234_p2, %p233_p0  ;;  %p4838_p6 = por %p240_p4, %p239_p3 }
   0xa   : > { %p3411_p7 = scmp.ge.s32.totalorder %s4738_s12, 1  ;;  %p290_p8 = scmp.lt.s32.totalorder %s4738_s12, 3 }
   0xc   : > { %p291_p9 = pnand %p3411_p7, %p290_p8 }
   0xe   : > { %294 = sbr.rel (%p291_p9) target bundleno = 1042 (0x412), region = 56 }
  0x13   : > { %v4452_v0 = vld [vmem:[%s6381_s3 + $0x8] sm:$0xff]  ;;  %p326_p10 = scmp.lt.s32.totalorder %s4817_s13, 1  ;;  %v4740_v1 = vmov 0   ;;  %v4451_v4 = vld [vmem:[%s6381_s3] sm:$0xff]  ;;  %v4488_v5 = vld [vmem:[%s6383_s5 + $0x118] sm:$0xff]  ;;  %s4741_s28 = smov 32  }
  0x14   : > { %v550_v2 = vrot.slane %v4740_v1, 1  ;;  %v637_v3 = vrot.slane %v4740_v1, 3  ;;  %448 = vmatpush.bf16.msra.mxu0 %v4452_v0  ;;  %4620 = vmatpush.bf16.msra.mxu1 %v4452_v0  ;;  %s4742_s21 = smov 64   ;;  %v4860_v7 = vrot.slane %v4740_v1, 2  ;;  %vm380_vm0 = vcmask 261120   ;;  %s4743_s22 = smov 96  }
  0x15   : > { %s327_s25 = scalar_select %p326_p10, %s4817_s13, 1  ;;  %v677_v14 = vrot.slane %v4740_v1, 4  ;;  %v4487_v16 = vld [vmem:[%s6383_s5 + $0x110] sm:$0xff]  ;;  %v4897_v19 = vld [vmem:[%s6382_s4] ss:$0 sm:$0xff]  ;;  %vm519_vm1 = vcmask 1041408  }
  0x16   : > { %v4667_v6 = vpack.i.bf16 %v637_v3, %v550_v2  ;;  %576 = vrot.lane.b32.xlu0 %v550_v2, %s4741_s28  ;;  %v638_v10 = vor.u32 %v637_v3, %v4860_v7  ;;  %v608_v11 = vor.u32 %v4860_v7, %v550_v2  ;;  %vm537_vm2 = vcmask 1045504   ;;  %v4450_v53 = vld [vmem:[%s6379_s1 + $0x8] sm:$0xff]  ;;  %v4449_v62 = vld [vmem:[%s6379_s1] sm:$0xff]  ;;  %s4617_s27 = sshll.u32 %s4817_s13, 6 }
  0x17   : > { %s4444_s29 = sshll.u32 %s327_s25, 5  ;;  %v4882_v15 = vunpack.c.l.b16 %v677_v14  ;;  %v678_v18 = vor.u32 %v677_v14, %v637_v3  ;;  %399 = vmatpush.bf16.msra.mxu2 %v4450_v53  ;;  %4618 = vmatpush.bf16.msra.mxu3 %v4450_v53  ;;  %v4486_v53 = vld [vmem:[%s6383_s5 + $0x108] sm:$0xff]  ;;  %vm716_vm3 = vcmask 523264   ;;  %vm727_vm4 = vcmask 785408   ;;  %s323_s25 = sand.u32 1, %s4730_s10  }
  0x18   : > { %s330_s17 = scalar_lea.vmem %s6378_s0, %s4444_s29  ;;  %4668 = vrot.lane.b32.xlu1 %v4667_v6, %s4742_s21  ;;  %449 = vmatpush.bf16.msra.mxu0 %v4451_v4  ;;  %s3412_s26 = sshll.u32 %s323_s25, 6 }
  0x19   : > { %4621 = vmatpush.bf16.msra.mxu1 %v4451_v4  ;;  %v4862_v8 = vld [vmem:[%s330_s17] sm:$0xff]  ;;  %v4864_v9 = vld [vmem:[%s330_s17 + $0x10] sm:$0xff]  ;;  %v4874_v12 = vld [vmem:[%s330_s17 + $0x8] sm:$0xff]  ;;  %v4889_v17 = vpack.c.b16 %v4882_v15, %v4882_v15  ;;  %691 = vrot.lane.b32.xlu2 %v678_v18, %s4743_s22  ;;  %s3331_s13 = scalar_lea.sflag [#allocation3], %s323_s25 }
  0x1a   : > { %v4876_v13 = vld [vmem:[%s330_s17 + $0x18] sm:$0xff] }
  0x1b   : > { %3451 = vmatmul.msk.bf16.vlgmr.msra.gmra.mxu0 %vm380_vm0, %v4862_v8  ;;  %400 = vmatpush.bf16.msra.mxu2 %v4449_v62 }
  0x1c   : > { %1125 = vmatpush.bf16.msrb.mxu0 %v4488_v5  ;;  %3453 = vmatmul.msk.bf16.vlgmr.msra.gmra.mxu1 %vm380_vm0, %v4864_v9 }
  0x1d   : > { %4619 = vmatpush.bf16.msra.mxu3 %v4449_v62  ;;  %v4457_v62 = vld [vmem:[%s6383_s5 + $0x20] sm:$0xff] }
  0x1e   : > { %651 = vrot.lane.b32.xlu0 %v638_v10, %s4741_s28  ;;  %3439 = vmatmul.msk.bf16.vlgmr.msra.gmra.mxu2 %vm380_vm0, %v4862_v8 }
  0x20   : > { %621 = vrot.lane.b32.xlu1 %v608_v11, %s4743_s22  ;;  %1126 = vmatpush.bf16.msrb.mxu0 %v4487_v16 }
  0x21   : > { %3442 = vmatmul.msk.bf16.vlgmr.msra.gmra.mxu3 %vm380_vm0, %v4876_v13 }
  0x22   : > { %1090 = vmatpush.bf16.msrb.mxu3 %v4486_v53 }
  0x2b   : > { %3452 = vmatmul.msk.bf16.gmra.mxu0 %vm380_vm0, %v4874_v12 }
  0x2c   : > { %3454 = vmatmul.msk.bf16.gmra.mxu1 %vm380_vm0, %v4876_v13 }
  0x2e   : > { %3440 = vmatmul.msk.bf16.gmra.mxu2 %vm380_vm0, %v4874_v12  ;;  %v4485_v12 = vld [vmem:[%s6383_s5 + $0x100] sm:$0xff] }
  0x2f   : > { %1091 = vmatpush.bf16.msrb.mxu3 %v4485_v12 }
  0x3b   : > { %3563 = vmatmul.msk.bf16.vlgmr.msrb.gmra.mxu0 %vm380_vm0, %v4889_v17 }
  0x3e   : > { %3441 = vmatmul.msk.bf16.gmra.mxu2 %vm380_vm0, %v4864_v9  ;;  %v4473_v9 = vld [vmem:[%s6383_s5 + $0xa0] sm:$0xff] }
  0x98   : > { %v451_v20 = vpop.f32.mrf.mxu0 }
  0x99   : > { %v461_v21 = vpop.f32.mrf.mxu1  ;;  %v452_v22 = vadd.f32 %v4897_v19, %v451_v20 }
  0x9a   : > { %v462_v23 = vadd.f32 %v4897_v19, %v461_v21 }
  0x9b   : > { %v471_v24 = vmax.f32 %v452_v22, 0.0 }
  0x9c   : > { %v475_v25 = vmax.f32 %v462_v23, 0.0 }
  0x9d   : > { %v479_v26 = vpack.c.bf16 %v471_v24, %v471_v24 }
  0x9e   : > { %v483_v27 = vpack.c.bf16 %v475_v25, %v475_v25 }
  0x9f   : > { %v495_v28 = vunpack.c.l.b16 %v479_v26 }
  0xa0   : > { %v499_v29 = vunpack.c.l.b16 %v483_v27  ;;  %v453_v30 = vpop.f32.mrf.mxu0 }
  0xa1   : > { %v503_v31 = vpack.c.b16 %v495_v28, %v495_v28  ;;  %v454_v33 = vadd.f32 %v4897_v19, %v453_v30 }
  0xa2   : > { %v507_v32 = vpack.c.b16 %v499_v29, %v499_v29 }
  0xa3   : > { %v511_v34 = vrot.slane %v503_v31, 6  ;;  %v472_v36 = vmax.f32 %v454_v33, 0.0 }
  0xa4   : > { %v515_v35 = vrot.slane %v507_v32, 6 }
  0xa5   : > { %v522_v37 = vsel %vm519_vm1, 0, %v511_v34  ;;  %v480_v39 = vpack.c.bf16 %v472_v36, %v472_v36  ;;  %v4460_v36 = vld [vmem:[%s6383_s5 + $0x38] sm:$0xff] }
  0xa6   : > { %v530_v38 = vsel %vm519_vm1, 0, %v515_v35  ;;  %v4905_v40 = vsel %vm537_vm2, %v522_v37, 0  ;;  %1272 = vmatpush.bf16.msrb.mxu1 %v4460_v36 }
  0xa7   : > { %v4908_v41 = vsel %vm537_vm2, %v530_v38, 0  ;;  %v496_v42 = vunpack.c.l.b16 %v480_v39  ;;  %v662_v44 = vrot.slane %v4905_v40, 3  ;;  %v592_v46 = vrot.slane %v4905_v40, 1 }
  0xa8   : > { %v857_v43 = vrot.slane %v4908_v41, 3  ;;  %v456_v45 = vpop.f32.mrf.mxu0  ;;  %v702_v47 = vrot.slane %v4905_v40, 4  ;;  %v552_v48 = vshrl.u32 %v4905_v40, 16  ;;  %v554_v52 = vshll.u32 %v4905_v40, 16 }
  0xa9   : > { %v504_v49 = vpack.c.b16 %v496_v42, %v496_v42  ;;  %v457_v50 = vadd.f32 %v4897_v19, %v456_v45  ;;  %668 = vrot.lane.b32.xlu2 %v662_v44, %s4742_s21  ;;  %598 = vrot.lane.b32.xlu1 %v592_v46, %s4742_s21  ;;  %v843_v3 = vrot.slane %v4908_v41, 1  ;;  %v4937_v5 = vshll.u32 %v4908_v41, 16  ;;  %v4459_v45 = vld [vmem:[%s6383_s5 + $0x30] sm:$0xff] }
  0xaa   : > { %858 = vrot.lane.b32.xlu0 %v857_v43, %s4742_s21  ;;  %v4919_v51 = vunpack.c.l.b16 %v702_v47  ;;  %v639_v56 = vrot.slane %v552_v48, 2  ;;  %v679_v58 = vrot.slane %v552_v48, 3  ;;  %v680_v59 = vrot.slane %v554_v52, 4  ;;  %1273 = vmatpush.bf16.msrb.mxu1 %v4459_v45 }
  0xab   : > { %v512_v54 = vrot.slane %v504_v49, 6  ;;  %v473_v55 = vmax.f32 %v457_v50, 0.0  ;;  %v640_v60 = vrot.slane %v554_v52, 3  ;;  %v609_v18 = vrot.slane %v552_v48, 1 }
  0xac   : > { %v4927_v57 = vpack.c.b16 %v4919_v51, %v4882_v15  ;;  %v681_v4 = vor.u32 %v680_v59, %v679_v58  ;;  %v610_v20 = vrot.slane %v554_v52, 2  ;;  %v838_v21 = vrot.slane %v4937_v5, 1 }
  0xad   : > { %v481_v61 = vpack.c.bf16 %v473_v55, %v473_v55  ;;  %v524_v63 = vsel %vm519_vm1, 0, %v512_v54  ;;  %v641_v1 = vor.u32 %v640_v60, %v639_v56  ;;  %v556_v22 = vrot.slane %v554_v52, 1  ;;  %v4478_v52 = vld [vmem:[%s6383_s5 + $0xc8] sm:$0xff] }
  0xae   : > { %3564 = vmatmul.msk.bf16.gmra.mxu0 %vm380_vm0, %v4927_v57  ;;  %v4942_v11 = vsel %vm537_vm2, %v524_v63, 0  ;;  %v4957_v27 = vshrl.u32 %v4908_v41, 16  ;;  %v611_v29 = vor.u32 %v610_v20, %v609_v18  ;;  %v853_v44 = vrot.slane %v4937_v5, 3  ;;  %v4458_v56 = vld [vmem:[%s6383_s5 + $0x28] sm:$0xff]  ;;  %1061 = vmatpush.bf16.msrb.mxu2 %v4478_v52  ;;  %v577_v18 = vpop.permute.xlu0 %576  ;;  %v4496_v20 = vld [vmem:[%s6383_s5 + $0x158] sm:$0xff] }
  0xaf   : > { %v497_v0 = vunpack.c.l.b16 %v481_v61  ;;  %v703_v25 = vrot.slane %v4942_v11, 4  ;;  %v557_v30 = vor.u32 %v556_v22, %v552_v48  ;;  %v4962_v31 = vshrl.u32 %v4942_v11, 16  ;;  %v4477_v61 = vld [vmem:[%s6383_s5 + $0xc0] sm:$0xff]  ;;  %1274 = vmatpush.bf16.msrb.mxu1 %v4458_v56  ;;  %1562 = vmatpush.bf16.msra.mxu0 %v4496_v20 }
  0xb0   : > { %v458_v2 = vpop.f32.mrf.mxu0  ;;  %v839_v13 = vor.u32 %v838_v21, %v4957_v27  ;;  %v4965_v32 = vshll.u32 %v4942_v11, 16  ;;  %v852_v43 = vrot.slane %v4957_v27, 2  ;;  %v593_v47 = vrot.slane %v4942_v11, 1 }
  0xb1   : > { %v505_v6 = vpack.c.b16 %v497_v0, %v497_v0  ;;  %v459_v10 = vadd.f32 %v4897_v19, %v458_v2  ;;  %844 = vrot.lane.b32.xlu2 %v843_v3, %s4742_s21  ;;  %693 = vrot.lane.b32.xlu1 %v681_v4, %s4743_s22  ;;  %v791_v34 = vunpack.c.l.b16 %v703_v25  ;;  %v642_v39 = vrot.slane %v4962_v31, 2  ;;  %v4483_v25 = vld [vmem:[%s6383_s5 + $0xf0] sm:$0xff] }
  0xb2   : > { %653 = vrot.lane.b32.xlu0 %v641_v1, %s4741_s28  ;;  %v643_v42 = vrot.slane %v4965_v32, 3  ;;  %v854_v49 = vor.u32 %v853_v44, %v852_v43  ;;  %v682_v54 = vrot.slane %v4962_v31, 3  ;;  %v683_v55 = vrot.slane %v4965_v32, 4  ;;  %1062 = vmatpush.bf16.msrb.mxu2 %v4477_v61 }
  0xb3   : > { %v513_v14 = vrot.slane %v505_v6, 6  ;;  %v474_v16 = vmax.f32 %v459_v10, 0.0  ;;  %v612_v58 = vrot.slane %v4962_v31, 1  ;;  %v613_v59 = vrot.slane %v4965_v32, 2  ;;  %1275 = vmatpush.bf16.msrb.mxu1 %v4457_v62  ;;  %v4476_v10 = vld [vmem:[%s6383_s5 + $0xb8] sm:$0xff] }
  0xb4   : > { %v644_v48 = vor.u32 %v643_v42, %v642_v39  ;;  %v865_v63 = vrot.slane %v4908_v41, 4  ;;  %v684_v0 = vor.u32 %v683_v55, %v682_v54  ;;  %v663_v2 = vrot.slane %v4942_v11, 3  ;;  %v4474_v42 = vld [vmem:[%s6383_s5 + $0xa8] sm:$0xff]  ;;  %v4481_v54 = vld [vmem:[%s6383_s5 + $0xe0] sm:$0xff] }
  0xb5   : > { %v526_v23 = vsel %vm519_vm1, 0, %v513_v14  ;;  %v482_v24 = vpack.c.bf16 %v474_v16, %v474_v16  ;;  %v614_v1 = vor.u32 %v613_v59, %v612_v58  ;;  %v5024_v4 = vpack.c.b16 %v791_v34, %v4919_v51  ;;  %v4484_v14 = vld [vmem:[%s6383_s5 + $0xf8] sm:$0xff]  ;;  %v5036_v16 = vpop.permute.xlu1 %4668  ;;  %v4453_v59 = vld [vmem:[%s6383_s5] sm:$0xff] }
  0xb6   : > { %v4954_v26 = vsel %vm537_vm2, %v526_v23, 0  ;;  %v5028_v6 = vunpack.c.l.b16 %v865_v63  ;;  %v4456_v51 = vld [vmem:[%s6383_s5 + $0x18] sm:$0xff]  ;;  %v562_v22 = vrot.slane %v4965_v32, 1  ;;  %1063 = vmatpush.bf16.msrb.mxu2 %v4476_v10  ;;  %1092 = vmatpush.bf16.msrb.mxu3 %v4484_v14  ;;  %v4670_v23 = vunpack.i.l.bf16 %v5036_v16  ;;  %v652_v55 = vpop.permute.xlu0 %651  ;;  %v4493_v63 = vld [vmem:[%s6383_s5 + $0x140] sm:$0xff] }
  0xb7   : > { %v498_v28 = vunpack.c.l.b16 %v482_v24  ;;  %v704_v8 = vrot.slane %v4954_v26, 4  ;;  %v4475_v24 = vld [vmem:[%s6383_s5 + $0xb0] sm:$0xff]  ;;  %1276 = vmatpush.bf16.msrb.mxu1 %v4456_v51  ;;  %v5064_v32 = vshrl.u32 %v4954_v26, 16  ;;  %v4671_v61 = vunpack.i.h.bf16 %v5036_v16  ;;  %v4480_v14 = vld [vmem:[%s6383_s5 + $0xd8] sm:$0xff] }
  0xb8   : > { %v563_v36 = vor.u32 %v562_v22, %v4962_v31  ;;  %v4482_v31 = vld [vmem:[%s6383_s5 + $0xe8] sm:$0xff]  ;;  %v4492_v51 = vld [vmem:[%s6383_s5 + $0x138] sm:$0xff] }
  0xb9   : > { %v506_v33 = vpack.c.b16 %v498_v28, %v498_v28  ;;  %v4968_v35 = vunpack.c.l.b16 %v704_v8  ;;  %840 = vrot.lane.b32.xlu1 %v839_v13, %s4741_s28  ;;  %578 = vrot.lane.b32.xlu2 %v557_v30, %s4741_s28  ;;  %v463_v28 = vpop.f32.mrf.mxu1  ;;  %v4455_v8 = vld [vmem:[%s6383_s5 + $0x10] sm:$0xff]  ;;  %v707_v13 = vsel %vm380_vm0, 0, %v577_v18  ;;  %v594_v30 = vrot.slane %v4954_v26, 1  ;;  %v692_v18 = vpop.permute.xlu2 %691 }
  0xba   : > { %623 = vrot.lane.b32.xlu0 %v611_v29, %s4743_s22  ;;  %v664_v29 = vrot.slane %v4954_v26, 3  ;;  %1064 = vmatpush.bf16.msrb.mxu2 %v4475_v24  ;;  %v464_v39 = vadd.f32 %v4897_v19, %v463_v28  ;;  %v685_v44 = vrot.slane %v5064_v32, 3  ;;  %v645_v52 = vrot.slane %v5064_v32, 2  ;;  %v4471_v24 = vld [vmem:[%s6383_s5 + $0x90] sm:$0xff] }
  0xbb   : > { %v514_v37 = vrot.slane %v506_v33, 6  ;;  %v4976_v38 = vpack.c.b16 %v4968_v35, %v791_v34  ;;  %v5067_v33 = vshll.u32 %v4954_v26, 16  ;;  %v4495_v34 = vld [vmem:[%s6383_s5 + $0x150] sm:$0xff]  ;;  %1093 = vmatpush.bf16.msrb.mxu3 %v4483_v25  ;;  %1277 = vmatpush.bf16.msrb.mxu1 %v4455_v8  ;;  %v615_v20 = vrot.slane %v5064_v32, 1 }
  0xbc   : > { %1563 = vmatpush.bf16.msra.mxu0 %v4495_v34  ;;  %v4479_v25 = vld [vmem:[%s6383_s5 + $0xd0] sm:$0xff] }
  0xbd   : > { %v528_v46 = vsel %vm519_vm1, 0, %v514_v37  ;;  %v718_v37 = vsel %vm716_vm3, %v707_v13, %v4670_v23  ;;  %v622_v43 = vpop.permute.xlu1 %621  ;;  %v568_v45 = vrot.slane %v5067_v33, 1  ;;  %v646_v53 = vrot.slane %v5067_v33, 3 }
  0xbe   : > { %3565 = vmatmul.msk.bf16.gmra.mxu0 %vm380_vm0, %v4976_v38  ;;  %v4990_v50 = vsel %vm537_vm2, %v528_v46, 0  ;;  %v4454_v46 = vld [vmem:[%s6383_s5 + $0x8] sm:$0xff]  ;;  %1065 = vmatpush.bf16.msrb.mxu2 %v4474_v42  ;;  %v616_v22 = vrot.slane %v5067_v33, 2 }
  0xbf   : > { %v705_v60 = vrot.slane %v4990_v50, 4  ;;  %1094 = vmatpush.bf16.msrb.mxu3 %v4482_v31  ;;  %1278 = vmatpush.bf16.msrb.mxu1 %v4454_v46  ;;  %v569_v62 = vor.u32 %v568_v45, %v5064_v32  ;;  %v595_v13 = vrot.slane %v4990_v50, 1  ;;  %v665_v34 = vrot.slane %v4990_v50, 3 }
  0xc1   : > { %655 = vrot.lane.b32.xlu1 %v644_v48, %s4741_s28  ;;  %855 = vrot.lane.b32.xlu2 %v854_v49, %s4741_s28  ;;  %v797_v3 = vunpack.c.l.b16 %v705_v60  ;;  %v729_v48 = vsel %vm727_vm4, %v718_v37, %v622_v43  ;;  %v686_v49 = vrot.slane %v5067_v33, 4  ;;  %v476_v60 = vmax.f32 %v464_v39, 0.0  ;;  %v466_v12 = vpop.f32.mrf.mxu1  ;;  %v4491_v33 = vld [vmem:[%s6383_s5 + $0x130] sm:$0xff] }
  0xc2   : > { %600 = vrot.lane.b32.xlu0 %v593_v47, %s4742_s21  ;;  %v4494_v47 = vld [vmem:[%s6383_s5 + $0x148] sm:$0xff]  ;;  %v5107_v58 = vunpack.c.l.b16 %v729_v48  ;;  %1066 = vmatpush.bf16.msrb.mxu2 %v4473_v9  ;;  %v467_v10 = vadd.f32 %v4897_v19, %v466_v12  ;;  %v572_v37 = vshll.u32 %v4990_v50, 16  ;;  %v860_v12 = vrot.slane %v4957_v27, 3 }
  0xc3   : > { %v5045_v21 = vpack.c.b16 %v5028_v6, %v797_v3  ;;  %v5105_v56 = vpack.c.b16 %v797_v3, %v4968_v35  ;;  %1564 = vmatpush.bf16.msra.mxu0 %v4494_v47  ;;  %v740_v35 = vsel %vm380_vm0, %v4860_v7, %v652_v55  ;;  %1095 = vmatpush.bf16.msrb.mxu3 %v4481_v54  ;;  %v4472_v7 = vld [vmem:[%s6383_s5 + $0x98] sm:$0xff]  ;;  %v4490_v47 = vld [vmem:[%s6383_s5 + $0x128] sm:$0xff] }
  0xc4   : > { %1279 = vmatpush.bf16.msrb.mxu1 %v4453_v59  ;;  %v484_v3 = vpack.c.bf16 %v476_v60, %v476_v60  ;;  %v754_v16 = vsel %vm716_vm3, %v740_v35, %v4671_v61  ;;  %v477_v8 = vmax.f32 %v467_v10, 0.0  ;;  %v649_v43 = vrot.slane %v572_v37, 3 }
  0xc5   : > { %v764_v23 = vsel %vm727_vm4, %v754_v16, %v692_v18  ;;  %v619_v45 = vrot.slane %v572_v37, 2  ;;  %v574_v46 = vrot.slane %v572_v37, 1  ;;  %v846_v60 = vrot.slane %v4957_v27, 1 }
  0xc6   : > { %1067 = vmatpush.bf16.msrb.mxu2 %v4472_v7  ;;  %v5146_v28 = vunpack.c.l.b16 %v764_v23  ;;  %v485_v42 = vpack.c.bf16 %v477_v8, %v477_v8  ;;  %v847_v61 = vrot.slane %v4937_v5, 2  ;;  %v689_v35 = vrot.slane %v572_v37, 4 }
  0xc7   : > { %1565 = vmatpush.bf16.msra.mxu0 %v4493_v63  ;;  %1096 = vmatpush.bf16.msrb.mxu3 %v4480_v14 }
  0xc8   : > { %v5153_v32 = vpack.c.b16 %v5146_v28, %v5146_v28  ;;  %v848_v10 = vor.u32 %v847_v61, %v846_v60 }
  0xc9   : > { %625 = vrot.lane.b32.xlu1 %v614_v1, %s4743_s22  ;;  %670 = vrot.lane.b32.xlu2 %v663_v2, %s4742_s21  ;;  %v647_v1 = vor.u32 %v646_v53, %v645_v52  ;;  %v5122_v2 = vpack.c.b16 %v5107_v58, %v5107_v58  ;;  %v4489_v53 = vld [vmem:[%s6383_s5 + $0x120] sm:$0xff] }
  0xca   : > { %695 = vrot.lane.b32.xlu0 %v684_v0, %s4743_s22  ;;  %v687_v0 = vor.u32 %v686_v49, %v685_v44  ;;  %1068 = vmatpush.bf16.msrb.mxu2 %v4471_v24  ;;  %v501_v49 = vunpack.c.l.b16 %v485_v42 }
  0xcb   : > { %1280 = vmatmul.bf16.vlgmr.msrb.gmra.mxu1 %v5122_v2  ;;  %1566 = vmatpush.bf16.msra.mxu0 %v4492_v51 }
  0xcc   : > { %1097 = vmatpush.bf16.msrb.mxu3 %v4479_v25  ;;  %v509_v59 = vpack.c.b16 %v501_v49, %v501_v49 }
  0xcd   : > { %1069 = vmatmul.bf16.vlgmr.msrb.gmra.mxu2 %v5122_v2 }
  0xce   : > { %3566 = vmatmul.msk.bf16.gmra.mxu0 %vm380_vm0, %v5045_v21 }
  0xcf   : > { %1567 = vmatpush.bf16.msra.mxu0 %v4491_v33  ;;  %1098 = vmatmul.bf16.vlgmr.msrb.gmra.mxu3 %v5153_v32 }
  0xd1   : > { %602 = vrot.lane.b32.xlu1 %v594_v30, %s4742_s21  ;;  %580 = vrot.lane.b32.xlu2 %v563_v36, %s4741_s28  ;;  %v570_v30 = vshrl.u32 %v4990_v50, 16  ;;  %v617_v36 = vor.u32 %v616_v22, %v615_v20 }
  0xd2   : > { %672 = vrot.lane.b32.xlu0 %v664_v29, %s4742_s21  ;;  %v500_v29 = vunpack.c.l.b16 %v484_v3  ;;  %v517_v3 = vrot.slane %v509_v59, 6 }
  0xd3   : > { %v648_v31 = vrot.slane %v570_v30, 2  ;;  %v618_v44 = vrot.slane %v570_v30, 1  ;;  %1568 = vmatpush.bf16.msra.mxu0 %v4490_v47  ;;  %v575_v54 = vor.u32 %v574_v46, %v570_v30  ;;  %v688_v63 = vrot.slane %v570_v30, 3 }
  0xd4   : > { %v508_v39 = vpack.c.b16 %v500_v29, %v500_v29  ;;  %v534_v18 = vsel %vm519_vm1, 0, %v517_v3 }
  0xd5   : > { %v650_v52 = vor.u32 %v649_v43, %v648_v31  ;;  %v620_v9 = vor.u32 %v619_v45, %v618_v44  ;;  %v690_v16 = vor.u32 %v689_v35, %v688_v63 }
  0xd6   : > { %v516_v48 = vrot.slane %v508_v39, 6 }
  0xd7   : > { %1569 = vmatpush.bf16.msra.mxu0 %v4489_v53 }
  0xd8   : > { %v532_v55 = vsel %vm519_vm1, 0, %v516_v48 }
  0xd9   : > { %697 = vrot.lane.b32.xlu1 %v687_v0, %s4743_s22  ;;  %657 = vrot.lane.b32.xlu2 %v647_v1, %s4741_s28  ;;  %v468_v0 = vpop.f32.mrf.mxu1  ;;  %v5180_v1 = vsel %vm537_vm2, %v532_v55, 0 }
  0xda   : > { %582 = vrot.lane.b32.xlu0 %v569_v62, %s4741_s28  ;;  %v861_v62 = vrot.slane %v4937_v5, 4  ;;  %v469_v7 = vadd.f32 %v4897_v19, %v468_v0  ;;  %v1359_v27 = vshrl.u32 %v5180_v1, 16  ;;  %v1361_v5 = vshll.u32 %v5180_v1, 16 }
  0xdb   : > { %1285 = vmatmul.bf16.gmra.mxu1 %v5122_v2  ;;  %v5192_v19 = vsel %vm537_vm2, %v534_v18, 0  ;;  %v1368_v29 = vrot.slane %v5180_v1, 1  ;;  %v1382_v53 = vrot.slane %v5180_v1, 3  ;;  %v4470_v18 = vld [vmem:[%s6383_s5 + $0x88] sm:$0xff] }
  0xdc   : > { %v862_v14 = vor.u32 %v861_v62, %v860_v12  ;;  %v478_v51 = vmax.f32 %v469_v7, 0.0  ;;  %v1371_v20 = vrot.slane %v1359_v27, 1  ;;  %v1372_v22 = vrot.slane %v1361_v5, 2  ;;  %1336 = vmatpush.bf16.msra.mxu3 %v4470_v18 }
  0xdd   : > { %v1363_v23 = vrot.slane %v1361_v5, 1  ;;  %v1657_v24 = vshrl.u32 %v5192_v19, 16  ;;  %v1659_v25 = vshll.u32 %v5192_v19, 16  ;;  %v1666_v39 = vrot.slane %v5192_v19, 1 }
  0xde   : > { %1570 = vmatmul.bf16.vlgmr.msra.gmra.mxu0 %v5122_v2  ;;  %v486_v8 = vpack.c.bf16 %v478_v51, %v478_v51  ;;  %v1385_v46 = vrot.slane %v1359_v27, 3  ;;  %v1386_v47 = vrot.slane %v1361_v5, 4  ;;  %v1377_v48 = vrot.slane %v1359_v27, 2 }
  0xdf   : > { %v1364_v30 = vor.u32 %v1363_v23, %v1359_v27  ;;  %v1669_v33 = vrot.slane %v1657_v24, 1  ;;  %v1378_v49 = vrot.slane %v1361_v5, 3  ;;  %v1683_v55 = vrot.slane %v1657_v24, 3  ;;  %v4468_v5 = vld [vmem:[%s6383_s5 + $0x78] sm:$0xff] }
  0xe0   : > { %v502_v37 = vunpack.c.l.b16 %v486_v8  ;;  %v1684_v60 = vrot.slane %v1659_v25, 4  ;;  %v1675_v61 = vrot.slane %v1657_v24, 2  ;;  %v1676_v12 = vrot.slane %v1659_v25, 3  ;;  %1301 = vmatpush.bf16.msra.mxu2 %v4468_v5 }
  0xe1   : > { %674 = vrot.lane.b32.xlu1 %v665_v34, %s4742_s21  ;;  %627 = vrot.lane.b32.xlu2 %v617_v36, %s4743_s22  ;;  %v1670_v34 = vrot.slane %v1659_v25, 2  ;;  %v1661_v36 = vrot.slane %v1659_v25, 1  ;;  %v1680_v63 = vrot.slane %v5192_v19, 3 }
  0xe2   : > { %604 = vrot.lane.b32.xlu0 %v595_v13, %s4742_s21  ;;  %v1373_v13 = vor.u32 %v1372_v22, %v1371_v20  ;;  %v510_v43 = vpack.c.b16 %v502_v37, %v502_v37  ;;  %v1685_v3 = vor.u32 %v1684_v60, %v1683_v55  ;;  %v632_v37 = vrot.slane %v4905_v40, 2 }
  0xe3   : > { %v1671_v42 = vor.u32 %v1670_v34, %v1669_v33  ;;  %v1662_v31 = vor.u32 %v1661_v36, %v1657_v24 }
  0xe4   : > { %v518_v44 = vrot.slane %v510_v43, 6 }
  0xe9   : > { %629 = vrot.lane.b32.xlu1 %v620_v9, %s4743_s22  ;;  %584 = vrot.lane.b32.xlu2 %v575_v54, %s4741_s28  ;;  %v1387_v9 = vor.u32 %v1386_v47, %v1385_v46  ;;  %v1379_v54 = vor.u32 %v1378_v49, %v1377_v48  ;;  %v4466_v46 = vld [vmem:[%s6383_s5 + $0x68] sm:$0xff] }
  0xea   : > { %659 = vrot.lane.b32.xlu0 %v650_v52, %s4741_s28  ;;  %v536_v52 = vsel %vm519_vm1, 0, %v518_v44 }
  0xeb   : > { %v5208_v59 = vsel %vm537_vm2, %v536_v52, 0 }
  0xec   : > { %v1955_v35 = vshrl.u32 %v5208_v59, 16  ;;  %v1957_v0 = vshll.u32 %v5208_v59, 16  ;;  %v1964_v51 = vrot.slane %v5208_v59, 1  ;;  %v1978_v34 = vrot.slane %v5208_v59, 3 }
  0xee   : > { %v1973_v7 = vrot.slane %v1955_v35, 2  ;;  %v1967_v23 = vrot.slane %v1955_v35, 1  ;;  %v1968_v24 = vrot.slane %v1957_v0, 2  ;;  %v1981_v25 = vrot.slane %v1955_v35, 3 }
  0xf1   : > { %863 = vrot.lane.b32.xlu1 %v862_v14, %s4743_s22  ;;  %699 = vrot.lane.b32.xlu2 %v690_v16, %s4743_s22  ;;  %v1974_v14 = vrot.slane %v1957_v0, 3  ;;  %v1959_v16 = vrot.slane %v1957_v0, 1 }
  0xf2   : > { %849 = vrot.lane.b32.xlu0 %v848_v10, %s4743_s22  ;;  %v1677_v10 = vor.u32 %v1676_v12, %v1675_v61 }
  0xf3   : > { %v1975_v27 = vor.u32 %v1974_v14, %v1973_v7  ;;  %v1960_v20 = vor.u32 %v1959_v16, %v1955_v35  ;;  %v5279_v7 = vpop.f32.mrf.mxu2  ;;  %v4469_v14 = vld [vmem:[%s6383_s5 + $0x80] sm:$0xff]  ;;  %v4502_v16 = vld [vmem:[%s6383_s5 + $0x188] sm:$0xff] }
  0xf4   : > { %6392 = vst [vmem:[#allocation5_spill] sm:$0xff] %v5279_v7  ;;  %1337 = vmatpush.bf16.msra.mxu3 %v4469_v14 }
  0xf9   : > { %1374 = vrot.lane.b32.xlu1 %v1373_v13, %s4743_s22  ;;  %1365 = vrot.lane.b32.xlu2 %v1364_v30, %s4741_s28  ;;  %v1969_v30 = vor.u32 %v1968_v24, %v1967_v23 }
  0xfa   : > { %1369 = vrot.lane.b32.xlu0 %v1368_v29, %s4742_s21  ;;  %v1982_v29 = vrot.slane %v1957_v0, 4 }
  0xfc   : > { %v1983_v33 = vor.u32 %v1982_v29, %v1981_v25  ;;  %v5293_v25 = vpop.f32.mrf.mxu2  ;;  %v4501_v29 = vld [vmem:[%s6383_s5 + $0x180] sm:$0xff] }
  0xfd   : > { %6393 = vst [vmem:[#allocation6_spill] sm:$0xff] %v5293_v25  ;;  %v4575_v25 = vld [vmem:[%s6383_s5 + $0x3d0] sm:$0xff] }
 0x101   : > { %1672 = vrot.lane.b32.xlu1 %v1671_v42, %s4743_s22  ;;  %1663 = vrot.lane.b32.xlu2 %v1662_v31, %s4741_s28 }
 0x102   : > { %1667 = vrot.lane.b32.xlu0 %v1666_v39, %s4742_s21  ;;  %v4467_v39 = vld [vmem:[%s6383_s5 + $0x70] sm:$0xff] }
 0x103   : > { %v669_v45 = vpop.permute.xlu2 %668  ;;  %1302 = vmatpush.bf16.msra.mxu2 %v4467_v39  ;;  %v633_v39 = vrot.slane %v4942_v11, 2 }
 0x107   : > { %1303 = vmatpush.bf16.msra.mxu2 %v4466_v46  ;;  %v634_v46 = vrot.slane %v4954_v26, 2 }
 0x109   : > { %1388 = vrot.lane.b32.xlu1 %v1387_v9, %s4743_s22  ;;  %1380 = vrot.lane.b32.xlu2 %v1379_v54, %s4741_s28 }
 0x10a   : > { %1383 = vrot.lane.b32.xlu0 %v1382_v53, %s4742_s21 }
 0x10b   : > { %v5212_v62 = vpop.permute.xlu2 %844 }
 0x111   : > { %1686 = vrot.lane.b32.xlu1 %v1685_v3, %s4743_s22  ;;  %1678 = vrot.lane.b32.xlu2 %v1677_v10, %s4741_s28  ;;  %v4503_v3 = vld [vmem:[%s6383_s5 + $0x190] sm:$0xff]  ;;  %v4464_v10 = vld [vmem:[%s6383_s5 + $0x58] sm:$0xff] }
 0x112   : > { %1681 = vrot.lane.b32.xlu0 %v1680_v63, %s4742_s21  ;;  %v4504_v63 = vld [vmem:[%s6383_s5 + $0x198] sm:$0xff] }
 0x113   : > { %v579_v22 = vpop.permute.xlu2 %578  ;;  %1591 = vmatpush.bf16.msra.mxu1 %v4504_v63 }
 0x114   : > { %v709_v52 = vsel %vm380_vm0, %v4905_v40, %v579_v22  ;;  %v4465_v40 = vld [vmem:[%s6383_s5 + $0x60] sm:$0xff] }
 0x115   : > { %1304 = vmatpush.bf16.msra.mxu2 %v4465_v40 }
 0x117   : > { %1592 = vmatpush.bf16.msra.mxu1 %v4503_v3 }
 0x119   : > { %1965 = vrot.lane.b32.xlu1 %v1964_v51, %s4742_s21  ;;  %1961 = vrot.lane.b32.xlu2 %v1960_v20, %s4741_s28 }
 0x11a   : > { %1976 = vrot.lane.b32.xlu0 %v1975_v27, %s4741_s28  ;;  %1305 = vmatpush.bf16.msra.mxu2 %v4464_v10  ;;  %s6319_s28 = scalar_lea.vmem [#allocation2], %s3412_s26 }
 0x11b   : > { %v599_v13 = vpop.permute.xlu1 %598  ;;  %v5233_v36 = vpop.permute.xlu2 %855  ;;  %1593 = vmatpush.bf16.msra.mxu1 %v4502_v16 }
 0x11c   : > { %v5230_v8 = vpop.permute.xlu0 %858 }
 0x11f   : > { %1594 = vmatpush.bf16.msra.mxu1 %v4501_v29  ;;  %v4518_v29 = vld [vmem:[%s6383_s5 + $0x208] sm:$0xff] }
 0x121   : > { %1984 = vrot.lane.b32.xlu1 %v1983_v33, %s4743_s22  ;;  %1979 = vrot.lane.b32.xlu2 %v1978_v34, %s4742_s21  ;;  %v4500_v34 = vld [vmem:[%s6383_s5 + $0x178] sm:$0xff]  ;;  %s3342_s21 = scalar_lea.hbm %s6387_s9, %s4617_s27  ;;  %s4696_s27 = scalar_lea.hbm %s6387_s9, 128 }
 0x122   : > { %1970 = vrot.lane.b32.xlu0 %v1969_v30, %s4743_s22  ;;  %v4522_v30 = vld [vmem:[%s6383_s5 + $0x228] sm:$0xff]  ;;  %s3343_s22 = sshll.u32 %s6319_s28, 4  ;;  %s3345_s16 = sshll.u32 %s3342_s21, 4  ;;  %s3344_s22 = int_to_ptr.vmem [resolvable:$true] %s3343_s22  ;;  %s3346_s16 = int_to_ptr.hbm [resolvable:$true] %s3345_s16 }
 0x123   : > { %v694_v31 = vpop.permute.xlu1 %693  ;;  %v671_v53 = vpop.permute.xlu2 %670  ;;  %1889 = vmatpush.bf16.msrb.mxu0 %v4522_v30  ;;  %1595 = vmatpush.bf16.msra.mxu1 %v4500_v34  ;;  %s4690_s17 = sshra.s32 %s3346_s16, 4  ;;  %s4691_s17 = int_to_ptr.hbm [resolvable:$true] %s4690_s17 }
 0x124   : > { %v654_v42 = vpop.permute.xlu0 %653  ;;  %v5368_v34 = vpop.f32.mrf.mxu3  ;;  %s4692_s23 = scalar_lea.hbm %s4691_s17, 64  ;;  %p4697_p0 = scmp.lt.s32.totalorder %s4691_s17, %s6387_s9 }
 0x125   : > { %v743_v43 = vsel %vm380_vm0, %v632_v37, %v654_v42  ;;  %6396 = vst [vmem:[#allocation9_spill] sm:$0xff] %v5368_v34  ;;  %v1390_v34 = vrot.slane %v5180_v1, 4  ;;  %p4693_p11 = scmp.ne.s32.totalorder %s4691_s17, %s4692_s23  ;;  %p4698_p1 = scmp.lt.s32.totalorder %s4696_s27, %s4692_s23 }
 0x126   : > { %v756_v44 = vsel %vm716_vm3, %v743_v43, %v669_v45  ;;  %v720_v45 = vsel %vm716_vm3, %v709_v52, %v599_v13  ;;  %v4463_v13 = vld [vmem:[%s6383_s5 + $0x50] sm:$0xff] }
 0x127   : > { %v5248_v47 = vsel %vm727_vm4, %v756_v44, %v694_v31  ;;  %1306 = vmatpush.bf16.msra.mxu2 %v4463_v13  ;;  %v5311_v31 = vpop.f32.mrf.mxu2  ;;  %v4499_v43 = vld [vmem:[%s6383_s5 + $0x170] sm:$0xff]  ;;  %v4521_v44 = vld [vmem:[%s6383_s5 + $0x220] sm:$0xff]  ;;  %p4694_p12 = pnand %p4693_p11, %p4834_p5  ;;  %p4699_p2 = por %p4698_p1, %p4697_p0 }
 0x128   : > { %v787_v48 = vunpack.c.l.b16 %v5248_v47  ;;  %6394 = vst [vmem:[#allocation7_spill] sm:$0xff] %v5311_v31  ;;  %1890 = vmatpush.bf16.msrb.mxu0 %v4521_v44  ;;  %1596 = vmatpush.bf16.msra.mxu1 %v4499_v43  ;;  %v4516_v43 = vld [vmem:[%s6383_s5 + $0x1f8] sm:$0xff] }
 0x129   : > { %v4508_v47 = vld [vmem:[%s6383_s5 + $0x1b8] sm:$0xff]  ;;  %p4695_p13 = pneg %p4694_p12 }
 0x12a   : > { %v5254_v49 = vpack.c.b16 %v787_v48, %v5146_v28 }
 0x12b   : > { %v5260_v54 = vpop.permute.xlu1 %840  ;;  %v581_v0 = vpop.permute.xlu2 %580  ;;  %p4700_p3 = pnand %p4699_p2, %p4695_p13 }
 0x12c   : > { %1103 = vmatmul.bf16.gmra.mxu3 %v5254_v49  ;;  %v624_v9 = vpop.permute.xlu0 %623  ;;  %v711_v27 = vsel %vm380_vm0, %v4942_v11, %v581_v0  ;;  %v4462_v11 = vld [vmem:[%s6383_s5 + $0x48] sm:$0xff] }
 0x12d   : > { %v731_v55 = vsel %vm727_vm4, %v720_v45, %v624_v9  ;;  %v4520_v9 = vld [vmem:[%s6383_s5 + $0x218] sm:$0xff]  ;;  %1307 = vmatpush.bf16.msra.mxu2 %v4462_v11 }
 0x12e   : > { %v786_v60 = vunpack.c.l.b16 %v731_v55  ;;  %1891 = vmatpush.bf16.msrb.mxu0 %v4520_v9 }
 0x130   : > { %v5264_v61 = vpack.c.b16 %v786_v60, %v5107_v58 }
 0x132   : > { %1074 = vmatmul.bf16.gmra.mxu2 %v5264_v61 }
 0x133   : > { %v656_v35 = vpop.permute.xlu1 %655  ;;  %v658_v23 = vpop.permute.xlu2 %657 }
 0x134   : > { %v601_v12 = vpop.permute.xlu0 %600  ;;  %v746_v42 = vsel %vm380_vm0, %v633_v39, %v656_v35  ;;  %v749_v55 = vsel %vm380_vm0, %v634_v46, %v658_v23  ;;  %v4506_v39 = vld [vmem:[%s6383_s5 + $0x1a8] sm:$0xff]  ;;  %v635_v46 = vrot.slane %v4990_v50, 2 }
 0x135   : > { %v722_v18 = vsel %vm716_vm3, %v711_v27, %v601_v12  ;;  %v758_v45 = vsel %vm716_vm3, %v746_v42, %v671_v53  ;;  %v4498_v53 = vld [vmem:[%s6383_s5 + $0x168] sm:$0xff] }
 0x136   : > { %1597 = vmatpush.bf16.msra.mxu1 %v4498_v53  ;;  %v4514_v42 = vld [vmem:[%s6383_s5 + $0x1e8] sm:$0xff] }
 0x137   : > { %1860 = vmatpush.bf16.msrb.mxu3 %v4514_v42 }
 0x13b   : > { %v626_v51 = vpop.permute.xlu1 %625  ;;  %v628_v52 = vpop.permute.xlu2 %627 }
 0x13c   : > { %v696_v5 = vpop.permute.xlu0 %695  ;;  %v733_v20 = vsel %vm727_vm4, %v722_v18, %v626_v51  ;;  %v4497_v18 = vld [vmem:[%s6383_s5 + $0x160] sm:$0xff]  ;;  %v4519_v51 = vld [vmem:[%s6383_s5 + $0x210] sm:$0xff] }
 0x13d   : > { %v789_v22 = vunpack.c.l.b16 %v733_v20  ;;  %v4461_v20 = vld [vmem:[%s6383_s5 + $0x40] sm:$0xff]  ;;  %1892 = vmatpush.bf16.msrb.mxu0 %v4519_v51  ;;  %1598 = vmatpush.bf16.msra.mxu1 %v4497_v18  ;;  %v4515_v18 = vld [vmem:[%s6383_s5 + $0x1f0] sm:$0xff] }
 0x13e   : > { %1308 = vmatpush.bf16.msra.mxu2 %v4461_v20 }
 0x13f   : > { %v5291_v24 = vpack.c.b16 %v789_v22, %v786_v60  ;;  %v5329_v60 = vsel %vm727_vm4, %v758_v45, %v696_v5  ;;  %v5350_v5 = vpop.f32.mrf.mxu2 }
 0x140   : > { %v790_v10 = vunpack.c.l.b16 %v5329_v60  ;;  %6395 = vst [vmem:[#allocation8_spill] sm:$0xff] %v5350_v5 }
 0x141   : > { %1290 = vmatmul.bf16.gmra.mxu1 %v5291_v24  ;;  %1575 = vmatmul.bf16.gmra.mxu0 %v5291_v24 }
 0x142   : > { %1893 = vmatpush.bf16.msrb.mxu0 %v4518_v29  ;;  %1626 = vmatpush.bf16.msrb.mxu2 %v4506_v39 }
 0x143   : > { %v603_v37 = vpop.permute.xlu1 %602  ;;  %v585_v13 = vpop.permute.xlu2 %584 }
 0x144   : > { %v673_v33 = vpop.permute.xlu0 %672  ;;  %v715_v44 = vsel %vm380_vm0, %v4990_v50, %v585_v13 }
 0x145   : > { %v760_v12 = vsel %vm716_vm3, %v749_v55, %v673_v33 }
 0x14b   : > { %v698_v63 = vpop.permute.xlu1 %697  ;;  %v700_v9 = vpop.permute.xlu2 %699 }
 0x14c   : > { %v583_v40 = vpop.permute.xlu0 %582  ;;  %v5338_v0 = vsel %vm727_vm4, %v760_v12, %v698_v63  ;;  %v851_v12 = vrot.slane %v4908_v41, 2  ;;  %v867_v63 = vsel %vm380_vm0, %v4908_v41, %v5260_v54  ;;  %v4513_v41 = vld [vmem:[%s6383_s5 + $0x1e0] sm:$0xff] }
 0x14d   : > { %v713_v35 = vsel %vm380_vm0, %v4954_v26, %v583_v40  ;;  %v793_v14 = vunpack.c.l.b16 %v5338_v0  ;;  %1861 = vmatpush.bf16.msrb.mxu3 %v4513_v41 }
 0x14e   : > { %v724_v3 = vsel %vm716_vm3, %v713_v35, %v603_v37  ;;  %v5373_v37 = vpop.f32.mrf.mxu2  ;;  %v874_v51 = vsel %vm380_vm0, %v851_v12, %v5233_v36 }
 0x14f   : > { %v735_v16 = vsel %vm727_vm4, %v724_v3, %v628_v52  ;;  %v5348_v26 = vpack.c.b16 %v793_v14, %v790_v10  ;;  %6397 = vst [vmem:[#allocation10_spill] sm:$0xff] %v5373_v37  ;;  %v876_v36 = vsel %vm716_vm3, %v874_v51, %v5230_v8 }
 0x150   : > { %v792_v27 = vunpack.c.l.b16 %v735_v16  ;;  %v5399_v16 = vpop.f32.mrf.mxu3 }
 0x151   : > { %1108 = vmatmul.bf16.gmra.mxu3 %v5348_v26  ;;  %6399 = vst [vmem:[#allocation12_spill] sm:$0xff] %v5399_v16 }
 0x152   : > { %v5361_v23 = vpack.c.b16 %v792_v27, %v789_v22  ;;  %v4517_v22 = vld [vmem:[%s6383_s5 + $0x200] sm:$0xff] }
 0x153   : > { %v675_v33 = vpop.permute.xlu1 %674  ;;  %1894 = vmatpush.bf16.msrb.mxu0 %v4517_v22  ;;  %v1366_v42 = vpop.permute.xlu2 %1365 }
 0x154   : > { %v605_v30 = vpop.permute.xlu0 %604  ;;  %1079 = vmatmul.bf16.gmra.mxu2 %v5361_v23 }
 0x155   : > { %v726_v45 = vsel %vm716_vm3, %v715_v44, %v605_v30 }
 0x156   : > { %v5397_v3 = vpop.f32.mrf.mxu2 }
 0x157   : > { %1895 = vmatpush.bf16.msrb.mxu0 %v4516_v43  ;;  %6398 = vst [vmem:[#allocation11_spill] sm:$0xff] %v5397_v3  ;;  %v1688_v3 = vrot.slane %v5192_v19, 4 }
 0x158   : > { %v1099_v8 = vpop.f32.mrf.mxu3 }
 0x15b   : > { %v630_v11 = vpop.permute.xlu1 %629  ;;  %1896 = vmatpush.bf16.msrb.mxu0 %v4515_v18  ;;  %v4511_v18 = vld [vmem:[%s6383_s5 + $0x1d0] sm:$0xff] }
 0x15c   : > { %v660_v52 = vpop.permute.xlu0 %659  ;;  %v737_v55 = vsel %vm727_vm4, %v726_v45, %v630_v11  ;;  %v1392_v45 = vsel %vm380_vm0, %v5180_v1, %v1366_v42  ;;  %v4510_v42 = vld [vmem:[%s6383_s5 + $0x1c8] sm:$0xff] }
 0x15d   : > { %v752_v40 = vsel %vm380_vm0, %v635_v46, %v660_v52  ;;  %v795_v53 = vunpack.c.l.b16 %v737_v55  ;;  %v4512_v52 = vld [vmem:[%s6383_s5 + $0x1d8] sm:$0xff] }
 0x15e   : > { %v762_v35 = vsel %vm716_vm3, %v752_v40, %v675_v33  ;;  %v1070_v44 = vpop.f32.mrf.mxu2  ;;  %1862 = vmatpush.bf16.msrb.mxu3 %v4512_v52  ;;  %v1128_v40 = vpop.f32.mrf.mxu0  ;;  %v4509_v52 = vld [vmem:[%s6383_s5 + $0x1c0] sm:$0xff] }
 0x15f   : > { %v5394_v50 = vpack.c.b16 %v795_v53, %v792_v27  ;;  %v5412_v54 = vsel %vm727_vm4, %v762_v35, %v700_v9  ;;  %v869_v27 = vsel %vm716_vm3, %v867_v63, %v5212_v62  ;;  %v1100_v46 = vadd.f32 %v1099_v8, %v1070_v44  ;;  %v1664_v35 = vpop.permute.xlu2 %1663 }
 0x160   : > { %v796_v22 = vunpack.c.l.b16 %v5412_v54  ;;  %v1690_v51 = vsel %vm380_vm0, %v5192_v19, %v1664_v35  ;;  %v5472_v44 = vpack.c.b16 %v790_v10, %v787_v48  ;;  %v4524_v48 = vld [vmem:[%s6383_s5 + $0x238] sm:$0xff]  ;;  %v4523_v10 = vld [vmem:[%s6383_s5 + $0x230] sm:$0xff] }
 0x161   : > { %1295 = vmatmul.bf16.gmra.mxu1 %v5394_v50  ;;  %1580 = vmatmul.bf16.gmra.mxu0 %v5394_v50 }
 0x162   : > { %1863 = vmatpush.bf16.msrb.mxu3 %v4511_v18  ;;  %1924 = vmatpush.bf16.msrb.mxu1 %v4524_v48  ;;  %v4532_v18 = vld [vmem:[%s6383_s5 + $0x278] sm:$0xff]  ;;  %v4539_v48 = vld [vmem:[%s6383_s5 + $0x2b0] sm:$0xff] }
 0x163   : > { %v864_v29 = vpop.permute.xlu1 %863 }
 0x164   : > { %v850_v20 = vpop.permute.xlu0 %849  ;;  %v5420_v30 = vsel %vm727_vm4, %v876_v36, %v864_v29 }
 0x165   : > { %v871_v13 = vsel %vm727_vm4, %v869_v27, %v850_v20  ;;  %v882_v39 = vunpack.c.l.b16 %v5420_v30 }
 0x166   : > { %v881_v33 = vunpack.c.l.b16 %v871_v13  ;;  %v5453_v36 = vpop.f32.mrf.mxu0  ;;  %1864 = vmatpush.bf16.msrb.mxu3 %v4510_v42  ;;  %1925 = vmatpush.bf16.msrb.mxu1 %v4523_v10 }
 0x167   : > { %v5428_v62 = vpack.c.b16 %v882_v39, %v796_v22 }
 0x168   : > { %v5424_v43 = vpack.c.b16 %v881_v33, %v795_v53 }
 0x169   : > { %1113 = vmatmul.bf16.gmra.mxu3 %v5428_v62 }
 0x16a   : > { %1084 = vmatmul.bf16.gmra.mxu2 %v5424_v43  ;;  %1865 = vmatpush.bf16.msrb.mxu3 %v4509_v52 }
 0x16b   : > { %v1375_v9 = vpop.permute.xlu1 %1374 }
 0x16c   : > { %v1370_v11 = vpop.permute.xlu0 %1369 }
 0x16d   : > { %v1394_v55 = vsel %vm716_vm3, %v1392_v45, %v1370_v11  ;;  %v4507_v45 = vld [vmem:[%s6383_s5 + $0x1b0] sm:$0xff]  ;;  %v5500_v11 = vpack.c.b16 %v796_v22, %v793_v14 }
 0x16e   : > { %v1396_v53 = vsel %vm727_vm4, %v1394_v55, %v1375_v9  ;;  %v5474_v8 = vpop.f32.mrf.mxu0  ;;  %1866 = vmatpush.bf16.msrb.mxu3 %v4508_v47  ;;  %v1281_v9 = vpop.f32.mrf.mxu1  ;;  %v4531_v47 = vld [vmem:[%s6383_s5 + $0x270] sm:$0xff] }
 0x16f   : > { %v1406_v12 = vunpack.c.l.b16 %v1396_v53  ;;  %v1381_v55 = vpop.permute.xlu2 %1380 }
 0x171   : > { %v5439_v63 = vpack.c.b16 %v1406_v12, %v881_v33  ;;  %1599 = vmatmul.bf16.vlgmr.msra.gmra.mxu1 %v5153_v32  ;;  %v4505_v33 = vld [vmem:[%s6383_s5 + $0x1a0] sm:$0xff] }
 0x172   : > { %1627 = vmatpush.bf16.msrb.mxu2 %v4505_v33  ;;  %1867 = vmatpush.bf16.msrb.mxu3 %v4507_v45  ;;  %v4541_v33 = vld [vmem:[%s6383_s5 + $0x2c0] sm:$0xff] }
 0x173   : > { %1585 = vmatmul.bf16.gmra.mxu0 %v5439_v63  ;;  %v1673_v54 = vpop.permute.xlu1 %1672 }
 0x174   : > { %v1668_v41 = vpop.permute.xlu0 %1667 }
 0x175   : > { %v1692_v27 = vsel %vm716_vm3, %v1690_v51, %v1668_v41  ;;  %v4540_v51 = vld [vmem:[%s6383_s5 + $0x2b8] sm:$0xff]  ;;  %v4542_v41 = vld [vmem:[%s6383_s5 + $0x2c8] sm:$0xff] }
 0x176   : > { %v5450_v20 = vsel %vm727_vm4, %v1692_v27, %v1673_v54  ;;  %v5490_v60 = vpop.f32.mrf.mxu0  ;;  %2222 = vmatpush.bf16.msra.mxu0 %v4542_v41  ;;  %v4537_v41 = vld [vmem:[%s6383_s5 + $0x2a0] sm:$0xff] }
 0x177   : > { %v6389_v29 = vunpack.c.l.b16 %v5450_v20  ;;  %v1679_v52 = vpop.permute.xlu2 %1678 }
 0x179   : > { %v5458_v13 = vpack.c.b16 %v6389_v29, %v1406_v12  ;;  %3639 = vmatmul.msk.bf16.vlgmr.msra.gmra.mxu3 %vm380_vm0, %v4889_v17 }
 0x17a   : > { %1309 = vmatmul.bf16.vlgmr.msra.gmra.mxu2 %v5153_v32  ;;  %2187 = vmatpush.bf16.msra.mxu3 %v4540_v51  ;;  %v4529_v51 = vld [vmem:[%s6383_s5 + $0x260] sm:$0xff] }
 0x17b   : > { %v1389_v0 = vpop.permute.xlu1 %1388  ;;  %2158 = vmatpush.bf16.msra.mxu2 %v4532_v18  ;;  %2223 = vmatpush.bf16.msra.mxu0 %v4541_v33  ;;  %v5567_v18 = vpop.f32.mrf.mxu1 }
 0x17c   : > { %v1384_v53 = vpop.permute.xlu0 %1383 }
 0x17e   : > { %v5507_v12 = vpop.f32.mrf.mxu0  ;;  %2188 = vmatpush.bf16.msra.mxu3 %v4539_v48  ;;  %v4549_v48 = vld [vmem:[%s6383_s5 + $0x300] sm:$0xff] }
 0x17f   : > { %2159 = vmatpush.bf16.msra.mxu2 %v4531_v47 }
 0x181   : > { %1604 = vmatmul.bf16.gmra.mxu1 %v5472_v44 }
 0x183   : > { %1897 = vmatmul.bf16.vlgmr.msrb.gmra.mxu0 %v5254_v49  ;;  %v1129_v49 = vadd.f32 %v1128_v40, %v1100_v46  ;;  %v1376_v40 = vrot.slane %v5180_v1, 2  ;;  %v4560_v1 = vld [vmem:[%s6383_s5 + $0x358] sm:$0xff] }
 0x184   : > { %v1682_v10 = vpop.permute.xlu0 %1681 }
 0x185   : > { %v5504_v46 = vadd.f32 %v1281_v9, %v1129_v49  ;;  %v1399_v35 = vsel %vm380_vm0, %v1376_v40, %v1381_v55  ;;  %v1674_v49 = vrot.slane %v5192_v19, 2  ;;  %v4530_v40 = vld [vmem:[%s6383_s5 + $0x268] sm:$0xff] }
 0x186   : > { %v1401_v14 = vsel %vm716_vm3, %v1399_v35, %v1384_v53  ;;  %v5524_v27 = vpop.f32.mrf.mxu0  ;;  %v4538_v53 = vld [vmem:[%s6383_s5 + $0x2a8] sm:$0xff]  ;;  %2160 = vmatpush.bf16.msra.mxu2 %v4530_v40  ;;  %v4527_v40 = vld [vmem:[%s6383_s5 + $0x250] sm:$0xff] }
 0x187   : > { %v1403_v22 = vsel %vm727_vm4, %v1401_v14, %v1389_v0  ;;  %v1697_v30 = vsel %vm380_vm0, %v1674_v49, %v1679_v52  ;;  %v5559_v0 = vpop.f32.mrf.mxu3  ;;  %v5561_v14 = vpop.f32.mrf.mxu2  ;;  %2189 = vmatpush.bf16.msra.mxu3 %v4538_v53  ;;  %v4528_v49 = vld [vmem:[%s6383_s5 + $0x258] sm:$0xff]  ;;  %v4535_v53 = vld [vmem:[%s6383_s5 + $0x290] sm:$0xff]  ;;  %v4562_v19 = vld [vmem:[%s6383_s5 + $0x368] sm:$0xff] }
 0x188   : > { %v1407_v54 = vunpack.c.l.b16 %v1403_v22  ;;  %v1699_v45 = vsel %vm716_vm3, %v1697_v30, %v1682_v10  ;;  %v4536_v10 = vld [vmem:[%s6383_s5 + $0x298] sm:$0xff]  ;;  %v5597_v30 = vpop.f32.mrf.mxu1 }
 0x189   : > { %3640 = vmatmul.msk.bf16.gmra.mxu3 %vm380_vm0, %v4889_v17 }
 0x18a   : > { %1314 = vmatmul.bf16.gmra.mxu2 %v5153_v32  ;;  %v5531_v42 = vpack.c.b16 %v1407_v54, %v882_v39  ;;  %v1687_v39 = vpop.permute.xlu1 %1686 }
 0x18b   : > { %v5547_v55 = vsel %vm727_vm4, %v1699_v45, %v1687_v39  ;;  %2161 = vmatpush.bf16.msra.mxu2 %v4529_v51  ;;  %2190 = vmatpush.bf16.msra.mxu3 %v4537_v41  ;;  %v4548_v45 = vld [vmem:[%s6383_s5 + $0x2f8] sm:$0xff]  ;;  %v4546_v51 = vld [vmem:[%s6383_s5 + $0x2e8] sm:$0xff] }
 0x18c   : > { %v6388_v35 = vunpack.c.l.b16 %v5547_v55  ;;  %v4568_v41 = vld [vmem:[%s6383_s5 + $0x398] sm:$0xff] }
 0x18d   : > { %2646 = vmatpush.bf16.msrb.mxu0 %v4568_v41  ;;  %v4543_v41 = vld [vmem:[%s6383_s5 + $0x2d0] sm:$0xff] }
 0x18e   : > { %v5544_v9 = vpop.f32.mrf.mxu0  ;;  %v5565_v22 = vpack.c.b16 %v6388_v35, %v1407_v54  ;;  %v4550_v54 = vld [vmem:[%s6383_s5 + $0x308] sm:$0xff] }
 0x18f   : > { %2406 = vmatpush.bf16.msra.mxu1 %v4550_v54  ;;  %2162 = vmatpush.bf16.msra.mxu2 %v4528_v49  ;;  %v4526_v49 = vld [vmem:[%s6383_s5 + $0x248] sm:$0xff] }
 0x190   : > { %2191 = vmatpush.bf16.msra.mxu3 %v4536_v10  ;;  %v5623_v54 = vpop.f32.mrf.mxu1  ;;  %v4534_v10 = vld [vmem:[%s6383_s5 + $0x288] sm:$0xff] }
 0x191   : > { %1609 = vmatmul.bf16.gmra.mxu1 %v5500_v11 }
 0x193   : > { %1902 = vmatmul.bf16.gmra.mxu0 %v5348_v26  ;;  %2407 = vmatpush.bf16.msra.mxu1 %v4549_v48  ;;  %v4567_v48 = vld [vmem:[%s6383_s5 + $0x390] sm:$0xff] }
 0x194   : > { %2163 = vmatpush.bf16.msra.mxu2 %v4527_v40  ;;  %2192 = vmatpush.bf16.msra.mxu3 %v4535_v53 }
 0x195   : > { %2647 = vmatpush.bf16.msrb.mxu0 %v4567_v48  ;;  %v4525_v48 = vld [vmem:[%s6383_s5 + $0x240] sm:$0xff] }
 0x196   : > { %v5581_v33 = vpop.f32.mrf.mxu0 }
 0x197   : > { %2408 = vmatpush.bf16.msra.mxu1 %v4548_v45  ;;  %v4544_v45 = vld [vmem:[%s6383_s5 + $0x2d8] sm:$0xff] }
 0x198   : > { %2164 = vmatpush.bf16.msra.mxu2 %v4526_v49  ;;  %2193 = vmatpush.bf16.msra.mxu3 %v4534_v10  ;;  %v4533_v49 = vld [vmem:[%s6383_s5 + $0x280] sm:$0xff]  ;;  %v4564_v10 = vld [vmem:[%s6383_s5 + $0x378] sm:$0xff] }
 0x199   : > { %3641 = vmatmul.msk.bf16.gmra.mxu3 %vm380_vm0, %v5024_v4 }
 0x19a   : > { %1319 = vmatmul.bf16.gmra.mxu2 %v5472_v44 }
 0x19c   : > { %2165 = vmatpush.bf16.msra.mxu2 %v4525_v48  ;;  %2194 = vmatpush.bf16.msra.mxu3 %v4533_v49  ;;  %v4558_v48 = vld [vmem:[%s6383_s5 + $0x348] sm:$0xff]  ;;  %v1408_v49 = vunpack.c.l.b16 %v1390_v34  ;;  %v4561_v34 = vld [vmem:[%s6383_s5 + $0x360] sm:$0xff] }
 0x19e   : > { %v5599_v39 = vpop.f32.mrf.mxu0 }
 0x1a1   : > { %1614 = vmatmul.bf16.gmra.mxu1 %v5531_v42 }
 0x1a3   : > { %1907 = vmatmul.bf16.gmra.mxu0 %v5428_v62 }
 0x1a9   : > { %3642 = vmatmul.msk.bf16.gmra.mxu3 %vm380_vm0, %v5105_v56 }
 0x1aa   : > { %1324 = vmatmul.bf16.gmra.mxu2 %v5500_v11 }
 0x1af   : > { %v1104_v52 = vpop.f32.mrf.mxu3 }
 0x1b1   : > { %3863 = vmatmul.msk.bf16.vlgmr.msrb.gmra.mxu1 %vm380_vm0, %v4927_v57 }
 0x1b3   : > { %1912 = vmatmul.bf16.gmra.mxu0 %v5565_v22 }
 0x1b5   : > { %v1075_v47 = vpop.f32.mrf.mxu2 }
 0x1b6   : > { %v5583_v57 = vadd.f32 %v1104_v52, %v1075_v47  ;;  %v5625_v52 = vpop.f32.mrf.mxu0  ;;  %v4545_v47 = vld [vmem:[%s6383_s5 + $0x2e0] sm:$0xff] }
 0x1b9   : > { %1868 = vmatmul.bf16.vlgmr.msrb.gmra.mxu3 %v5264_v61  ;;  %v4547_v61 = vld [vmem:[%s6383_s5 + $0x2f0] sm:$0xff] }
 0x1ba   : > { %3751 = vmatmul.msk.bf16.vlgmr.msrb.gmra.mxu2 %vm380_vm0, %v4889_v17  ;;  %2409 = vmatpush.bf16.msra.mxu1 %v4547_v61  ;;  %v5648_v61 = vpop.f32.mrf.mxu3 }
 0x1bb   : > { %2435 = vmatpush.bf16.msrb.mxu2 %v4558_v48  ;;  %2470 = vmatpush.bf16.msrb.mxu3 %v4560_v1  ;;  %v1986_v1 = vrot.slane %v5208_v59, 4 }
 0x1be   : > { %2410 = vmatpush.bf16.msra.mxu1 %v4546_v51  ;;  %v1291_v40 = vpop.f32.mrf.mxu1  ;;  %v5650_v53 = vpop.f32.mrf.mxu0 }
 0x1bf   : > { %v5652_v51 = vpop.f32.mrf.mxu2 }
 0x1c1   : > { %3864 = vmatmul.msk.bf16.gmra.mxu1 %vm380_vm0, %v4976_v38 }
 0x1c2   : > { %2411 = vmatpush.bf16.msra.mxu1 %v4545_v47  ;;  %v4565_v47 = vld [vmem:[%s6383_s5 + $0x380] sm:$0xff] }
 0x1c3   : > { %3975 = vmatmul.msk.bf16.vlgmr.msra.gmra.mxu0 %vm380_vm0, %v5024_v4 }
 0x1c6   : > { %2412 = vmatpush.bf16.msra.mxu1 %v4544_v45  ;;  %v1293_v35 = vpop.f32.mrf.mxu1  ;;  %v5673_v29 = vpop.f32.mrf.mxu0 }
 0x1c9   : > { %1873 = vmatmul.bf16.gmra.mxu3 %v5361_v23 }
 0x1ca   : > { %3752 = vmatmul.msk.bf16.gmra.mxu2 %vm380_vm0, %v5024_v4  ;;  %v4566_v4 = vld [vmem:[%s6383_s5 + $0x388] sm:$0xff]  ;;  %2413 = vmatpush.bf16.msra.mxu1 %v4543_v41  ;;  %v4563_v41 = vld [vmem:[%s6383_s5 + $0x370] sm:$0xff] }
 0x1cb   : > { %2648 = vmatpush.bf16.msrb.mxu0 %v4566_v4 }
 0x1cf   : > { %2649 = vmatpush.bf16.msrb.mxu0 %v4565_v47 }
 0x1d1   : > { %3865 = vmatmul.msk.bf16.gmra.mxu1 %vm380_vm0, %v5045_v21 }
 0x1d3   : > { %3976 = vmatmul.msk.bf16.gmra.mxu0 %vm380_vm0, %v5105_v56 }
 0x1d4   : > { %v1109_v45 = vpop.f32.mrf.mxu3  ;;  %2650 = vmatpush.bf16.msrb.mxu0 %v4564_v10 }
 0x1d7   : > { %v1080_v4 = vpop.f32.mrf.mxu2 }
 0x1d8   : > { %v1110_v16 = vadd.f32 %v1109_v45, %v1080_v4  ;;  %2651 = vmatpush.bf16.msrb.mxu0 %v4563_v41  ;;  %v5700_v41 = vpack.c.b16 %v1408_v49, %v5028_v6 }
 0x1d9   : > { %1878 = vmatmul.bf16.gmra.mxu3 %v5424_v43 }
 0x1da   : > { %v1139_v47 = vadd.f32 %v5507_v12, %v1110_v16  ;;  %3753 = vmatmul.msk.bf16.gmra.mxu2 %vm380_vm0, %v5105_v56  ;;  %v1706_v16 = vunpack.c.l.b16 %v1688_v3 }
 0x1dc   : > { %v5693_v12 = vadd.f32 %v1291_v40, %v1139_v47  ;;  %v1111_v10 = vpop.f32.mrf.mxu3  ;;  %2652 = vmatpush.bf16.msrb.mxu0 %v4562_v19  ;;  %v5697_v31 = vpack.c.b16 %v1706_v16, %v1408_v49  ;;  %v4557_v40 = vld [vmem:[%s6383_s5 + $0x340] sm:$0xff]  ;;  %v5724_v49 = vunpack.c.l.b16 %v1986_v1  ;;  %v4576_v1 = vld [vmem:[%s6383_s5 + $0x3d8] sm:$0xff] }
 0x1dd   : > { %2436 = vmatpush.bf16.msrb.mxu2 %v4557_v40  ;;  %v4555_v40 = vld [vmem:[%s6383_s5 + $0x330] sm:$0xff]  ;;  %2675 = vmatpush.bf16.msrb.mxu1 %v4576_v1 }
 0x1de   : > { %v1296_v37 = vpop.f32.mrf.mxu1  ;;  %v5695_v5 = vpop.f32.mrf.mxu0 }
 0x1df   : > { %v1082_v45 = vpop.f32.mrf.mxu2 }
 0x1e0   : > { %v1112_v4 = vadd.f32 %v1111_v10, %v1082_v45  ;;  %2653 = vmatpush.bf16.msrb.mxu0 %v4561_v34 }
 0x1e1   : > { %3866 = vmatmul.msk.bf16.gmra.mxu1 %vm380_vm0, %v5697_v31 }
 0x1e2   : > { %v1141_v3 = vadd.f32 %v5524_v27, %v1112_v4  ;;  %v4556_v27 = vld [vmem:[%s6383_s5 + $0x338] sm:$0xff]  ;;  %2676 = vmatpush.bf16.msrb.mxu1 %v4575_v25 }
 0x1e3   : > { %3977 = vmatmul.msk.bf16.gmra.mxu0 %vm380_vm0, %v5700_v41  ;;  %2437 = vmatpush.bf16.msrb.mxu2 %v4556_v27 }
 0x1e4   : > { %v5713_v6 = vadd.f32 %v1293_v35, %v1141_v3  ;;  %v5732_v3 = vpack.c.b16 %v5724_v49, %v1706_v16 }
 0x1e6   : > { %v1298_v47 = vpop.f32.mrf.mxu1  ;;  %v5715_v48 = vpop.f32.mrf.mxu0 }
 0x1e7   : > { %2438 = vmatpush.bf16.msrb.mxu2 %v4555_v40 }
 0x1e9   : > { %1883 = vmatmul.bf16.gmra.mxu3 %v5458_v13 }
 0x1ea   : > { %3754 = vmatmul.msk.bf16.gmra.mxu2 %vm380_vm0, %v5700_v41 }
 0x1ec   : > { %v1114_v35 = vpop.f32.mrf.mxu3 }
 0x1ed   : > { %v1085_v19 = vpop.f32.mrf.mxu2 }
 0x1ee   : > { %v1115_v10 = vadd.f32 %v1114_v35, %v1085_v19  ;;  %v5726_v45 = vpop.f32.mrf.mxu1 }
 0x1f0   : > { %v5728_v4 = vpop.f32.mrf.mxu0  ;;  %v1144_v34 = vadd.f32 %v5544_v9, %v1115_v10 }
 0x1f1   : > { %2414 = vmatmul.bf16.vlgmr.msra.gmra.mxu1 %v5361_v23 }
 0x1f2   : > { %v5743_v27 = vadd.f32 %v1296_v37, %v1144_v34  ;;  %v4554_v37 = vld [vmem:[%s6383_s5 + $0x328] sm:$0xff]  ;;  %v4559_v34 = vld [vmem:[%s6383_s5 + $0x350] sm:$0xff] }
 0x1f3   : > { %3978 = vmatmul.msk.bf16.gmra.mxu0 %vm380_vm0, %v5732_v3  ;;  %2439 = vmatpush.bf16.msrb.mxu2 %v4554_v37 }
 0x1f4   : > { %v1116_v9 = vpop.f32.mrf.mxu3  ;;  %2471 = vmatpush.bf16.msrb.mxu3 %v4559_v34 }
 0x1f5   : > { %v1087_v19 = vpop.f32.mrf.mxu2 }
 0x1f6   : > { %v1117_v16 = vadd.f32 %v1116_v9, %v1087_v19  ;;  %v5745_v35 = vpop.f32.mrf.mxu1 }
 0x1f8   : > { %v5747_v23 = vpop.f32.mrf.mxu0  ;;  %v1146_v10 = vadd.f32 %v5581_v33, %v1117_v16  ;;  %v4574_v33 = vld [vmem:[%s6383_s5 + $0x3c8] sm:$0xff] }
 0x1f9   : > { %2195 = vmatmul.bf16.vlgmr.msra.gmra.mxu3 %v5472_v44  ;;  %2677 = vmatpush.bf16.msrb.mxu1 %v4574_v33  ;;  %v1134_v33 = vadd.f32 %v5474_v8, %v5583_v57  ;;  %v4552_v8 = vld [vmem:[%s6383_s5 + $0x318] sm:$0xff]  ;;  %v1107_v57 = vadd.f32 %v5648_v61, %v5652_v51  ;;  %v4591_v61 = vld [vmem:[%s6383_s5 + $0x450] sm:$0xff] }
 0x1fa   : > { %2166 = vmatmul.bf16.vlgmr.msra.gmra.mxu2 %v5291_v24  ;;  %v5764_v40 = vadd.f32 %v1298_v47, %v1146_v10  ;;  %v1102_v24 = vadd.f32 %v5559_v0, %v5561_v14  ;;  %v4573_v0 = vld [vmem:[%s6383_s5 + $0x3c0] sm:$0xff]  ;;  %v4551_v51 = vld [vmem:[%s6383_s5 + $0x310] sm:$0xff] }
 0x1fc   : > { %v1339_v44 = vpop.f32.mrf.mxu3  ;;  %v1131_v19 = vadd.f32 %v5453_v36, %v1102_v24  ;;  %v4553_v36 = vld [vmem:[%s6383_s5 + $0x320] sm:$0xff] }
 0x1fd   : > { %v1310_v1 = vpop.f32.mrf.mxu2  ;;  %2678 = vmatpush.bf16.msrb.mxu1 %v4573_v0  ;;  %2440 = vmatpush.bf16.msrb.mxu2 %v4553_v36  ;;  %v1977_v0 = vpop.permute.xlu0 %1976 }
 0x1fe   : > { %v1311_v25 = vadd.f32 %v1310_v1, %v5504_v46  ;;  %v1605_v16 = vpop.f32.mrf.mxu1  ;;  %v4594_v46 = vld [vmem:[%s6383_s5 + $0x468] sm:$0xff]  ;;  %v1284_v14 = vadd.f32 %v5567_v18, %v1131_v19  ;;  %v4593_v19 = vld [vmem:[%s6383_s5 + $0x460] sm:$0xff] }
 0x1ff   : > { %v5775_v47 = vadd.f32 %v1605_v16, %v5650_v53  ;;  %v4572_v53 = vld [vmem:[%s6383_s5 + $0x3b8] sm:$0xff]  ;;  %2915 = vmatpush.bf16.msra.mxu0 %v4594_v46  ;;  %v1287_v16 = vadd.f32 %v5597_v30, %v1134_v33  ;;  %v4569_v30 = vld [vmem:[%s6383_s5 + $0x3a0] sm:$0xff]  ;;  %v1962_v33 = vpop.permute.xlu2 %1961 }
 0x200   : > { %v5770_v9 = vadd.f32 %v1339_v44, %v1311_v25  ;;  %v5772_v7 = vpop.f32.mrf.mxu0  ;;  %v4571_v44 = vld [vmem:[%s6383_s5 + $0x3b0] sm:$0xff] }
 0x201   : > { %2419 = vmatmul.bf16.gmra.mxu1 %v5424_v43  ;;  %2441 = vmatpush.bf16.msrb.mxu2 %v4552_v8 }
 0x202   : > { %2679 = vmatpush.bf16.msrb.mxu1 %v4572_v53  ;;  %v1136_v53 = vadd.f32 %v5490_v60, %v1107_v57 }
 0x203   : > { %2654 = vmatmul.bf16.vlgmr.msrb.gmra.mxu0 %v5394_v50 }
 0x204   : > { %v1341_v34 = vpop.f32.mrf.mxu3  ;;  %2916 = vmatpush.bf16.msra.mxu0 %v4593_v19  ;;  %v1966_v19 = vpop.permute.xlu1 %1965 }
 0x205   : > { %v1312_v10 = vpop.f32.mrf.mxu2  ;;  %2442 = vmatpush.bf16.msrb.mxu2 %v4551_v51  ;;  %v1972_v51 = vrot.slane %v5208_v59, 2 }
 0x206   : > { %v1313_v37 = vadd.f32 %v1312_v10, %v1284_v14  ;;  %v1607_v1 = vpop.f32.mrf.mxu1  ;;  %2680 = vmatpush.bf16.msrb.mxu1 %v4571_v44  ;;  %v4590_v44 = vld [vmem:[%s6383_s5 + $0x448] sm:$0xff] }
 0x207   : > { %v5799_v18 = vadd.f32 %v1607_v1, %v5673_v29  ;;  %v4592_v29 = vld [vmem:[%s6383_s5 + $0x458] sm:$0xff]  ;;  %v1289_v1 = vadd.f32 %v5623_v54, %v1136_v53  ;;  %v4589_v54 = vld [vmem:[%s6383_s5 + $0x440] sm:$0xff] }
 0x208   : > { %v5794_v24 = vadd.f32 %v1341_v34, %v1313_v37  ;;  %v5796_v25 = vpop.f32.mrf.mxu0  ;;  %2917 = vmatpush.bf16.msra.mxu0 %v4592_v29 }
 0x209   : > { %2200 = vmatmul.bf16.gmra.mxu3 %v5500_v11 }
 0x20a   : > { %2171 = vmatmul.bf16.gmra.mxu2 %v5394_v50  ;;  %v4570_v50 = vld [vmem:[%s6383_s5 + $0x3a8] sm:$0xff] }
 0x20b   : > { %2681 = vmatpush.bf16.msrb.mxu1 %v4570_v50 }
 0x20c   : > { %v1344_v14 = vpop.f32.mrf.mxu3  ;;  %2918 = vmatpush.bf16.msra.mxu0 %v4591_v61  ;;  %v4586_v61 = vld [vmem:[%s6383_s5 + $0x428] sm:$0xff] }
 0x20d   : > { %v1315_v36 = vpop.f32.mrf.mxu2  ;;  %2886 = vmatpush.bf16.msra.mxu3 %v4586_v61 }
 0x20e   : > { %v1316_v46 = vadd.f32 %v1315_v36, %v1287_v16  ;;  %v1610_v37 = vpop.f32.mrf.mxu1  ;;  %v1988_v16 = vsel %vm380_vm0, %v5208_v59, %v1962_v33 }
 0x20f   : > { %v5836_v60 = vadd.f32 %v1610_v37, %v5695_v5  ;;  %2682 = vmatpush.bf16.msrb.mxu1 %v4569_v30  ;;  %v1971_v5 = vpop.permute.xlu0 %1970  ;;  %v4578_v30 = vld [vmem:[%s6383_s5 + $0x3e8] sm:$0xff] }
 0x210   : > { %v5822_v10 = vadd.f32 %v1344_v14, %v1316_v46  ;;  %v5824_v34 = vpop.f32.mrf.mxu0  ;;  %2919 = vmatpush.bf16.msra.mxu0 %v4590_v44  ;;  %v1990_v14 = vsel %vm716_vm3, %v1988_v16, %v1966_v19  ;;  %2710 = vmatpush.bf16.msra.mxu2 %v4578_v30  ;;  %v1995_v44 = vsel %vm380_vm0, %v1972_v51, %v1977_v0  ;;  %v1980_v19 = vpop.permute.xlu2 %1979  ;;  %v6400_v0 = vunpack.c.l.b16 %v5450_v20  ;;  %v4587_v30 = vld [vmem:[%s6383_s5 + $0x430] sm:$0xff] }
 0x211   : > { %2424 = vmatmul.bf16.gmra.mxu1 %v5458_v13  ;;  %v1992_v37 = vsel %vm727_vm4, %v1990_v14, %v1971_v5 }
 0x212   : > { %v2002_v33 = vunpack.c.l.b16 %v1992_v37 }
 0x213   : > { %2659 = vmatmul.bf16.gmra.mxu0 %v5439_v63 }
 0x214   : > { %v1346_v57 = vpop.f32.mrf.mxu3  ;;  %2920 = vmatpush.bf16.msra.mxu0 %v4589_v54  ;;  %v5881_v14 = vpack.c.b16 %v5107_v58, %v2002_v33  ;;  %v5885_v37 = vpack.c.b16 %v2002_v33, %v6400_v0  ;;  %v4585_v58 = vld [vmem:[%s6383_s5 + $0x420] sm:$0xff]  ;;  %v4583_v0 = vld [vmem:[%s6383_s5 + $0x410] sm:$0xff] }
 0x215   : > { %v1317_v8 = vpop.f32.mrf.mxu2  ;;  %2887 = vmatpush.bf16.msra.mxu3 %v4585_v58 }
 0x216   : > { %v1318_v29 = vadd.f32 %v1317_v8, %v1289_v1  ;;  %v1612_v36 = vpop.f32.mrf.mxu1 }
 0x217   : > { %v5855_v53 = vadd.f32 %v1612_v36, %v5715_v48  ;;  %v4588_v48 = vld [vmem:[%s6383_s5 + $0x438] sm:$0xff]  ;;  %v1997_v36 = vsel %vm716_vm3, %v1995_v44, %v1980_v19  ;;  %v6401_v19 = vunpack.c.l.b16 %v5547_v55 }
 0x218   : > { %v5846_v50 = vadd.f32 %v1346_v57, %v1318_v29  ;;  %v5848_v46 = vpop.f32.mrf.mxu0  ;;  %v1985_v57 = vpop.permute.xlu1 %1984  ;;  %2921 = vmatpush.bf16.msra.mxu0 %v4588_v48 }
 0x219   : > { %2205 = vmatmul.bf16.gmra.mxu3 %v5531_v42 }
 0x21a   : > { %2176 = vmatmul.bf16.gmra.mxu2 %v5439_v63 }
 0x21c   : > { %v1349_v29 = vpop.f32.mrf.mxu3  ;;  %2922 = vmatpush.bf16.msra.mxu0 %v4587_v30 }
 0x21d   : > { %v1320_v1 = vpop.f32.mrf.mxu2 }
 0x21e   : > { %v1321_v8 = vadd.f32 %v1320_v1, %v5693_v12  ;;  %v1615_v16 = vpop.f32.mrf.mxu1  ;;  %v5888_v12 = vsel %vm727_vm4, %v1997_v36, %v1985_v57 }
 0x21f   : > { %v5878_v54 = vadd.f32 %v1615_v16, %v5728_v4  ;;  %v2003_v4 = vunpack.c.l.b16 %v5888_v12 }
 0x220   : > { %v5872_v5 = vadd.f32 %v1349_v29, %v1321_v8  ;;  %v5874_v59 = vpop.f32.mrf.mxu0 }
 0x221   : > { %2429 = vmatmul.bf16.gmra.mxu1 %v5881_v14  ;;  %v5911_v8 = vpack.c.b16 %v2003_v4, %v6401_v19 }
 0x223   : > { %2664 = vmatmul.bf16.gmra.mxu0 %v5885_v37 }
 0x224   : > { %v1351_v51 = vpop.f32.mrf.mxu3 }
 0x225   : > { %v1322_v20 = vpop.f32.mrf.mxu2 }
 0x226   : > { %v1323_v61 = vadd.f32 %v1322_v20, %v5713_v6  ;;  %v1617_v33 = vpop.f32.mrf.mxu1  ;;  %v4584_v6 = vld [vmem:[%s6383_s5 + $0x418] sm:$0xff] }
 0x227   : > { %v5905_v44 = vadd.f32 %v1617_v33, %v5747_v23  ;;  %2888 = vmatpush.bf16.msra.mxu3 %v4584_v6  ;;  %v4582_v33 = vld [vmem:[%s6383_s5 + $0x408] sm:$0xff] }
 0x228   : > { %v5900_v48 = vadd.f32 %v1351_v51, %v1323_v61  ;;  %v5902_v1 = vpop.f32.mrf.mxu0 }
 0x229   : > { %2210 = vmatmul.bf16.gmra.mxu3 %v5911_v8 }
 0x22a   : > { %2181 = vmatmul.bf16.gmra.mxu2 %v5885_v37 }
 0x22b   : > { %2889 = vmatpush.bf16.msra.mxu3 %v4583_v0 }
 0x22c   : > { %v1354_v23 = vpop.f32.mrf.mxu3 }
 0x22d   : > { %v1325_v29 = vpop.f32.mrf.mxu2 }
 0x22e   : > { %v1326_v57 = vadd.f32 %v1325_v29, %v5743_v27  ;;  %v1927_v55 = vpop.f32.mrf.mxu1 }
 0x22f   : > { %2890 = vmatpush.bf16.msra.mxu3 %v4582_v33 }
 0x230   : > { %v5919_v16 = vadd.f32 %v1354_v23, %v1326_v57  ;;  %v5921_v36 = vpop.f32.mrf.mxu0 }
 0x231   : > { %2683 = vmatmul.bf16.vlgmr.msrb.gmra.mxu1 %v5500_v11  ;;  %v4577_v11 = vld [vmem:[%s6383_s5 + $0x3e0] sm:$0xff] }
 0x232   : > { %2711 = vmatpush.bf16.msra.mxu2 %v4577_v11 }
 0x233   : > { %2669 = vmatmul.bf16.gmra.mxu0 %v5122_v2 }
 0x234   : > { %v1356_v20 = vpop.f32.mrf.mxu3 }
 0x235   : > { %v1327_v30 = vpop.f32.mrf.mxu2 }
 0x236   : > { %v1328_v58 = vadd.f32 %v1327_v30, %v5764_v40  ;;  %v1929_v61 = vpop.f32.mrf.mxu1  ;;  %v1601_v40 = vadd.f32 %v5726_v45, %v5599_v39  ;;  %v4581_v39 = vld [vmem:[%s6383_s5 + $0x400] sm:$0xff]  ;;  %v1603_v45 = vadd.f32 %v5745_v35, %v5625_v52  ;;  %v4580_v52 = vld [vmem:[%s6383_s5 + $0x3f8] sm:$0xff] }
 0x237   : > { %2891 = vmatpush.bf16.msra.mxu3 %v4581_v39  ;;  %v4596_v35 = vld [vmem:[%s6383_s5 + $0x478] sm:$0xff] }
 0x238   : > { %v5929_v27 = vadd.f32 %v1356_v20, %v1328_v58  ;;  %v5931_v51 = vpop.f32.mrf.mxu0  ;;  %2950 = vmatpush.bf16.msra.mxu1 %v4596_v35 }
 0x239   : > { %4087 = vmatmul.msk.bf16.vlgmr.msrb.gmra.mxu3 %vm380_vm0, %v4976_v38 }
 0x23a   : > { %2443 = vmatmul.bf16.vlgmr.msrb.gmra.mxu2 %v5348_v26 }
 0x23b   : > { %2892 = vmatpush.bf16.msra.mxu3 %v4580_v52 }
 0x23c   : > { %v1869_v29 = vpop.f32.mrf.mxu3 }
 0x23d   : > { %v1629_v19 = vpop.f32.mrf.mxu2  ;;  %v1899_v26 = vadd.f32 %v5772_v7, %v1869_v29 }
 0x23e   : > { %v1630_v6 = vadd.f32 %v1629_v19, %v1601_v40  ;;  %v1932_v57 = vpop.f32.mrf.mxu1 }
 0x23f   : > { %v1928_v23 = vadd.f32 %v1927_v55, %v1899_v26 }
 0x240   : > { %v1649_v38 = vadd.f32 %v1630_v6, %v5770_v9  ;;  %v5955_v30 = vpop.f32.mrf.mxu0 }
 0x241   : > { %2688 = vmatmul.bf16.gmra.mxu1 %v5531_v42 }
 0x242   : > { %v5946_v0 = vadd.f32 %v1928_v23, %v1649_v38  ;;  %v4595_v23 = vld [vmem:[%s6383_s5 + $0x470] sm:$0xff] }
 0x243   : > { %2923 = vmatmul.bf16.vlgmr.msra.gmra.mxu0 %v5428_v62  ;;  %2951 = vmatpush.bf16.msra.mxu1 %v4595_v23 }
 0x244   : > { %v1871_v58 = vpop.f32.mrf.mxu3 }
 0x245   : > { %v1631_v7 = vpop.f32.mrf.mxu2  ;;  %v1901_v55 = vadd.f32 %v5796_v25, %v1871_v58 }
 0x246   : > { %v1632_v9 = vadd.f32 %v1631_v7, %v1603_v45  ;;  %v1934_v11 = vpop.f32.mrf.mxu1 }
 0x247   : > { %v1930_v33 = vadd.f32 %v1929_v61, %v1901_v55 }
 0x248   : > { %v1650_v20 = vadd.f32 %v1632_v9, %v5794_v24  ;;  %v5970_v24 = vpop.f32.mrf.mxu0 }
 0x249   : > { %4088 = vmatmul.msk.bf16.gmra.mxu3 %vm380_vm0, %v5045_v21 }
 0x24a   : > { %2448 = vmatmul.bf16.gmra.mxu2 %v5428_v62  ;;  %v5960_v40 = vadd.f32 %v1930_v33, %v1650_v20 }
 0x24c   : > { %v1874_v61 = vpop.f32.mrf.mxu3 }
 0x24d   : > { %v1634_v25 = vpop.f32.mrf.mxu2  ;;  %v1904_v19 = vadd.f32 %v5824_v34, %v1874_v61  ;;  %v4613_v61 = vld [vmem:[%s6383_s5 + $0x500] sm:$0xff] }
 0x24e   : > { %v1635_v62 = vadd.f32 %v1634_v25, %v5775_v47  ;;  %v1937_v29 = vpop.f32.mrf.mxu1  ;;  %v4579_v47 = vld [vmem:[%s6383_s5 + $0x3f0] sm:$0xff] }
 0x24f   : > { %v1933_v26 = vadd.f32 %v1932_v57, %v1904_v19  ;;  %2893 = vmatpush.bf16.msra.mxu3 %v4579_v47  ;;  %v6029_v47 = vpack.c.b16 %v4882_v15, %v5724_v49 }
 0x250   : > { %v1651_v6 = vadd.f32 %v1635_v62, %v5822_v10  ;;  %v5987_v45 = vpop.f32.mrf.mxu0  ;;  %v2291_v62 = vpack.c.b16 %v5146_v28, %v2003_v4 }
 0x251   : > { %2693 = vmatmul.bf16.gmra.mxu1 %v5911_v8 }
 0x252   : > { %v5975_v38 = vadd.f32 %v1933_v26, %v1651_v6 }
 0x253   : > { %2928 = vmatmul.bf16.gmra.mxu0 %v5565_v22 }
 0x254   : > { %v1876_v34 = vpop.f32.mrf.mxu3 }
 0x255   : > { %v1636_v39 = vpop.f32.mrf.mxu2  ;;  %v1906_v57 = vadd.f32 %v5848_v46, %v1876_v34  ;;  %v4612_v46 = vld [vmem:[%s6383_s5 + $0x4f8] sm:$0xff] }
 0x256   : > { %v1637_v10 = vadd.f32 %v1636_v39, %v5799_v18  ;;  %v1939_v9 = vpop.f32.mrf.mxu1  ;;  %v4604_v18 = vld [vmem:[%s6383_s5 + $0x4b8] sm:$0xff]  ;;  %3155 = vmatpush.bf16.msrb.mxu3 %v4612_v46 }
 0x257   : > { %v1935_v58 = vadd.f32 %v1934_v11, %v1906_v57  ;;  %3126 = vmatpush.bf16.msrb.mxu2 %v4604_v18  ;;  %v4601_v18 = vld [vmem:[%s6383_s5 + $0x4a0] sm:$0xff] }
 0x258   : > { %v1652_v7 = vadd.f32 %v1637_v10, %v5846_v50  ;;  %v4614_v50 = vld [vmem:[%s6383_s5 + $0x508] sm:$0xff]  ;;  %v6013_v19 = vpop.f32.mrf.mxu0 }
 0x259   : > { %4089 = vmatmul.msk.bf16.gmra.mxu3 %vm380_vm0, %v5697_v31  ;;  %3190 = vmatpush.bf16.msrb.mxu0 %v4614_v50 }
 0x25a   : > { %2453 = vmatmul.bf16.gmra.mxu2 %v5565_v22  ;;  %v5991_v55 = vadd.f32 %v1935_v58, %v1652_v7 }
 0x25c   : > { %v1879_v11 = vpop.f32.mrf.mxu3 }
 0x25d   : > { %v1639_v20 = vpop.f32.mrf.mxu2  ;;  %v1909_v33 = vadd.f32 %v5874_v59, %v1879_v11  ;;  %3191 = vmatpush.bf16.msrb.mxu0 %v4613_v61  ;;  %v4607_v61 = vld [vmem:[%s6383_s5 + $0x4d0] sm:$0xff] }
 0x25e   : > { %v1640_v22 = vadd.f32 %v1639_v20, %v5836_v60  ;;  %v1942_v35 = vpop.f32.mrf.mxu1  ;;  %v4603_v60 = vld [vmem:[%s6383_s5 + $0x4b0] sm:$0xff] }
 0x25f   : > { %v1938_v25 = vadd.f32 %v1937_v29, %v1909_v33  ;;  %3127 = vmatpush.bf16.msrb.mxu2 %v4603_v60 }
 0x260   : > { %v1653_v52 = vadd.f32 %v1640_v22, %v5872_v5  ;;  %v4611_v5 = vld [vmem:[%s6383_s5 + $0x4f0] sm:$0xff] }
 0x261   : > { %2698 = vmatmul.bf16.gmra.mxu1 %v5153_v32  ;;  %3156 = vmatpush.bf16.msrb.mxu3 %v4611_v5 }
 0x262   : > { %v6015_v6 = vadd.f32 %v1938_v25, %v1653_v52  ;;  %v4600_v52 = vld [vmem:[%s6383_s5 + $0x498] sm:$0xff] }
 0x263   : > { %2933 = vmatmul.bf16.gmra.mxu0 %v2291_v62 }
 0x264   : > { %v1881_v12 = vpop.f32.mrf.mxu3 }
 0x265   : > { %v1641_v28 = vpop.f32.mrf.mxu2  ;;  %v1911_v4 = vadd.f32 %v5902_v1, %v1881_v12  ;;  %v6041_v1 = vpop.f32.mrf.mxu0 }
 0x266   : > { %v1642_v59 = vadd.f32 %v1641_v28, %v5855_v53  ;;  %v1944_v26 = vpop.f32.mrf.mxu1  ;;  %v4602_v53 = vld [vmem:[%s6383_s5 + $0x4a8] sm:$0xff] }
 0x267   : > { %v1940_v23 = vadd.f32 %v1939_v9, %v1911_v4  ;;  %3128 = vmatpush.bf16.msrb.mxu2 %v4602_v53 }
 0x268   : > { %v1654_v29 = vadd.f32 %v1642_v59, %v5900_v48  ;;  %v4610_v48 = vld [vmem:[%s6383_s5 + $0x4e8] sm:$0xff] }
 0x269   : > { %4090 = vmatmul.msk.bf16.gmra.mxu3 %vm380_vm0, %v6029_v47 }
 0x26a   : > { %2458 = vmatmul.bf16.gmra.mxu2 %v2291_v62  ;;  %v6031_v39 = vadd.f32 %v1940_v23, %v1654_v29  ;;  %3157 = vmatpush.bf16.msrb.mxu3 %v4610_v48  ;;  %v4605_v48 = vld [vmem:[%s6383_s5 + $0x4c0] sm:$0xff] }
 0x26b   : > { %3129 = vmatpush.bf16.msrb.mxu2 %v4601_v18 }
 0x26c   : > { %v1884_v49 = vpop.f32.mrf.mxu3 }
 0x26d   : > { %v1644_v10 = vpop.f32.mrf.mxu2  ;;  %v1914_v34 = vadd.f32 %v5921_v36, %v1884_v49 }
 0x26e   : > { %v1645_v15 = vadd.f32 %v1644_v10, %v5878_v54  ;;  %v6046_v7 = vpop.f32.mrf.mxu1  ;;  %v4609_v54 = vld [vmem:[%s6383_s5 + $0x4e0] sm:$0xff] }
 0x26f   : > { %v1943_v9 = vadd.f32 %v1942_v35, %v1914_v34  ;;  %3158 = vmatpush.bf16.msrb.mxu3 %v4609_v54  ;;  %3130 = vmatpush.bf16.msrb.mxu2 %v4600_v52 }
 0x270   : > { %v1655_v57 = vadd.f32 %v1645_v15, %v5919_v16  ;;  %v6059_v16 = vpop.f32.mrf.mxu0 }
 0x271   : > { %4311 = vmatmul.msk.bf16.vlgmr.msra.gmra.mxu1 %vm380_vm0, %v5045_v21 }
 0x272   : > { %v6048_v58 = vadd.f32 %v1943_v9, %v1655_v57 }
 0x273   : > { %2938 = vmatmul.bf16.gmra.mxu0 %v5153_v32 }
 0x274   : > { %v1886_v50 = vpop.f32.mrf.mxu3 }
 0x275   : > { %v1646_v36 = vpop.f32.mrf.mxu2  ;;  %v1916_v21 = vadd.f32 %v5931_v51, %v1886_v50 }
 0x276   : > { %v1647_v46 = vadd.f32 %v1646_v36, %v5905_v44  ;;  %v6064_v22 = vpop.f32.mrf.mxu1  ;;  %v4608_v44 = vld [vmem:[%s6383_s5 + $0x4d8] sm:$0xff] }
 0x277   : > { %v1945_v11 = vadd.f32 %v1944_v26, %v1916_v21  ;;  %3159 = vmatpush.bf16.msrb.mxu3 %v4608_v44 }
 0x278   : > { %v1656_v20 = vadd.f32 %v1647_v46, %v5929_v27  ;;  %v6077_v25 = vpop.f32.mrf.mxu0 }
 0x279   : > { %2894 = vmatmul.bf16.vlgmr.msra.gmra.mxu3 %v5424_v43  ;;  %v4599_v43 = vld [vmem:[%s6383_s5 + $0x490] sm:$0xff] }
 0x27a   : > { %4199 = vmatmul.msk.bf16.vlgmr.msra.gmra.mxu2 %vm380_vm0, %v5105_v56  ;;  %v6068_v33 = vadd.f32 %v1945_v11, %v1656_v20 }
 0x27b   : > { %3131 = vmatpush.bf16.msrb.mxu2 %v4599_v43  ;;  %3160 = vmatpush.bf16.msrb.mxu3 %v4607_v61 }
 0x27c   : > { %v2196_v27 = vpop.f32.mrf.mxu3 }
 0x27d   : > { %v2167_v51 = vpop.f32.mrf.mxu2 }
 0x27e   : > { %v2197_v35 = vadd.f32 %v2196_v27, %v2167_v51  ;;  %v6079_v56 = vpop.f32.mrf.mxu1 }
 0x280   : > { %v2226_v62 = vadd.f32 %v5955_v30, %v2197_v35  ;;  %v2242_v4 = vpop.f32.mrf.mxu0 }
 0x281   : > { %4312 = vmatmul.msk.bf16.gmra.mxu1 %vm380_vm0, %v5697_v31  ;;  %v4598_v31 = vld [vmem:[%s6383_s5 + $0x488] sm:$0xff] }
 0x282   : > { %v6093_v60 = vadd.f32 %v2226_v62, %v5946_v0  ;;  %v4606_v0 = vld [vmem:[%s6383_s5 + $0x4c8] sm:$0xff]  ;;  %3132 = vmatpush.bf16.msrb.mxu2 %v4598_v31 }
 0x283   : > { %4423 = vmatmul.msk.bf16.vlgmr.msrb.gmra.mxu0 %vm380_vm0, %v5700_v41  ;;  %3161 = vmatpush.bf16.msrb.mxu3 %v4606_v0 }
 0x284   : > { %v2198_v5 = vpop.f32.mrf.mxu3 }
 0x285   : > { %v2169_v30 = vpop.f32.mrf.mxu2 }
 0x286   : > { %v2199_v28 = vadd.f32 %v2198_v5, %v2169_v30  ;;  %v6095_v59 = vpop.f32.mrf.mxu1 }
 0x287   : > { %3162 = vmatpush.bf16.msrb.mxu3 %v4605_v48 }
 0x288   : > { %v2228_v12 = vadd.f32 %v5970_v24, %v2199_v28  ;;  %v2655_v10 = vpop.f32.mrf.mxu0 }
 0x289   : > { %2899 = vmatmul.bf16.gmra.mxu3 %v5458_v13 }
 0x28a   : > { %4200 = vmatmul.msk.bf16.gmra.mxu2 %vm380_vm0, %v5700_v41  ;;  %v6108_v29 = vadd.f32 %v2228_v12, %v5960_v40  ;;  %v4597_v41 = vld [vmem:[%s6383_s5 + $0x480] sm:$0xff] }
 0x28b   : > { %3133 = vmatpush.bf16.msrb.mxu2 %v4597_v41 }
 0x28c   : > { %v2201_v24 = vpop.f32.mrf.mxu3 }
 0x28d   : > { %v2172_v26 = vpop.f32.mrf.mxu2 }
 0x28e   : > { %v2202_v23 = vadd.f32 %v2201_v24, %v2172_v26  ;;  %v6110_v53 = vpop.f32.mrf.mxu1 }
 0x290   : > { %v2231_v13 = vadd.f32 %v5987_v45, %v2202_v23  ;;  %v6135_v9 = vpop.f32.mrf.mxu0 }
 0x291   : > { %4313 = vmatmul.msk.bf16.gmra.mxu1 %vm380_vm0, %v6029_v47 }
 0x292   : > { %v6124_v40 = vadd.f32 %v2231_v13, %v5975_v38 }
 0x293   : > { %4424 = vmatmul.msk.bf16.gmra.mxu0 %vm380_vm0, %v5732_v3 }
 0x294   : > { %v2203_v15 = vpop.f32.mrf.mxu3 }
 0x295   : > { %v2174_v45 = vpop.f32.mrf.mxu2 }
 0x296   : > { %v2204_v49 = vadd.f32 %v2203_v15, %v2174_v45  ;;  %v6126_v34 = vpop.f32.mrf.mxu1 }
 0x298   : > { %v2233_v57 = vadd.f32 %v6013_v19, %v2204_v49  ;;  %v2660_v50 = vpop.f32.mrf.mxu0 }
 0x299   : > { %2904 = vmatmul.bf16.gmra.mxu3 %v5881_v14 }
 0x29a   : > { %4201 = vmatmul.msk.bf16.gmra.mxu2 %vm380_vm0, %v5732_v3  ;;  %v6133_v47 = vadd.f32 %v2233_v57, %v5991_v55 }
 0x29c   : > { %v2206_v18 = vpop.f32.mrf.mxu3 }
 0x29d   : > { %v2177_v38 = vpop.f32.mrf.mxu2 }
 0x29e   : > { %v2207_v54 = vadd.f32 %v2206_v18, %v2177_v38  ;;  %v6137_v36 = vpop.f32.mrf.mxu1 }
 0x2a0   : > { %v2236_v46 = vadd.f32 %v6041_v1, %v2207_v54  ;;  %v6159_v35 = vpop.f32.mrf.mxu0 }
 0x2a1   : > { %4314 = vmatmul.msk.bf16.gmra.mxu1 %vm380_vm0, %v4889_v17 }
 0x2a2   : > { %v6145_v3 = vadd.f32 %v2236_v46, %v6015_v6 }
 0x2a3   : > { %4425 = vmatmul.msk.bf16.gmra.mxu0 %vm380_vm0, %v4889_v17 }
 0x2a4   : > { %v2208_v55 = vpop.f32.mrf.mxu3 }
 0x2a5   : > { %v2179_v14 = vpop.f32.mrf.mxu2 }
 0x2a6   : > { %v2209_v19 = vadd.f32 %v2208_v55, %v2179_v14  ;;  %v6147_v21 = vpop.f32.mrf.mxu1 }
 0x2a8   : > { %v2238_v20 = vadd.f32 %v6059_v16, %v2209_v19  ;;  %v2665_v5 = vpop.f32.mrf.mxu0 }
 0x2a9   : > { %2909 = vmatmul.bf16.gmra.mxu3 %v5122_v2 }
 0x2aa   : > { %4202 = vmatmul.msk.bf16.gmra.mxu2 %vm380_vm0, %v4889_v17  ;;  %v6154_v1 = vadd.f32 %v2238_v20, %v6031_v39 }
 0x2ac   : > { %v2211_v52 = vpop.f32.mrf.mxu3 }
 0x2ad   : > { %v2182_v11 = vpop.f32.mrf.mxu2 }
 0x2ae   : > { %v2212_v6 = vadd.f32 %v2211_v52, %v2182_v11  ;;  %v2684_v44 = vpop.f32.mrf.mxu1 }
 0x2af   : > { %v6157_v27 = vadd.f32 %v2684_v44, %v2655_v10 }
 0x2b0   : > { %v2241_v51 = vadd.f32 %v6077_v25, %v2212_v6  ;;  %v6179_v24 = vpop.f32.mrf.mxu0 }
 0x2b2   : > { %v6164_v16 = vadd.f32 %v2241_v51, %v6048_v58 }
 0x2b3   : > { %4426 = vmatmul.msk.bf16.gmra.mxu0 %vm380_vm0, %v4889_v17 }
 0x2b4   : > { %v2213_v43 = vpop.f32.mrf.mxu3 }
 0x2b5   : > { %v2184_v62 = vpop.f32.mrf.mxu2 }
 0x2b6   : > { %v2214_v39 = vadd.f32 %v2213_v43, %v2184_v62  ;;  %v6166_v61 = vpop.f32.mrf.mxu1 }
 0x2b8   : > { %v2243_v30 = vadd.f32 %v2242_v4, %v2214_v39  ;;  %v2670_v48 = vpop.f32.mrf.mxu0 }
 0x2b9   : > { %3163 = vmatmul.bf16.vlgmr.msrb.gmra.mxu3 %v5531_v42 }
 0x2ba   : > { %3134 = vmatmul.bf16.vlgmr.msrb.gmra.mxu2 %v5439_v63  ;;  %v6171_v25 = vadd.f32 %v2243_v30, %v6068_v33 }
 0x2bc   : > { %v2473_v12 = vpop.f32.mrf.mxu3 }
 0x2bd   : > { %v2444_v28 = vpop.f32.mrf.mxu2 }
 0x2be   : > { %v2445_v17 = vadd.f32 %v2444_v28, %v6046_v7  ;;  %v2689_v31 = vpop.f32.mrf.mxu1 }
 0x2bf   : > { %v6174_v0 = vadd.f32 %v2689_v31, %v2660_v50 }
 0x2c0   : > { %v2474_v58 = vadd.f32 %v2473_v12, %v2445_v17 }
 0x2c2   : > { %v6177_v26 = vadd.f32 %v2474_v58, %v6093_v60 }
 0x2c4   : > { %v2475_v42 = vpop.f32.mrf.mxu3 }
 0x2c5   : > { %v2446_v4 = vpop.f32.mrf.mxu2 }
 0x2c6   : > { %v2447_v63 = vadd.f32 %v2446_v4, %v6064_v22  ;;  %v6182_v23 = vpop.f32.mrf.mxu1 }
 0x2c8   : > { %v2476_v33 = vadd.f32 %v2475_v42, %v2447_v63 }
 0x2c9   : > { %3168 = vmatmul.bf16.gmra.mxu3 %v5911_v8 }
 0x2ca   : > { %v6185_v13 = vadd.f32 %v2476_v33, %v6108_v29  ;;  %3139 = vmatmul.bf16.gmra.mxu2 %v5885_v37  ;;  %v6196_v37 = vpop.f32.mrf.mxu0 }
 0x2cc   : > { %v2478_v41 = vpop.f32.mrf.mxu3 }
 0x2cd   : > { %v2449_v7 = vpop.f32.mrf.mxu2 }
 0x2ce   : > { %v2450_v60 = vadd.f32 %v2449_v7, %v6079_v56  ;;  %v2694_v45 = vpop.f32.mrf.mxu1 }
 0x2cf   : > { %v6190_v15 = vadd.f32 %v2694_v45, %v2665_v5 }
 0x2d0   : > { %v2479_v10 = vadd.f32 %v2478_v41, %v2450_v60 }
 0x2d2   : > { %v2495_v22 = vadd.f32 %v2479_v10, %v6124_v40  ;;  %v2924_v19 = vpop.f32.mrf.mxu0 }
 0x2d4   : > { %v2480_v29 = vpop.f32.mrf.mxu3 }
 0x2d5   : > { %v2451_v49 = vpop.f32.mrf.mxu2 }
 0x2d6   : > { %v2452_v57 = vadd.f32 %v2451_v49, %v6095_v59  ;;  %v6194_v18 = vpop.f32.mrf.mxu1 }
 0x2d8   : > { %v2481_v38 = vadd.f32 %v2480_v29, %v2452_v57 }
 0x2d9   : > { %3173 = vmatmul.bf16.gmra.mxu3 %v5153_v32 }
 0x2da   : > { %v6199_v8 = vadd.f32 %v2481_v38, %v6133_v47  ;;  %3144 = vmatmul.bf16.gmra.mxu2 %v5122_v2  ;;  %v6217_v44 = vpop.f32.mrf.mxu0 }
 0x2dc   : > { %v2483_v40 = vpop.f32.mrf.mxu3 }
 0x2dd   : > { %v2454_v56 = vpop.f32.mrf.mxu2 }
 0x2de   : > { %v2455_v54 = vadd.f32 %v2454_v56, %v6110_v53  ;;  %v2699_v14 = vpop.f32.mrf.mxu1 }
 0x2df   : > { %v6204_v59 = vadd.f32 %v2699_v14, %v2670_v48 }
 0x2e0   : > { %v2484_v46 = vadd.f32 %v2483_v40, %v2455_v54 }
 0x2e2   : > { %v6207_v55 = vadd.f32 %v2484_v46, %v6145_v3  ;;  %v2929_v30 = vpop.f32.mrf.mxu0 }
 0x2e4   : > { %v2485_v20 = vpop.f32.mrf.mxu3 }
 0x2e5   : > { %v2456_v50 = vpop.f32.mrf.mxu2 }
 0x2e6   : > { %v2457_v47 = vadd.f32 %v2456_v50, %v6126_v34  ;;  %v6213_v6 = vpop.f32.mrf.mxu1 }
 0x2e8   : > { %v2486_v11 = vadd.f32 %v2485_v20, %v2457_v47 }
 0x2e9   : > { %3178 = vmatmul.bf16.gmra.mxu3 %v5153_v32 }
 0x2ea   : > { %v6211_v52 = vadd.f32 %v2486_v11, %v6154_v1  ;;  %3149 = vmatmul.bf16.gmra.mxu2 %v5122_v2  ;;  %v4616_v1 = vld [vmem:[%s6385_s7 + $0x8] sm:$0xff]  ;;  %v6232_v63 = vpop.f32.mrf.mxu0 }
 0x2eb   : > { %3283 = vmatpush.bf16.msrb.mxu1 %v4616_v1 }
 0x2ec   : > { %v2488_v51 = vpop.f32.mrf.mxu3 }
 0x2ed   : > { %v2459_v53 = vpop.f32.mrf.mxu2 }
 0x2ee   : > { %v2460_v3 = vadd.f32 %v2459_v53, %v6137_v36  ;;  %v2953_v43 = vpop.f32.mrf.mxu1 }
 0x2f0   : > { %v2489_v62 = vadd.f32 %v2488_v51, %v2460_v3 }
 0x2f2   : > { %v6221_v34 = vadd.f32 %v2489_v62, %v6164_v16  ;;  %v2934_v48 = vpop.f32.mrf.mxu0 }
 0x2f4   : > { %v2490_v32 = vpop.f32.mrf.mxu3 }
 0x2f5   : > { %v2461_v39 = vpop.f32.mrf.mxu2 }
 0x2f6   : > { %v2462_v2 = vadd.f32 %v2461_v39, %v6147_v21  ;;  %v6228_v17 = vpop.f32.mrf.mxu1  ;;  %v2687_v21 = vadd.f32 %v6166_v61, %v6135_v9  ;;  %v4615_v9 = vld [vmem:[%s6385_s7] sm:$0xff]  ;;  %v2692_v61 = vadd.f32 %v6182_v23, %v6159_v35  ;;  %v2697_v23 = vadd.f32 %v6194_v18, %v6179_v24 }
 0x2f7   : > { %3284 = vmatpush.bf16.msrb.mxu1 %v4615_v9  ;;  %v2702_v18 = vadd.f32 %v6213_v6, %v6196_v37  ;;  %v6283_v6 = vld [vmem:[%s6384_s6] ss:$0 sm:$0xff] }
 0x2f8   : > { %v2491_v5 = vadd.f32 %v2490_v32, %v2462_v2 }
 0x2fa   : > { %v2500_v28 = vadd.f32 %v2491_v5, %v6171_v25  ;;  %v6249_v56 = vpop.f32.mrf.mxu0 }
 0x2fc   : > { %v2895_v12 = vpop.f32.mrf.mxu3 }
 0x2fd   : > { %v2713_v36 = vpop.f32.mrf.mxu2  ;;  %v2925_v58 = vadd.f32 %v2924_v19, %v2895_v12 }
 0x2fe   : > { %v2714_v16 = vadd.f32 %v2713_v36, %v6157_v27  ;;  %v2958_v60 = vpop.f32.mrf.mxu1 }
 0x2ff   : > { %v2954_v4 = vadd.f32 %v2953_v43, %v2925_v58 }
 0x300   : > { %v2733_v31 = vadd.f32 %v2714_v16, %v6177_v26 }
 0x302   : > { %v6234_v42 = vadd.f32 %v2954_v4, %v2733_v31  ;;  %v2939_v47 = vpop.f32.mrf.mxu0 }
 0x304   : > { %v2897_v25 = vpop.f32.mrf.mxu3 }
 0x305   : > { %v2715_v33 = vpop.f32.mrf.mxu2 }
 0x306   : > { %v2716_v7 = vadd.f32 %v2715_v33, %v2687_v21  ;;  %v6240_v29 = vpop.f32.mrf.mxu1  ;;  %v2927_v21 = vadd.f32 %v6217_v44, %v2897_v25 }
 0x308   : > { %v2734_v41 = vadd.f32 %v2716_v7, %v6185_v13  ;;  %v2956_v33 = vadd.f32 %v6228_v17, %v2927_v21 }
 0x30c   : > { %v2900_v45 = vpop.f32.mrf.mxu3 }
 0x30d   : > { %v2718_v27 = vpop.f32.mrf.mxu2  ;;  %v2930_v26 = vadd.f32 %v2929_v30, %v2900_v45 }
 0x30e   : > { %v2719_v10 = vadd.f32 %v2718_v27, %v6174_v0  ;;  %v2963_v40 = vpop.f32.mrf.mxu1  ;;  %v2974_v27 = vadd.f32 %v2956_v33, %v2734_v41 }
 0x30f   : > { %v2959_v57 = vadd.f32 %v2958_v60, %v2930_v26 }
 0x310   : > { %v2735_v49 = vadd.f32 %v2719_v10, %v2495_v22 }
 0x312   : > { %v6242_v38 = vadd.f32 %v2959_v57, %v2735_v49 }
 0x314   : > { %v2902_v54 = vpop.f32.mrf.mxu3 }
 0x315   : > { %v2720_v13 = vpop.f32.mrf.mxu2 }
 0x316   : > { %v2721_v0 = vadd.f32 %v2720_v13, %v2692_v61  ;;  %v6260_v3 = vpop.f32.mrf.mxu1 }
 0x318   : > { %v6252_v22 = vadd.f32 %v2721_v0, %v6199_v8 }
 0x31c   : > { %v2905_v19 = vpop.f32.mrf.mxu3 }
 0x31d   : > { %v2723_v46 = vpop.f32.mrf.mxu2  ;;  %v2935_v50 = vadd.f32 %v2934_v48, %v2905_v19 }
 0x31e   : > { %v2724_v14 = vadd.f32 %v2723_v46, %v6190_v15  ;;  %v6265_v15 = vpop.f32.mrf.mxu0  ;;  %v2968_v39 = vpop.f32.mrf.mxu1 }
 0x31f   : > { %v2964_v11 = vadd.f32 %v2963_v40, %v2935_v50 }
 0x320   : > { %v2737_v20 = vadd.f32 %v2724_v14, %v6207_v55 }
 0x322   : > { %v6256_v35 = vadd.f32 %v2964_v11, %v2737_v20 }
 0x324   : > { %v2907_v51 = vpop.f32.mrf.mxu3 }
 0x325   : > { %v2725_v53 = vpop.f32.mrf.mxu2 }
 0x326   : > { %v2726_v8 = vadd.f32 %v2725_v53, %v2697_v23  ;;  %v3193_v5 = vpop.f32.mrf.mxu0 }
 0x328   : > { %v6263_v62 = vadd.f32 %v2726_v8, %v6211_v52 }
 0x32c   : > { %v2910_v55 = vpop.f32.mrf.mxu3 }
 0x32d   : > { %v2728_v1 = vpop.f32.mrf.mxu2  ;;  %v2940_v2 = vadd.f32 %v2939_v47, %v2910_v55 }
 0x32e   : > { %v2729_v43 = vadd.f32 %v2728_v1, %v6204_v59  ;;  %v3195_v59 = vpop.f32.mrf.mxu0 }
 0x32f   : > { %v2969_v30 = vadd.f32 %v2968_v39, %v2940_v2 }
 0x330   : > { %v2739_v32 = vadd.f32 %v2729_v43, %v6221_v34 }
 0x332   : > { %v6269_v24 = vadd.f32 %v2969_v30, %v2739_v32 }
 0x334   : > { %v6273_v16 = vpop.f32.mrf.mxu3 }
 0x335   : > { %v2730_v36 = vpop.f32.mrf.mxu2 }
 0x336   : > { %v2731_v52 = vadd.f32 %v2730_v36, %v2702_v18  ;;  %v3198_v48 = vpop.f32.mrf.mxu0 }
 0x338   : > { %v6275_v12 = vadd.f32 %v2731_v52, %v2500_v28 }
 0x33c   : > { %v3164_v31 = vpop.f32.mrf.mxu3 }
 0x33d   : > { %v3135_v58 = vpop.f32.mrf.mxu2 }
 0x33e   : > { %v3165_v4 = vadd.f32 %v3164_v31, %v3135_v58  ;;  %v3200_v13 = vpop.f32.mrf.mxu0 }
 0x340   : > { %v3194_v34 = vadd.f32 %v3193_v5, %v3165_v4 }
 0x342   : > { %v3213_v37 = vadd.f32 %v3194_v34, %v6234_v42  ;;  %v2932_v42 = vadd.f32 %v6232_v63, %v2902_v54 }
 0x344   : > { %v3166_v60 = vpop.f32.mrf.mxu3  ;;  %v3225_v45 = vadd.f32 %v6283_v6, %v3213_v37  ;;  %v2961_v41 = vadd.f32 %v6240_v29, %v2932_v42  ;;  %v2937_v29 = vadd.f32 %v6249_v56, %v2907_v51 }
 0x345   : > { %v3137_v7 = vpop.f32.mrf.mxu2 }
 0x346   : > { %v3167_v28 = vadd.f32 %v3166_v60, %v3137_v7  ;;  %v3233_v49 = vmax.f32 %v3225_v45, 0.0  ;;  %v2976_v50 = vadd.f32 %v2961_v41, %v6252_v22  ;;  %v3203_v20 = vpop.f32.mrf.mxu0  ;;  %v2966_v22 = vadd.f32 %v6260_v3, %v2937_v29 }
 0x347   : > { %v2942_v3 = vadd.f32 %v6265_v15, %v6273_v16 }
 0x348   : > { %v3196_v10 = vadd.f32 %v3195_v59, %v3167_v28  ;;  %v2978_v5 = vadd.f32 %v2966_v22, %v6263_v62 }
 0x34a   : > { %v3214_v26 = vadd.f32 %v3196_v10, %v2974_v27 }
 0x34c   : > { %v3226_v44 = vadd.f32 %v6283_v6, %v3214_v26  ;;  %v3169_v17 = vpop.f32.mrf.mxu3 }
 0x34d   : > { %v3140_v25 = vpop.f32.mrf.mxu2 }
 0x34e   : > { %v3234_v57 = vmax.f32 %v3226_v44, 0.0  ;;  %v3170_v9 = vadd.f32 %v3169_v17, %v3140_v25 }
 0x350   : > { %v3241_v61 = vpack.c.bf16 %v3234_v57, %v3233_v49  ;;  %v3199_v0 = vadd.f32 %v3198_v48, %v3170_v9  ;;  %v4675_v49 = vld [vmem:[%s6386_s8] ss:$0 sm:$0xff] }
 0x351   : > { %v6402_v57 = vld [vmem:[#allocation5_spill] sm:$0xff] }
 0x352   : > { %4435 = vmatmul.msk.bf16.vlgmr.msrb.gmra.mxu1 %vm380_vm0, %v3241_v61  ;;  %v3215_v14 = vadd.f32 %v3199_v0, %v6242_v38  ;;  %v3205_v38 = vpop.f32.mrf.mxu0  ;;  %v6403_v0 = vld [vmem:[#allocation6_spill] sm:$0xff] }
 0x354   : > { %v3171_v46 = vpop.f32.mrf.mxu3  ;;  %v3227_v11 = vadd.f32 %v6283_v6, %v3215_v14 }
 0x355   : > { %v3142_v40 = vpop.f32.mrf.mxu2 }
 0x356   : > { %v3172_v19 = vadd.f32 %v3171_v46, %v3142_v40  ;;  %v3235_v8 = vmax.f32 %v3227_v11, 0.0 }
 0x358   : > { %v3201_v47 = vadd.f32 %v3200_v13, %v3172_v19 }
 0x35a   : > { %v3216_v23 = vadd.f32 %v3201_v47, %v2976_v50  ;;  %v3208_v59 = vpop.f32.mrf.mxu0  ;;  %v6404_v50 = vld [vmem:[#allocation7_spill] sm:$0xff] }
 0x35c   : > { %v3228_v63 = vadd.f32 %v6283_v6, %v3216_v23  ;;  %v3174_v53 = vpop.f32.mrf.mxu3 }
 0x35d   : > { %v3145_v54 = vpop.f32.mrf.mxu2 }
 0x35e   : > { %v3236_v1 = vmax.f32 %v3228_v63, 0.0  ;;  %v3175_v43 = vadd.f32 %v3174_v53, %v3145_v54  ;;  %v6405_v54 = vld [vmem:[#allocation8_spill] sm:$0xff] }
 0x360   : > { %v3242_v55 = vpack.c.bf16 %v3236_v1, %v3235_v8  ;;  %v3204_v39 = vadd.f32 %v3203_v20, %v3175_v43 }
 0x362   : > { %4436 = vmatmul.msk.bf16.gmra.mxu1 %vm380_vm0, %v3242_v55  ;;  %v3217_v30 = vadd.f32 %v3204_v39, %v6256_v35  ;;  %v2970_v35 = vpop.f32.mrf.mxu1  ;;  %v3210_v27 = vpop.f32.mrf.mxu0  ;;  %v6406_v55 = vld [vmem:[#allocation10_spill] sm:$0xff] }
 0x363   : > { %v2971_v62 = vadd.f32 %v2970_v35, %v2942_v3 }
 0x364   : > { %v3176_v32 = vpop.f32.mrf.mxu3  ;;  %v3229_v52 = vadd.f32 %v6283_v6, %v3217_v30  ;;  %v6407_v30 = vld [vmem:[#allocation11_spill] sm:$0xff] }
 0x365   : > { %v3147_v2 = vpop.f32.mrf.mxu2  ;;  %v2980_v10 = vadd.f32 %v2971_v62, %v6275_v12 }
 0x366   : > { %v3177_v18 = vadd.f32 %v3176_v32, %v3147_v2  ;;  %v3237_v4 = vmax.f32 %v3229_v52, 0.0 }
 0x368   : > { %v3206_v36 = vadd.f32 %v3205_v38, %v3177_v18 }
 0x36a   : > { %v3218_v58 = vadd.f32 %v3206_v36, %v2978_v5 }
 0x36c   : > { %v3230_v56 = vadd.f32 %v6283_v6, %v3218_v58  ;;  %v3179_v31 = vpop.f32.mrf.mxu3 }
 0x36d   : > { %v3150_v51 = vpop.f32.mrf.mxu2 }
 0x36e   : > { %v3238_v21 = vmax.f32 %v3230_v56, 0.0  ;;  %v3180_v34 = vadd.f32 %v3179_v31, %v3150_v51  ;;  %v6408_v56 = vld [vmem:[#allocation9_spill] sm:$0xff] }
 0x370   : > { %v3243_v33 = vpack.c.bf16 %v3238_v21, %v3237_v4  ;;  %v3209_v7 = vadd.f32 %v3208_v59, %v3180_v34  ;;  %v6409_v34 = vld [vmem:[#allocation12_spill] sm:$0xff] }
 0x372   : > { %4437 = vmatmul.msk.bf16.gmra.mxu1 %vm380_vm0, %v3243_v33  ;;  %v3219_v28 = vadd.f32 %v3209_v7, %v6269_v24  ;;  %v4673_v24 = vld [vmem:[%s6380_s2] ss:$0 sm:$0xff] }
 0x373   : > { %v403_v9 = vadd.f32 %v4673_v24, %v6402_v57  ;;  %v405_v41 = vadd.f32 %v4673_v24, %v6403_v0  ;;  %v408_v47 = vadd.f32 %v4673_v24, %v6404_v50  ;;  %v410_v53 = vadd.f32 %v4673_v24, %v6405_v54 }
 0x374   : > { %v3181_v37 = vpop.f32.mrf.mxu3  ;;  %v3231_v26 = vadd.f32 %v6283_v6, %v3219_v28  ;;  %v413_v39 = vadd.f32 %v4673_v24, %v6406_v55  ;;  %v415_v18 = vadd.f32 %v4673_v24, %v6407_v30  ;;  %v418_v51 = vadd.f32 %v4673_v24, %v6408_v56 }
 0x375   : > { %v3152_v60 = vpop.f32.mrf.mxu2  ;;  %v420_v3 = vadd.f32 %v4673_v24, %v6409_v34 }
 0x376   : > { %v3182_v48 = vadd.f32 %v3181_v37, %v3152_v60  ;;  %v3239_v44 = vmax.f32 %v3231_v26, 0.0 }
 0x378   : > { %v3211_v45 = vadd.f32 %v3210_v27, %v3182_v48 }
 0x37a   : > { %v3220_v15 = vadd.f32 %v3211_v45, %v2980_v10 }
 0x37c   : > { %v3232_v16 = vadd.f32 %v6283_v6, %v3220_v15 }
 0x37e   : > { %v3240_v25 = vmax.f32 %v3232_v16, 0.0 }
 0x380   : > { %v3244_v17 = vpack.c.bf16 %v3240_v25, %v3239_v44 }
 0x382   : > { %4438 = vmatmul.msk.bf16.gmra.mxu1 %vm380_vm0, %v3244_v17 }
 0x3cf   : > { %v3286_v12 = vpop.f32.mrf.mxu1 }
 0x3d0   : > { %v3287_v6 = vadd.f32 %v4675_v49, %v3286_v12 }
 0x3d2   : > { %v3306_v42 = vadd.f32 %v3287_v6, %v403_v9 }
 0x3d4   : > { %v3314_v61 = vmax.f32 %v3306_v42, 0.0 }
 0x3d6   : > { %3322 = vst.msk [vmem:[%s6319_s28] sm:$0xff] %vm716_vm3, %v3314_v61 }
 0x3d7   : > { %v3288_v13 = vpop.f32.mrf.mxu1 }
 0x3d8   : > { %v3289_v40 = vadd.f32 %v4675_v49, %v3288_v13 }
 0x3da   : > { %v3307_v46 = vadd.f32 %v3289_v40, %v405_v41 }
 0x3dc   : > { %v3315_v14 = vmax.f32 %v3307_v46, 0.0 }
 0x3de   : > { %3323 = vst.msk [vmem:[%s6319_s28 + $0x8] sm:$0xff] %vm716_vm3, %v3315_v14 }
 0x3df   : > { %v3291_v19 = vpop.f32.mrf.mxu1 }
 0x3e0   : > { %v3292_v20 = vadd.f32 %v4675_v49, %v3291_v19 }
 0x3e2   : > { %v3308_v11 = vadd.f32 %v3292_v20, %v408_v47 }
 0x3e4   : > { %v3316_v23 = vmax.f32 %v3308_v11, 0.0 }
 0x3e6   : > { %3324 = vst.msk [vmem:[%s6319_s28 + $0x10] sm:$0xff] %vm716_vm3, %v3316_v23 }
 0x3e7   : > { %v3293_v63 = vpop.f32.mrf.mxu1 }
 0x3e8   : > { %v3294_v8 = vadd.f32 %v4675_v49, %v3293_v63 }
 0x3ea   : > { %v3309_v1 = vadd.f32 %v3294_v8, %v410_v53 }
 0x3ec   : > { %v3317_v43 = vmax.f32 %v3309_v1, 0.0 }
 0x3ee   : > { %3325 = vst.msk [vmem:[%s6319_s28 + $0x18] sm:$0xff] %vm716_vm3, %v3317_v43 }
 0x3ef   : > { %v3296_v29 = vpop.f32.mrf.mxu1 }
 0x3f0   : > { %v3297_v38 = vadd.f32 %v4675_v49, %v3296_v29 }
 0x3f2   : > { %v3310_v22 = vadd.f32 %v3297_v38, %v413_v39 }
 0x3f4   : > { %v3318_v2 = vmax.f32 %v3310_v22, 0.0 }
 0x3f6   : > { %3326 = vst.msk [vmem:[%s6319_s28 + $0x20] sm:$0xff] %vm716_vm3, %v3318_v2 }
 0x3f7   : > { %v3298_v32 = vpop.f32.mrf.mxu1 }
 0x3f8   : > { %v3299_v5 = vadd.f32 %v4675_v49, %v3298_v32 }
 0x3fa   : > { %v3311_v36 = vadd.f32 %v3299_v5, %v415_v18 }
 0x3fc   : > { %v3319_v52 = vmax.f32 %v3311_v36, 0.0 }
 0x3fe   : > { %3327 = vst.msk [vmem:[%s6319_s28 + $0x28] sm:$0xff] %vm716_vm3, %v3319_v52 }
 0x3ff   : > { %v3301_v58 = vpop.f32.mrf.mxu1 }
 0x400   : > { %v3302_v59 = vadd.f32 %v4675_v49, %v3301_v58 }
 0x402   : > { %v3312_v31 = vadd.f32 %v3302_v59, %v418_v51 }
 0x404   : > { %v3320_v4 = vmax.f32 %v3312_v31, 0.0 }
 0x406   : > { %3328 = vst.msk [vmem:[%s6319_s28 + $0x30] sm:$0xff] %vm716_vm3, %v3320_v4 }
 0x407   : > { %v3303_v21 = vpop.f32.mrf.mxu1 }
 0x408   : > { %v3304_v33 = vadd.f32 %v4675_v49, %v3303_v21 }
 0x40a   : > { %v3313_v35 = vadd.f32 %v3304_v33, %v420_v3 }
 0x40c   : > { %v3321_v7 = vmax.f32 %v3313_v35, 0.0 }
 0x40e   : > { %3329 = vst.msk [vmem:[%s6319_s28 + $0x38] sm:$0xff] %vm716_vm3, %v3321_v7 }
 0x40f   : > { %4703 = shalt.err (!%p4700_p3)
}
 0x410   : > { %s4744_s25 = smov 128   ;;  %s4745_s28 = smov 8  }
 0x411   : > { %4622 = dma.vmem_to_hbm [thread:$0]  (%p4834_p5), %s3344_s22, 1024, %s3346_s16, %s3331_s13, %s4744_s25, %s4744_s25, %s4745_s28  }
 0x412 PF: > { %p4628_p4 = scmp.ge.s32.totalorder %s4738_s12, 2  ;;  %s3360_s21 = sand.u32 1, %s4726_s30  }
 0x413   : > { %s3361_s24 = scalar_lea.sflag [#allocation3], %s3360_s21 }
 0x414   : > { %p4625_p7 = pnand %p4628_p4, %p4838_p6 }
 0x416   : > { %p4626_p8 = pneg %p4625_p7 }
 0x418   : > { %4721 = dma.done.wait (%p4626_p8), %s3361_s24, 1024  }
 0x419   : > { %4723 = vsyncadd (%p4626_p8), %s3361_s24, 4294966272  ;;  %p19_p9 = scmp.ge.s32.totalorder %s4821_s15, 4   ;;  %s6410_s30 = smov %s4730_s10 }
 0x41a   : > { %s6411_s10 = smov %s4734_s11  ;;  %s6412_s11 = smov %s4832_s18 }
 0x41b   : > { %s6413_s12 = smov %s4821_s15  ;;  %21 = sbr.rel (!%p19_p9) target bundleno = 3 (0x3), region = 99 }
 0x420   :  { %3367 = vsyncpa [#allocation3], 1 }
 0x421   :  { %3369 = vsyncpa [#allocation3 + $0x1], 1 }

</bundles_post_ra>
